<compile_context>
chip_gen: v7x
topology: tpu7x:2x2x1
jax: 0.10.0
libtpu: 0.0.40
codegen_flags: <defaults>
</compile_context>

<pallas_src>
import math
import functools
import numpy as np

import jax
import jax.numpy as jnp
from jax.experimental import pallas as pl
from jax.experimental.pallas import tpu as pltpu


# ----------------------------- Pallas kernel -----------------------------

def _layernorm(x, g, b, eps=1e-5):
    mu = jnp.mean(x, axis=-1, keepdims=True)
    var = jnp.mean((x - mu) ** 2, axis=-1, keepdims=True)
    return (x - mu) * jax.lax.rsqrt(var + eps) * g + b


def vit_kernel(patches_ref, wp_ref, pe_ref, qmask_ref, kmask_ref,
               wqkv_ref, bqkv_ref, wo_ref, bo_ref,
               ln1g_ref, ln1b_ref, ln2g_ref, ln2b_ref,
               w1_ref, b1_ref, w2_ref, b2_ref,
               lng_ref, lnb_ref, fcw_ref, fcb_ref,
               o_ref, *, num_layers, num_heads, head_dim, seq_pad, batch_block):
    TB, S = batch_block, seq_pad
    E = wp_ref.shape[1]
    H, D = num_heads, head_dim
    M = TB * S
    scale = 1.0 / math.sqrt(D)

    # ---- patch embedding, batch-folded: (TB*S, CPP) @ (CPP, E), bf16 -> f32.
    # cls token, conv bias and position embedding are folded into pe (f32).
    pflat = patches_ref[...].reshape(M, patches_ref.shape[2])
    x = jnp.dot(pflat, wp_ref[...],
                preferred_element_type=jnp.float32) + pe_ref[...]

    qmask = qmask_ref[...]        # (H*S, E) 0/1 block-diagonal head mask
    kmask = kmask_ref[...]        # (1, S)   additive mask for padded keys

    for l in range(num_layers):                       # static unroll, L=2
        # ---- pre-norm MHSA, fused QKV projection over all TB*S rows
        xn = _layernorm(x, ln1g_ref[l], ln1b_ref[l])
        qkv = jnp.dot(xn.astype(jnp.bfloat16), wqkv_ref[l],
                      preferred_element_type=jnp.float32) + bqkv_ref[l]
        q, k, v = qkv[:, :E], qkv[:, E:2 * E], qkv[:, 2 * E:]

        ctx_rows = []
        for m in range(TB):                           # small static per-image loop
            rs = slice(m * S, (m + 1) * S)
            qm, km, vm = q[rs], k[rs], v[rs]
            # Replicate q over heads along sublanes and zero non-head columns:
            # row h*S+i of qbd holds only head-h columns of query i, so one
            # contraction over E gives all-head scores at once.
            qbd = jnp.concatenate([qm] * H, axis=0) * qmask          # (H*S, E)
            s = jax.lax.dot_general(qbd, km, (((1,), (1,)), ((), ())),
                                    preferred_element_type=jnp.float32)
            s = s * scale + kmask                                    # (H*S, S)
            s = s - jnp.max(s, axis=-1, keepdims=True)
            p = jnp.exp(s)
            p = p * pl.reciprocal(jnp.sum(p, axis=-1, keepdims=True),
                                  approx=True)
            cbd = jnp.dot(p, vm, preferred_element_type=jnp.float32)  # (H*S, E)
            cbd = cbd * qmask
            ctxm = cbd[0:S]
            for h in range(1, H):
                ctxm = ctxm + cbd[h * S:(h + 1) * S]                  # (S, E)
            ctx_rows.append(ctxm)
        ctx = ctx_rows[0] if TB == 1 else jnp.concatenate(ctx_rows, axis=0)
        attn = jnp.dot(ctx.astype(jnp.bfloat16), wo_ref[l],
                       preferred_element_type=jnp.float32) + bo_ref[l]
        x = x + attn

        # ---- pre-norm feed-forward: bf16 operands, f32 accumulation
        xn2 = _layernorm(x, ln2g_ref[l], ln2b_ref[l])
        h1 = jnp.dot(xn2.astype(jnp.bfloat16), w1_ref[l],
                     preferred_element_type=jnp.float32) + b1_ref[l]
        h1 = jnp.maximum(h1, 0.0)                     # activation="relu"
        ff = jnp.dot(h1.astype(jnp.bfloat16), w2_ref[l],
                     preferred_element_type=jnp.float32) + b2_ref[l]
        x = x + ff

    # ---- classifier head on the CLS rows (one lane-dense store per block)
    if TB == 1:
        cls = x[0:1, :]
    else:
        cls = jnp.concatenate([x[m * S:m * S + 1, :] for m in range(TB)], axis=0)
    clsn = _layernorm(cls, lng_ref[...], lnb_ref[...])
    o_ref[0] = jnp.dot(clsn.astype(jnp.bfloat16), fcw_ref[...],
                       preferred_element_type=jnp.float32) + fcb_ref[...]


# ----------------------------- wrapper -----------------------------

def vit_forward(x_img, params, patch_size, num_heads):
    B, C, Hh, Ww = x_img.shape
    P = patch_size
    N = (Hh // P) * (Ww // P)
    E = params["conv_w"].shape[0]
    S = N + 1
    S_pad = ((S + 15) // 16) * 16                    # 17 -> 32 (bf16 sublane tile)
    CPP = C * P * P
    L = len(params["layers"])
    H = num_heads
    D = E // H
    FF = params["layers"][0]["lin1_w"].shape[0]
    NC = params["fc_w"].shape[0]
    NC_pad = ((NC + 127) // 128) * 128               # 10 -> 128 (lane-dense)

    # Batch blocking: fold up to ~256 rows of images per grid step, but keep at
    # least two "parallel" grid steps when B >= 2 (two TensorCores on v7x).
    TB = max(1, min(B, 256 // S_pad))
    num_blocks = -(-B // TB)
    if num_blocks == 1 and B > 1:
        num_blocks = 2
        TB = -(-B // num_blocks)
    B_pad = num_blocks * TB

    # Glue: strided-conv patch extraction -> (B, N, C*P*P), (c, kh, kw) order.
    xp = x_img.reshape(B, C, Hh // P, P, Ww // P, P)
    xp = xp.transpose(0, 2, 4, 1, 3, 5).reshape(B, N, CPP)
    # Row 0 = zero "patch" for the CLS slot; rows S..S_pad-1 / images B..B_pad-1
    # are zero padding.
    patches = jnp.zeros((B_pad, S_pad, CPP), jnp.float32).at[:B, 1:S, :].set(xp)
    patches = patches.astype(jnp.bfloat16)

    wp = params["conv_w"].reshape(E, CPP).T.astype(jnp.bfloat16)      # (CPP, E)
    # Fold cls token, conv bias and position embedding into one additive bias,
    # tiled TB times to match the flattened (TB*S_pad, E) row block.
    pe1 = jnp.zeros((S_pad, E), jnp.float32)
    pe1 = pe1.at[0, :].set(params["cls"].reshape(E) + params["pos"][0, 0])
    pe1 = pe1.at[1:S, :].set(params["pos"][0, 1:] + params["conv_b"][None, :])
    pe = jnp.tile(pe1, (TB, 1))                                       # (TB*S_pad, E)

    # Block-diagonal head mask: row h*S_pad+i selects head-h columns of E.
    qmask = ((np.arange(H * S_pad)[:, None] // S_pad)
             == (np.arange(E)[None, :] // D)).astype(np.float32)
    qmask = jnp.asarray(qmask)
    # Additive key mask for padded sequence rows (host-built, grid-invariant).
    kmask = jnp.where(jnp.arange(S_pad) < S, 0.0, -1e30).astype(jnp.float32)
    kmask = kmask.reshape(1, S_pad)

    ls = params["layers"]
    wqkv = jnp.stack([lp["in_proj_w"].T for lp in ls]).astype(jnp.bfloat16)
    bqkv = jnp.stack([lp["in_proj_b"].reshape(1, 3 * E) for lp in ls])
    wo = jnp.stack([lp["out_proj_w"].T for lp in ls]).astype(jnp.bfloat16)
    bo = jnp.stack([lp["out_proj_b"].reshape(1, E) for lp in ls])
    ln1g = jnp.stack([lp["ln1_g"].reshape(1, E) for lp in ls])
    ln1b = jnp.stack([lp["ln1_b"].reshape(1, E) for lp in ls])
    ln2g = jnp.stack([lp["ln2_g"].reshape(1, E) for lp in ls])
    ln2b = jnp.stack([lp["ln2_b"].reshape(1, E) for lp in ls])
    w1 = jnp.stack([lp["lin1_w"].T for lp in ls]).astype(jnp.bfloat16)  # (L, E, FF)
    b1 = jnp.stack([lp["lin1_b"].reshape(1, FF) for lp in ls])
    w2 = jnp.stack([lp["lin2_w"].T for lp in ls]).astype(jnp.bfloat16)  # (L, FF, E)
    b2 = jnp.stack([lp["lin2_b"].reshape(1, E) for lp in ls])

    lng = params["ln_g"].reshape(1, E)
    lnb = params["ln_b"].reshape(1, E)
    fcw = (jnp.zeros((E, NC_pad), jnp.float32).at[:, :NC]
           .set(params["fc_w"].T)).astype(jnp.bfloat16)
    fcb = jnp.zeros((1, NC_pad), jnp.float32).at[:, :NC].set(params["fc_b"])

    kern = functools.partial(vit_kernel, num_layers=L, num_heads=H,
                             head_dim=D, seq_pad=S_pad, batch_block=TB)

    def const(shape):
        return pl.BlockSpec(shape, lambda b, _n=len(shape): (0,) * _n)

    out = pl.pallas_call(
        kern,
        out_shape=jax.ShapeDtypeStruct((num_blocks, TB, NC_pad), jnp.float32),
        grid=(num_blocks,),
        in_specs=[
            pl.BlockSpec((TB, S_pad, CPP), lambda b: (b, 0, 0)),
            const((CPP, E)), const((TB * S_pad, E)),
            const((H * S_pad, E)), const((1, S_pad)),
            const((L, E, 3 * E)), const((L, 1, 3 * E)),
            const((L, E, E)), const((L, 1, E)),
            const((L, 1, E)), const((L, 1, E)),
            const((L, 1, E)), const((L, 1, E)),
            const((L, E, FF)), const((L, 1, FF)),
            const((L, FF, E)), const((L, 1, E)),
            const((1, E)), const((1, E)),
            const((E, NC_pad)), const((1, NC_pad)),
        ],
        out_specs=pl.BlockSpec((1, TB, NC_pad), lambda b: (b, 0, 0)),
        compiler_params=pltpu.CompilerParams(
            dimension_semantics=("parallel",)),
    )(patches, wp, pe, qmask, kmask, wqkv, bqkv, wo, bo,
      ln1g, ln1b, ln2g, ln2b, w1, b1, w2, b2, lng, lnb, fcw, fcb)

    return out.reshape(num_blocks * TB, NC_pad)[:B, :NC]


# ----------------------------- parameter setup -----------------------------

def init_params(key, in_channels, patch_size, embed_dim, num_patches,
                num_layers, num_classes, dim_feedforward):
    E, C, P = embed_dim, in_channels, patch_size

    def nrm(k, shape, scale):
        return (scale * jax.random.normal(k, shape)).astype(jnp.float32)

    keys = jax.random.split(key, 8 + num_layers)
    params = {
        "conv_w": nrm(keys[0], (E, C, P, P), 0.1),
        "conv_b": nrm(keys[1], (E,), 0.02),
        "cls":    nrm(keys[2], (1, 1, E), 1.0),
        "pos":    nrm(keys[3], (1, num_patches + 1, E), 1.0),
        "ln_g":   jnp.ones((E,), jnp.float32) + nrm(keys[4], (E,), 0.02),
        "ln_b":   nrm(keys[5], (E,), 0.02),
        "fc_w":   nrm(keys[6], (num_classes, E), 0.1),
        "fc_b":   nrm(keys[7], (num_classes,), 0.02),
        "layers": [],
    }
    for l in range(num_layers):
        lk = jax.random.split(keys[8 + l], 12)
        params["layers"].append({
            "in_proj_w":  nrm(lk[0], (3 * E, E), 0.05),
            "in_proj_b":  nrm(lk[1], (3 * E,), 0.02),
            "out_proj_w": nrm(lk[2], (E, E), 0.05),
            "out_proj_b": nrm(lk[3], (E,), 0.02),
            "ln1_g": jnp.ones((E,), jnp.float32) + nrm(lk[4], (E,), 0.02),
            "ln1_b": nrm(lk[5], (E,), 0.02),
            "ln2_g": jnp.ones((E,), jnp.float32) + nrm(lk[6], (E,), 0.02),
            "ln2_b": nrm(lk[7], (E,), 0.02),
            "lin1_w": nrm(lk[8], (dim_feedforward, E), 0.05),
            "lin1_b": nrm(lk[9], (dim_feedforward,), 0.02),
            "lin2_w": nrm(lk[10], (E, dim_feedforward), 0.02),
            "lin2_b": nrm(lk[11], (E,), 0.02),
        })
    return params


# ----------------------------- pure-JAX reference -----------------------------

_HI = jax.lax.Precision.HIGHEST


def _ref_ln(x, g, b, eps=1e-5):
    mu = jnp.mean(x, axis=-1, keepdims=True)
    var = jnp.mean((x - mu) ** 2, axis=-1, keepdims=True)
    return (x - mu) / jnp.sqrt(var + eps) * g + b


def ref_forward(x_img, params, patch_size, num_heads):
    B, C, Hh, Ww = x_img.shape
    P = patch_size
    E = params["conv_w"].shape[0]
    N = (Hh // P) * (Ww // P)
    xp = x_img.reshape(B, C, Hh // P, P, Ww // P, P)
    xp = xp.transpose(0, 2, 4, 1, 3, 5).reshape(B, N, C * P * P)
    emb = jnp.einsum("bnk,ek->bne", xp, params["conv_w"].reshape(E, -1),
                     precision=_HI) + params["conv_b"]
    cls = jnp.broadcast_to(params["cls"], (B, 1, E))
    x = jnp.concatenate([cls, emb], axis=1) + params["pos"]
    # TODO(synk): nn.Dropout is treated as identity (p=0.0 / eval mode).
    H = num_heads
    D = E // H
    S = x.shape[1]
    for lp in params["layers"]:
        xn = _ref_ln(x, lp["ln1_g"], lp["ln1_b"])
        qkv = jnp.einsum("bse,fe->bsf", xn, lp["in_proj_w"], precision=_HI) + lp["in_proj_b"]
        q, k, v = jnp.split(qkv, 3, axis=-1)
        q = q.reshape(B, S, H, D).transpose(0, 2, 1, 3)
        k = k.reshape(B, S, H, D).transpose(0, 2, 1, 3)
        v = v.reshape(B, S, H, D).transpose(0, 2, 1, 3)
        s = jnp.einsum("bhqd,bhkd->bhqk", q, k, precision=_HI) / math.sqrt(D)
        p = jax.nn.softmax(s, axis=-1)
        ctx = jnp.einsum("bhqk,bhkd->bhqd", p, v, precision=_HI)
        ctx = ctx.transpose(0, 2, 1, 3).reshape(B, S, E)
        attn = jnp.einsum("bse,oe->bso", ctx, lp["out_proj_w"], precision=_HI) + lp["out_proj_b"]
        x = x + attn
        xn2 = _ref_ln(x, lp["ln2_g"], lp["ln2_b"])
        h1 = jax.nn.relu(jnp.einsum("bse,fe->bsf", xn2, lp["lin1_w"], precision=_HI) + lp["lin1_b"])
        ff = jnp.einsum("bsf,ef->bse", h1, lp["lin2_w"], precision=_HI) + lp["lin2_b"]
        x = x + ff
    xc = _ref_ln(x[:, 0, :], params["ln_g"], params["ln_b"])
    return jnp.einsum("be,ce->bc", xc, params["fc_w"], precision=_HI) + params["fc_b"]


# ----------------------------- main -----------------------------

if __name__ == "__main__":
    B, C, IMG, P = 2, 4, 16, 4
    E, HEADS, LAYERS, CLASSES = 32, 4, 2, 10
    FF = 2048  # nn.TransformerEncoderLayer default dim_feedforward
    N = (IMG // P) ** 2

    key = jax.random.PRNGKey(0)
    kx, kp = jax.random.split(key)
    x = jax.random.normal(kx, (B, C, IMG, IMG), jnp.float32)
    params = init_params(kp, C, P, E, N, LAYERS, CLASSES, FF)

    out = vit_forward(x, params, P, HEADS)
    out = jax.block_until_ready(out)
    assert out.shape == (B, CLASSES)

    ref = ref_forward(x, params, P, HEADS)
    np.testing.assert_allclose(np.asarray(out), np.asarray(ref), rtol=2e-2, atol=2e-2)

    print("KERNEL_OK")
</pallas_src>

<mosaic_0001>
module attributes {stable_mosaic.version = 11 : i64} {
  func.func @vit_kernel(%arg0: i32, %arg1: memref<1x32x64xbf16, #tpu.memory_space<vmem>>, %arg2: memref<64x32xbf16, #tpu.memory_space<vmem>>, %arg3: memref<32x32xf32, #tpu.memory_space<vmem>>, %arg4: memref<128x32xf32, #tpu.memory_space<vmem>>, %arg5: memref<1x32xf32, #tpu.memory_space<vmem>>, %arg6: memref<2x32x96xbf16, #tpu.memory_space<vmem>>, %arg7: memref<2x1x96xf32, #tpu.memory_space<vmem>>, %arg8: memref<2x32x32xbf16, #tpu.memory_space<vmem>>, %arg9: memref<2x1x32xf32, #tpu.memory_space<vmem>>, %arg10: memref<2x1x32xf32, #tpu.memory_space<vmem>>, %arg11: memref<2x1x32xf32, #tpu.memory_space<vmem>>, %arg12: memref<2x1x32xf32, #tpu.memory_space<vmem>>, %arg13: memref<2x1x32xf32, #tpu.memory_space<vmem>>, %arg14: memref<2x32x2048xbf16, #tpu.memory_space<vmem>>, %arg15: memref<2x1x2048xf32, #tpu.memory_space<vmem>>, %arg16: memref<2x2048x32xbf16, #tpu.memory_space<vmem>>, %arg17: memref<2x1x32xf32, #tpu.memory_space<vmem>>, %arg18: memref<1x32xf32, #tpu.memory_space<vmem>>, %arg19: memref<1x32xf32, #tpu.memory_space<vmem>>, %arg20: memref<32x128xbf16, #tpu.memory_space<vmem>>, %arg21: memref<1x128xf32, #tpu.memory_space<vmem>>, %arg22: memref<1x1x128xf32, #tpu.memory_space<vmem>>) attributes {dimension_semantics = [#tpu.dimension_semantics<parallel>], iteration_bounds = array<i64: 2>, scalar_prefetch = 0 : i64, scratch_operands = 0 : i64, tpu.core_type = #tpu.core_type<tc>, window_params = [{transform_indices = @transform_0, window_bounds = array<i64: 1, 32, 64>}, {pipeline_mode = #tpu.pipeline_mode<synchronous>, transform_indices = @transform_1, window_bounds = array<i64: 64, 32>}, {pipeline_mode = #tpu.pipeline_mode<synchronous>, transform_indices = @transform_2, window_bounds = array<i64: 32, 32>}, {pipeline_mode = #tpu.pipeline_mode<synchronous>, transform_indices = @transform_3, window_bounds = array<i64: 128, 32>}, {pipeline_mode = #tpu.pipeline_mode<synchronous>, transform_indices = @transform_4, window_bounds = array<i64: 1, 32>}, {pipeline_mode = #tpu.pipeline_mode<synchronous>, transform_indices = @transform_5, window_bounds = array<i64: 2, 32, 96>}, {pipeline_mode = #tpu.pipeline_mode<synchronous>, transform_indices = @transform_6, window_bounds = array<i64: 2, 1, 96>}, {pipeline_mode = #tpu.pipeline_mode<synchronous>, transform_indices = @transform_7, window_bounds = array<i64: 2, 32, 32>}, {pipeline_mode = #tpu.pipeline_mode<synchronous>, transform_indices = @transform_8, window_bounds = array<i64: 2, 1, 32>}, {pipeline_mode = #tpu.pipeline_mode<synchronous>, transform_indices = @transform_9, window_bounds = array<i64: 2, 1, 32>}, {pipeline_mode = #tpu.pipeline_mode<synchronous>, transform_indices = @transform_10, window_bounds = array<i64: 2, 1, 32>}, {pipeline_mode = #tpu.pipeline_mode<synchronous>, transform_indices = @transform_11, window_bounds = array<i64: 2, 1, 32>}, {pipeline_mode = #tpu.pipeline_mode<synchronous>, transform_indices = @transform_12, window_bounds = array<i64: 2, 1, 32>}, {pipeline_mode = #tpu.pipeline_mode<synchronous>, transform_indices = @transform_13, window_bounds = array<i64: 2, 32, 2048>}, {pipeline_mode = #tpu.pipeline_mode<synchronous>, transform_indices = @transform_14, window_bounds = array<i64: 2, 1, 2048>}, {pipeline_mode = #tpu.pipeline_mode<synchronous>, transform_indices = @transform_15, window_bounds = array<i64: 2, 2048, 32>}, {pipeline_mode = #tpu.pipeline_mode<synchronous>, transform_indices = @transform_16, window_bounds = array<i64: 2, 1, 32>}, {pipeline_mode = #tpu.pipeline_mode<synchronous>, transform_indices = @transform_17, window_bounds = array<i64: 1, 32>}, {pipeline_mode = #tpu.pipeline_mode<synchronous>, transform_indices = @transform_18, window_bounds = array<i64: 1, 32>}, {pipeline_mode = #tpu.pipeline_mode<synchronous>, transform_indices = @transform_19, window_bounds = array<i64: 32, 128>}, {pipeline_mode = #tpu.pipeline_mode<synchronous>, transform_indices = @transform_20, window_bounds = array<i64: 1, 128>}, {transform_indices = @transform_21, window_bounds = array<i64: 1, 1, 128>}]} {
    %c0 = arith.constant 0 : index
    %c0_0 = arith.constant 0 : index
    %c0_1 = arith.constant 0 : index
    %0 = vector.load %arg1[%c0, %c0_0, %c0_1] : memref<1x32x64xbf16, #tpu.memory_space<vmem>>, vector<1x32x64xbf16>
    %1 = vector.shape_cast %0 : vector<1x32x64xbf16> to vector<32x64xbf16>
    %c0_2 = arith.constant 0 : index
    %c0_3 = arith.constant 0 : index
    %2 = vector.load %arg2[%c0_2, %c0_3] : memref<64x32xbf16, #tpu.memory_space<vmem>>, vector<64x32xbf16>
    %cst = arith.constant dense<0.000000e+00> : vector<32x32xf32>
    %3 = tpu.matmul %1, %2, %cst {dimension_numbers = #tpu.dot_dimension_numbers<[1], [0], [0], [1], [0, 0, 1, 1], [], []>} : vector<32x64xbf16>, vector<64x32xbf16>, vector<32x32xf32> -> vector<32x32xf32>
    %c0_4 = arith.constant 0 : index
    %c0_5 = arith.constant 0 : index
    %4 = vector.load %arg3[%c0_4, %c0_5] : memref<32x32xf32, #tpu.memory_space<vmem>>, vector<32x32xf32>
    %5 = arith.addf %3, %4 : vector<32x32xf32>
    %c0_6 = arith.constant 0 : index
    %c0_7 = arith.constant 0 : index
    %6 = vector.load %arg4[%c0_6, %c0_7] : memref<128x32xf32, #tpu.memory_space<vmem>>, vector<128x32xf32>
    %c0_8 = arith.constant 0 : index
    %c0_9 = arith.constant 0 : index
    %7 = vector.load %arg5[%c0_8, %c0_9] : memref<1x32xf32, #tpu.memory_space<vmem>>, vector<1x32xf32>
    %c0_10 = arith.constant 0 : index
    %c0_11 = arith.constant 0 : index
    %c0_12 = arith.constant 0 : index
    %8 = vector.load %arg10[%c0_10, %c0_11, %c0_12] : memref<2x1x32xf32, #tpu.memory_space<vmem>>, vector<1x1x32xf32>
    %9 = vector.shape_cast %8 : vector<1x1x32xf32> to vector<1x32xf32>
    %c0_13 = arith.constant 0 : index
    %c0_14 = arith.constant 0 : index
    %c0_15 = arith.constant 0 : index
    %10 = vector.load %arg11[%c0_13, %c0_14, %c0_15] : memref<2x1x32xf32, #tpu.memory_space<vmem>>, vector<1x1x32xf32>
    %11 = vector.shape_cast %10 : vector<1x1x32xf32> to vector<1x32xf32>
    %cst_16 = arith.constant dense<0.000000e+00> : vector<32xf32>
    %12 = vector.multi_reduction <add>, %5, %cst_16 [1] : vector<32x32xf32> to vector<32xf32>
    %13 = vector.shape_cast %12 : vector<32xf32> to vector<32x1xf32>
    %cst_17 = arith.constant 3.200000e+01 : f32
    %14 = vector.broadcast %cst_17 : f32 to vector<32x1xf32>
    %15 = arith.divf %13, %14 : vector<32x1xf32>
    %16 = vector.broadcast %15 : vector<32x1xf32> to vector<32x32xf32>
    %17 = arith.subf %5, %16 : vector<32x32xf32>
    %18 = arith.mulf %17, %17 : vector<32x32xf32>
    %cst_18 = arith.constant dense<0.000000e+00> : vector<32xf32>
    %19 = vector.multi_reduction <add>, %18, %cst_18 [1] : vector<32x32xf32> to vector<32xf32>
    %20 = vector.shape_cast %19 : vector<32xf32> to vector<32x1xf32>
    %cst_19 = arith.constant 3.200000e+01 : f32
    %21 = vector.broadcast %cst_19 : f32 to vector<32x1xf32>
    %22 = arith.divf %20, %21 : vector<32x1xf32>
    %23 = vector.broadcast %15 : vector<32x1xf32> to vector<32x32xf32>
    %24 = arith.subf %5, %23 : vector<32x32xf32>
    %cst_20 = arith.constant 9.99999974E-6 : f32
    %25 = vector.broadcast %cst_20 : f32 to vector<32x1xf32>
    %26 = arith.addf %22, %25 : vector<32x1xf32>
    %27 = math.rsqrt %26 : vector<32x1xf32>
    %28 = vector.broadcast %27 : vector<32x1xf32> to vector<32x32xf32>
    %29 = arith.mulf %24, %28 : vector<32x32xf32>
    %30 = vector.broadcast %9 : vector<1x32xf32> to vector<32x32xf32>
    %31 = arith.mulf %29, %30 : vector<32x32xf32>
    %32 = vector.broadcast %11 : vector<1x32xf32> to vector<32x32xf32>
    %33 = arith.addf %31, %32 : vector<32x32xf32>
    %34 = arith.truncf %33 : vector<32x32xf32> to vector<32x32xbf16>
    %c0_21 = arith.constant 0 : index
    %c0_22 = arith.constant 0 : index
    %c0_23 = arith.constant 0 : index
    %35 = vector.load %arg6[%c0_21, %c0_22, %c0_23] : memref<2x32x96xbf16, #tpu.memory_space<vmem>>, vector<1x32x96xbf16>
    %36 = vector.shape_cast %35 : vector<1x32x96xbf16> to vector<32x96xbf16>
    %cst_24 = arith.constant dense<0.000000e+00> : vector<32x96xf32>
    %37 = tpu.matmul %34, %36, %cst_24 {dimension_numbers = #tpu.dot_dimension_numbers<[1], [0], [0], [1], [0, 0, 1, 1], [], []>} : vector<32x32xbf16>, vector<32x96xbf16>, vector<32x96xf32> -> vector<32x96xf32>
    %c0_25 = arith.constant 0 : index
    %c0_26 = arith.constant 0 : index
    %c0_27 = arith.constant 0 : index
    %38 = vector.load %arg7[%c0_25, %c0_26, %c0_27] : memref<2x1x96xf32, #tpu.memory_space<vmem>>, vector<1x1x96xf32>
    %39 = vector.shape_cast %38 : vector<1x1x96xf32> to vector<1x96xf32>
    %40 = vector.broadcast %39 : vector<1x96xf32> to vector<32x96xf32>
    %41 = arith.addf %37, %40 : vector<32x96xf32>
    %42 = vector.extract_strided_slice %41 {offsets = [0, 0], sizes = [32, 32], strides = [1, 1]} : vector<32x96xf32> to vector<32x32xf32>
    %43 = vector.extract_strided_slice %41 {offsets = [0, 32], sizes = [32, 32], strides = [1, 1]} : vector<32x96xf32> to vector<32x32xf32>
    %44 = vector.extract_strided_slice %41 {offsets = [0, 64], sizes = [32, 32], strides = [1, 1]} : vector<32x96xf32> to vector<32x32xf32>
    %45 = tpu.concatenate %42, %42, %42, %42 in 0 : vector<32x32xf32>, vector<32x32xf32>, vector<32x32xf32>, vector<32x32xf32> -> vector<128x32xf32>
    %46 = arith.mulf %45, %6 : vector<128x32xf32>
    %cst_28 = arith.constant dense<0.000000e+00> : vector<128x32xf32>
    %47 = tpu.matmul %46, %43, %cst_28 {dimension_numbers = #tpu.dot_dimension_numbers<[1], [1], [0], [0], [0, 0, 1, 0], [], []>} : vector<128x32xf32>, vector<32x32xf32>, vector<128x32xf32> -> vector<128x32xf32>
    %cst_29 = arith.constant 0.353553385 : f32
    %48 = vector.broadcast %cst_29 : f32 to vector<128x32xf32>
    %49 = arith.mulf %47, %48 : vector<128x32xf32>
    %50 = vector.broadcast %7 : vector<1x32xf32> to vector<128x32xf32>
    %51 = arith.addf %49, %50 : vector<128x32xf32>
    %cst_30 = arith.constant dense<0xFF800000> : vector<128xf32>
    %52 = vector.multi_reduction <maximumf>, %51, %cst_30 [1] : vector<128x32xf32> to vector<128xf32>
    %53 = vector.shape_cast %52 : vector<128xf32> to vector<128x1xf32>
    %54 = vector.broadcast %53 : vector<128x1xf32> to vector<128x32xf32>
    %55 = arith.subf %51, %54 : vector<128x32xf32>
    %56 = math.exp %55 : vector<128x32xf32>
    %cst_31 = arith.constant dense<0.000000e+00> : vector<128xf32>
    %57 = vector.multi_reduction <add>, %56, %cst_31 [1] : vector<128x32xf32> to vector<128xf32>
    %58 = vector.shape_cast %57 : vector<128xf32> to vector<128x1xf32>
    %59 = tpu.reciprocal %58 {approx = true} : vector<128x1xf32> -> vector<128x1xf32>
    %60 = vector.broadcast %59 : vector<128x1xf32> to vector<128x32xf32>
    %61 = arith.mulf %56, %60 : vector<128x32xf32>
    %cst_32 = arith.constant dense<0.000000e+00> : vector<128x32xf32>
    %62 = tpu.matmul %61, %44, %cst_32 {dimension_numbers = #tpu.dot_dimension_numbers<[1], [0], [0], [1], [0, 0, 1, 1], [], []>} : vector<128x32xf32>, vector<32x32xf32>, vector<128x32xf32> -> vector<128x32xf32>
    %63 = arith.mulf %62, %6 : vector<128x32xf32>
    %64 = vector.extract_strided_slice %63 {offsets = [0, 0], sizes = [32, 32], strides = [1, 1]} : vector<128x32xf32> to vector<32x32xf32>
    %65 = vector.extract_strided_slice %63 {offsets = [32, 0], sizes = [32, 32], strides = [1, 1]} : vector<128x32xf32> to vector<32x32xf32>
    %66 = arith.addf %64, %65 : vector<32x32xf32>
    %67 = vector.extract_strided_slice %63 {offsets = [64, 0], sizes = [32, 32], strides = [1, 1]} : vector<128x32xf32> to vector<32x32xf32>
    %68 = arith.addf %66, %67 : vector<32x32xf32>
    %69 = vector.extract_strided_slice %63 {offsets = [96, 0], sizes = [32, 32], strides = [1, 1]} : vector<128x32xf32> to vector<32x32xf32>
    %70 = arith.addf %68, %69 : vector<32x32xf32>
    %71 = arith.truncf %70 : vector<32x32xf32> to vector<32x32xbf16>
    %c0_33 = arith.constant 0 : index
    %c0_34 = arith.constant 0 : index
    %c0_35 = arith.constant 0 : index
    %72 = vector.load %arg8[%c0_33, %c0_34, %c0_35] : memref<2x32x32xbf16, #tpu.memory_space<vmem>>, vector<1x32x32xbf16>
    %73 = vector.shape_cast %72 : vector<1x32x32xbf16> to vector<32x32xbf16>
    %cst_36 = arith.constant dense<0.000000e+00> : vector<32x32xf32>
    %74 = tpu.matmul %71, %73, %cst_36 {dimension_numbers = #tpu.dot_dimension_numbers<[1], [0], [0], [1], [0, 0, 1, 1], [], []>} : vector<32x32xbf16>, vector<32x32xbf16>, vector<32x32xf32> -> vector<32x32xf32>
    %c0_37 = arith.constant 0 : index
    %c0_38 = arith.constant 0 : index
    %c0_39 = arith.constant 0 : index
    %75 = vector.load %arg9[%c0_37, %c0_38, %c0_39] : memref<2x1x32xf32, #tpu.memory_space<vmem>>, vector<1x1x32xf32>
    %76 = vector.shape_cast %75 : vector<1x1x32xf32> to vector<1x32xf32>
    %77 = vector.broadcast %76 : vector<1x32xf32> to vector<32x32xf32>
    %78 = arith.addf %74, %77 : vector<32x32xf32>
    %79 = arith.addf %5, %78 : vector<32x32xf32>
    %c0_40 = arith.constant 0 : index
    %c0_41 = arith.constant 0 : index
    %c0_42 = arith.constant 0 : index
    %80 = vector.load %arg12[%c0_40, %c0_41, %c0_42] : memref<2x1x32xf32, #tpu.memory_space<vmem>>, vector<1x1x32xf32>
    %81 = vector.shape_cast %80 : vector<1x1x32xf32> to vector<1x32xf32>
    %c0_43 = arith.constant 0 : index
    %c0_44 = arith.constant 0 : index
    %c0_45 = arith.constant 0 : index
    %82 = vector.load %arg13[%c0_43, %c0_44, %c0_45] : memref<2x1x32xf32, #tpu.memory_space<vmem>>, vector<1x1x32xf32>
    %83 = vector.shape_cast %82 : vector<1x1x32xf32> to vector<1x32xf32>
    %cst_46 = arith.constant dense<0.000000e+00> : vector<32xf32>
    %84 = vector.multi_reduction <add>, %79, %cst_46 [1] : vector<32x32xf32> to vector<32xf32>
    %85 = vector.shape_cast %84 : vector<32xf32> to vector<32x1xf32>
    %cst_47 = arith.constant 3.200000e+01 : f32
    %86 = vector.broadcast %cst_47 : f32 to vector<32x1xf32>
    %87 = arith.divf %85, %86 : vector<32x1xf32>
    %88 = vector.broadcast %87 : vector<32x1xf32> to vector<32x32xf32>
    %89 = arith.subf %79, %88 : vector<32x32xf32>
    %90 = arith.mulf %89, %89 : vector<32x32xf32>
    %cst_48 = arith.constant dense<0.000000e+00> : vector<32xf32>
    %91 = vector.multi_reduction <add>, %90, %cst_48 [1] : vector<32x32xf32> to vector<32xf32>
    %92 = vector.shape_cast %91 : vector<32xf32> to vector<32x1xf32>
    %cst_49 = arith.constant 3.200000e+01 : f32
    %93 = vector.broadcast %cst_49 : f32 to vector<32x1xf32>
    %94 = arith.divf %92, %93 : vector<32x1xf32>
    %95 = vector.broadcast %87 : vector<32x1xf32> to vector<32x32xf32>
    %96 = arith.subf %79, %95 : vector<32x32xf32>
    %cst_50 = arith.constant 9.99999974E-6 : f32
    %97 = vector.broadcast %cst_50 : f32 to vector<32x1xf32>
    %98 = arith.addf %94, %97 : vector<32x1xf32>
    %99 = math.rsqrt %98 : vector<32x1xf32>
    %100 = vector.broadcast %99 : vector<32x1xf32> to vector<32x32xf32>
    %101 = arith.mulf %96, %100 : vector<32x32xf32>
    %102 = vector.broadcast %81 : vector<1x32xf32> to vector<32x32xf32>
    %103 = arith.mulf %101, %102 : vector<32x32xf32>
    %104 = vector.broadcast %83 : vector<1x32xf32> to vector<32x32xf32>
    %105 = arith.addf %103, %104 : vector<32x32xf32>
    %106 = arith.truncf %105 : vector<32x32xf32> to vector<32x32xbf16>
    %c0_51 = arith.constant 0 : index
    %c0_52 = arith.constant 0 : index
    %c0_53 = arith.constant 0 : index
    %107 = vector.load %arg14[%c0_51, %c0_52, %c0_53] : memref<2x32x2048xbf16, #tpu.memory_space<vmem>>, vector<1x32x2048xbf16>
    %108 = vector.shape_cast %107 : vector<1x32x2048xbf16> to vector<32x2048xbf16>
    %cst_54 = arith.constant dense<0.000000e+00> : vector<32x2048xf32>
    %109 = tpu.matmul %106, %108, %cst_54 {dimension_numbers = #tpu.dot_dimension_numbers<[1], [0], [0], [1], [0, 0, 1, 1], [], []>} : vector<32x32xbf16>, vector<32x2048xbf16>, vector<32x2048xf32> -> vector<32x2048xf32>
    %c0_55 = arith.constant 0 : index
    %c0_56 = arith.constant 0 : index
    %c0_57 = arith.constant 0 : index
    %110 = vector.load %arg15[%c0_55, %c0_56, %c0_57] : memref<2x1x2048xf32, #tpu.memory_space<vmem>>, vector<1x1x2048xf32>
    %111 = vector.shape_cast %110 : vector<1x1x2048xf32> to vector<1x2048xf32>
    %112 = vector.broadcast %111 : vector<1x2048xf32> to vector<32x2048xf32>
    %113 = arith.addf %109, %112 : vector<32x2048xf32>
    %cst_58 = arith.constant 0.000000e+00 : f32
    %114 = vector.broadcast %cst_58 : f32 to vector<32x2048xf32>
    %115 = arith.maximumf %113, %114 : vector<32x2048xf32>
    %116 = arith.truncf %115 : vector<32x2048xf32> to vector<32x2048xbf16>
    %c0_59 = arith.constant 0 : index
    %c0_60 = arith.constant 0 : index
    %c0_61 = arith.constant 0 : index
    %117 = vector.load %arg16[%c0_59, %c0_60, %c0_61] : memref<2x2048x32xbf16, #tpu.memory_space<vmem>>, vector<1x2048x32xbf16>
    %118 = vector.shape_cast %117 : vector<1x2048x32xbf16> to vector<2048x32xbf16>
    %cst_62 = arith.constant dense<0.000000e+00> : vector<32x32xf32>
    %119 = tpu.matmul %116, %118, %cst_62 {dimension_numbers = #tpu.dot_dimension_numbers<[1], [0], [0], [1], [0, 0, 1, 1], [], []>} : vector<32x2048xbf16>, vector<2048x32xbf16>, vector<32x32xf32> -> vector<32x32xf32>
    %c0_63 = arith.constant 0 : index
    %c0_64 = arith.constant 0 : index
    %c0_65 = arith.constant 0 : index
    %120 = vector.load %arg17[%c0_63, %c0_64, %c0_65] : memref<2x1x32xf32, #tpu.memory_space<vmem>>, vector<1x1x32xf32>
    %121 = vector.shape_cast %120 : vector<1x1x32xf32> to vector<1x32xf32>
    %122 = vector.broadcast %121 : vector<1x32xf32> to vector<32x32xf32>
    %123 = arith.addf %119, %122 : vector<32x32xf32>
    %124 = arith.addf %79, %123 : vector<32x32xf32>
    %c1 = arith.constant 1 : index
    %c0_66 = arith.constant 0 : index
    %c0_67 = arith.constant 0 : index
    %125 = vector.load %arg10[%c1, %c0_66, %c0_67] : memref<2x1x32xf32, #tpu.memory_space<vmem>>, vector<1x1x32xf32>
    %126 = vector.shape_cast %125 : vector<1x1x32xf32> to vector<1x32xf32>
    %c1_68 = arith.constant 1 : index
    %c0_69 = arith.constant 0 : index
    %c0_70 = arith.constant 0 : index
    %127 = vector.load %arg11[%c1_68, %c0_69, %c0_70] : memref<2x1x32xf32, #tpu.memory_space<vmem>>, vector<1x1x32xf32>
    %128 = vector.shape_cast %127 : vector<1x1x32xf32> to vector<1x32xf32>
    %cst_71 = arith.constant dense<0.000000e+00> : vector<32xf32>
    %129 = vector.multi_reduction <add>, %124, %cst_71 [1] : vector<32x32xf32> to vector<32xf32>
    %130 = vector.shape_cast %129 : vector<32xf32> to vector<32x1xf32>
    %cst_72 = arith.constant 3.200000e+01 : f32
    %131 = vector.broadcast %cst_72 : f32 to vector<32x1xf32>
    %132 = arith.divf %130, %131 : vector<32x1xf32>
    %133 = vector.broadcast %132 : vector<32x1xf32> to vector<32x32xf32>
    %134 = arith.subf %124, %133 : vector<32x32xf32>
    %135 = arith.mulf %134, %134 : vector<32x32xf32>
    %cst_73 = arith.constant dense<0.000000e+00> : vector<32xf32>
    %136 = vector.multi_reduction <add>, %135, %cst_73 [1] : vector<32x32xf32> to vector<32xf32>
    %137 = vector.shape_cast %136 : vector<32xf32> to vector<32x1xf32>
    %cst_74 = arith.constant 3.200000e+01 : f32
    %138 = vector.broadcast %cst_74 : f32 to vector<32x1xf32>
    %139 = arith.divf %137, %138 : vector<32x1xf32>
    %140 = vector.broadcast %132 : vector<32x1xf32> to vector<32x32xf32>
    %141 = arith.subf %124, %140 : vector<32x32xf32>
    %cst_75 = arith.constant 9.99999974E-6 : f32
    %142 = vector.broadcast %cst_75 : f32 to vector<32x1xf32>
    %143 = arith.addf %139, %142 : vector<32x1xf32>
    %144 = math.rsqrt %143 : vector<32x1xf32>
    %145 = vector.broadcast %144 : vector<32x1xf32> to vector<32x32xf32>
    %146 = arith.mulf %141, %145 : vector<32x32xf32>
    %147 = vector.broadcast %126 : vector<1x32xf32> to vector<32x32xf32>
    %148 = arith.mulf %146, %147 : vector<32x32xf32>
    %149 = vector.broadcast %128 : vector<1x32xf32> to vector<32x32xf32>
    %150 = arith.addf %148, %149 : vector<32x32xf32>
    %151 = arith.truncf %150 : vector<32x32xf32> to vector<32x32xbf16>
    %c1_76 = arith.constant 1 : index
    %c0_77 = arith.constant 0 : index
    %c0_78 = arith.constant 0 : index
    %152 = vector.load %arg6[%c1_76, %c0_77, %c0_78] : memref<2x32x96xbf16, #tpu.memory_space<vmem>>, vector<1x32x96xbf16>
    %153 = vector.shape_cast %152 : vector<1x32x96xbf16> to vector<32x96xbf16>
    %cst_79 = arith.constant dense<0.000000e+00> : vector<32x96xf32>
    %154 = tpu.matmul %151, %153, %cst_79 {dimension_numbers = #tpu.dot_dimension_numbers<[1], [0], [0], [1], [0, 0, 1, 1], [], []>} : vector<32x32xbf16>, vector<32x96xbf16>, vector<32x96xf32> -> vector<32x96xf32>
    %c1_80 = arith.constant 1 : index
    %c0_81 = arith.constant 0 : index
    %c0_82 = arith.constant 0 : index
    %155 = vector.load %arg7[%c1_80, %c0_81, %c0_82] : memref<2x1x96xf32, #tpu.memory_space<vmem>>, vector<1x1x96xf32>
    %156 = vector.shape_cast %155 : vector<1x1x96xf32> to vector<1x96xf32>
    %157 = vector.broadcast %156 : vector<1x96xf32> to vector<32x96xf32>
    %158 = arith.addf %154, %157 : vector<32x96xf32>
    %159 = vector.extract_strided_slice %158 {offsets = [0, 0], sizes = [32, 32], strides = [1, 1]} : vector<32x96xf32> to vector<32x32xf32>
    %160 = vector.extract_strided_slice %158 {offsets = [0, 32], sizes = [32, 32], strides = [1, 1]} : vector<32x96xf32> to vector<32x32xf32>
    %161 = vector.extract_strided_slice %158 {offsets = [0, 64], sizes = [32, 32], strides = [1, 1]} : vector<32x96xf32> to vector<32x32xf32>
    %162 = tpu.concatenate %159, %159, %159, %159 in 0 : vector<32x32xf32>, vector<32x32xf32>, vector<32x32xf32>, vector<32x32xf32> -> vector<128x32xf32>
    %163 = arith.mulf %162, %6 : vector<128x32xf32>
    %cst_83 = arith.constant dense<0.000000e+00> : vector<128x32xf32>
    %164 = tpu.matmul %163, %160, %cst_83 {dimension_numbers = #tpu.dot_dimension_numbers<[1], [1], [0], [0], [0, 0, 1, 0], [], []>} : vector<128x32xf32>, vector<32x32xf32>, vector<128x32xf32> -> vector<128x32xf32>
    %cst_84 = arith.constant 0.353553385 : f32
    %165 = vector.broadcast %cst_84 : f32 to vector<128x32xf32>
    %166 = arith.mulf %164, %165 : vector<128x32xf32>
    %167 = vector.broadcast %7 : vector<1x32xf32> to vector<128x32xf32>
    %168 = arith.addf %166, %167 : vector<128x32xf32>
    %cst_85 = arith.constant dense<0xFF800000> : vector<128xf32>
    %169 = vector.multi_reduction <maximumf>, %168, %cst_85 [1] : vector<128x32xf32> to vector<128xf32>
    %170 = vector.shape_cast %169 : vector<128xf32> to vector<128x1xf32>
    %171 = vector.broadcast %170 : vector<128x1xf32> to vector<128x32xf32>
    %172 = arith.subf %168, %171 : vector<128x32xf32>
    %173 = math.exp %172 : vector<128x32xf32>
    %cst_86 = arith.constant dense<0.000000e+00> : vector<128xf32>
    %174 = vector.multi_reduction <add>, %173, %cst_86 [1] : vector<128x32xf32> to vector<128xf32>
    %175 = vector.shape_cast %174 : vector<128xf32> to vector<128x1xf32>
    %176 = tpu.reciprocal %175 {approx = true} : vector<128x1xf32> -> vector<128x1xf32>
    %177 = vector.broadcast %176 : vector<128x1xf32> to vector<128x32xf32>
    %178 = arith.mulf %173, %177 : vector<128x32xf32>
    %cst_87 = arith.constant dense<0.000000e+00> : vector<128x32xf32>
    %179 = tpu.matmul %178, %161, %cst_87 {dimension_numbers = #tpu.dot_dimension_numbers<[1], [0], [0], [1], [0, 0, 1, 1], [], []>} : vector<128x32xf32>, vector<32x32xf32>, vector<128x32xf32> -> vector<128x32xf32>
    %180 = arith.mulf %179, %6 : vector<128x32xf32>
    %181 = vector.extract_strided_slice %180 {offsets = [0, 0], sizes = [32, 32], strides = [1, 1]} : vector<128x32xf32> to vector<32x32xf32>
    %182 = vector.extract_strided_slice %180 {offsets = [32, 0], sizes = [32, 32], strides = [1, 1]} : vector<128x32xf32> to vector<32x32xf32>
    %183 = arith.addf %181, %182 : vector<32x32xf32>
    %184 = vector.extract_strided_slice %180 {offsets = [64, 0], sizes = [32, 32], strides = [1, 1]} : vector<128x32xf32> to vector<32x32xf32>
    %185 = arith.addf %183, %184 : vector<32x32xf32>
    %186 = vector.extract_strided_slice %180 {offsets = [96, 0], sizes = [32, 32], strides = [1, 1]} : vector<128x32xf32> to vector<32x32xf32>
    %187 = arith.addf %185, %186 : vector<32x32xf32>
    %188 = arith.truncf %187 : vector<32x32xf32> to vector<32x32xbf16>
    %c1_88 = arith.constant 1 : index
    %c0_89 = arith.constant 0 : index
    %c0_90 = arith.constant 0 : index
    %189 = vector.load %arg8[%c1_88, %c0_89, %c0_90] : memref<2x32x32xbf16, #tpu.memory_space<vmem>>, vector<1x32x32xbf16>
    %190 = vector.shape_cast %189 : vector<1x32x32xbf16> to vector<32x32xbf16>
    %cst_91 = arith.constant dense<0.000000e+00> : vector<32x32xf32>
    %191 = tpu.matmul %188, %190, %cst_91 {dimension_numbers = #tpu.dot_dimension_numbers<[1], [0], [0], [1], [0, 0, 1, 1], [], []>} : vector<32x32xbf16>, vector<32x32xbf16>, vector<32x32xf32> -> vector<32x32xf32>
    %c1_92 = arith.constant 1 : index
    %c0_93 = arith.constant 0 : index
    %c0_94 = arith.constant 0 : index
    %192 = vector.load %arg9[%c1_92, %c0_93, %c0_94] : memref<2x1x32xf32, #tpu.memory_space<vmem>>, vector<1x1x32xf32>
    %193 = vector.shape_cast %192 : vector<1x1x32xf32> to vector<1x32xf32>
    %194 = vector.broadcast %193 : vector<1x32xf32> to vector<32x32xf32>
    %195 = arith.addf %191, %194 : vector<32x32xf32>
    %196 = arith.addf %124, %195 : vector<32x32xf32>
    %c1_95 = arith.constant 1 : index
    %c0_96 = arith.constant 0 : index
    %c0_97 = arith.constant 0 : index
    %197 = vector.load %arg12[%c1_95, %c0_96, %c0_97] : memref<2x1x32xf32, #tpu.memory_space<vmem>>, vector<1x1x32xf32>
    %198 = vector.shape_cast %197 : vector<1x1x32xf32> to vector<1x32xf32>
    %c1_98 = arith.constant 1 : index
    %c0_99 = arith.constant 0 : index
    %c0_100 = arith.constant 0 : index
    %199 = vector.load %arg13[%c1_98, %c0_99, %c0_100] : memref<2x1x32xf32, #tpu.memory_space<vmem>>, vector<1x1x32xf32>
    %200 = vector.shape_cast %199 : vector<1x1x32xf32> to vector<1x32xf32>
    %cst_101 = arith.constant dense<0.000000e+00> : vector<32xf32>
    %201 = vector.multi_reduction <add>, %196, %cst_101 [1] : vector<32x32xf32> to vector<32xf32>
    %202 = vector.shape_cast %201 : vector<32xf32> to vector<32x1xf32>
    %cst_102 = arith.constant 3.200000e+01 : f32
    %203 = vector.broadcast %cst_102 : f32 to vector<32x1xf32>
    %204 = arith.divf %202, %203 : vector<32x1xf32>
    %205 = vector.broadcast %204 : vector<32x1xf32> to vector<32x32xf32>
    %206 = arith.subf %196, %205 : vector<32x32xf32>
    %207 = arith.mulf %206, %206 : vector<32x32xf32>
    %cst_103 = arith.constant dense<0.000000e+00> : vector<32xf32>
    %208 = vector.multi_reduction <add>, %207, %cst_103 [1] : vector<32x32xf32> to vector<32xf32>
    %209 = vector.shape_cast %208 : vector<32xf32> to vector<32x1xf32>
    %cst_104 = arith.constant 3.200000e+01 : f32
    %210 = vector.broadcast %cst_104 : f32 to vector<32x1xf32>
    %211 = arith.divf %209, %210 : vector<32x1xf32>
    %212 = vector.broadcast %204 : vector<32x1xf32> to vector<32x32xf32>
    %213 = arith.subf %196, %212 : vector<32x32xf32>
    %cst_105 = arith.constant 9.99999974E-6 : f32
    %214 = vector.broadcast %cst_105 : f32 to vector<32x1xf32>
    %215 = arith.addf %211, %214 : vector<32x1xf32>
    %216 = math.rsqrt %215 : vector<32x1xf32>
    %217 = vector.broadcast %216 : vector<32x1xf32> to vector<32x32xf32>
    %218 = arith.mulf %213, %217 : vector<32x32xf32>
    %219 = vector.broadcast %198 : vector<1x32xf32> to vector<32x32xf32>
    %220 = arith.mulf %218, %219 : vector<32x32xf32>
    %221 = vector.broadcast %200 : vector<1x32xf32> to vector<32x32xf32>
    %222 = arith.addf %220, %221 : vector<32x32xf32>
    %223 = arith.truncf %222 : vector<32x32xf32> to vector<32x32xbf16>
    %c1_106 = arith.constant 1 : index
    %c0_107 = arith.constant 0 : index
    %c0_108 = arith.constant 0 : index
    %224 = vector.load %arg14[%c1_106, %c0_107, %c0_108] : memref<2x32x2048xbf16, #tpu.memory_space<vmem>>, vector<1x32x2048xbf16>
    %225 = vector.shape_cast %224 : vector<1x32x2048xbf16> to vector<32x2048xbf16>
    %cst_109 = arith.constant dense<0.000000e+00> : vector<32x2048xf32>
    %226 = tpu.matmul %223, %225, %cst_109 {dimension_numbers = #tpu.dot_dimension_numbers<[1], [0], [0], [1], [0, 0, 1, 1], [], []>} : vector<32x32xbf16>, vector<32x2048xbf16>, vector<32x2048xf32> -> vector<32x2048xf32>
    %c1_110 = arith.constant 1 : index
    %c0_111 = arith.constant 0 : index
    %c0_112 = arith.constant 0 : index
    %227 = vector.load %arg15[%c1_110, %c0_111, %c0_112] : memref<2x1x2048xf32, #tpu.memory_space<vmem>>, vector<1x1x2048xf32>
    %228 = vector.shape_cast %227 : vector<1x1x2048xf32> to vector<1x2048xf32>
    %229 = vector.broadcast %228 : vector<1x2048xf32> to vector<32x2048xf32>
    %230 = arith.addf %226, %229 : vector<32x2048xf32>
    %cst_113 = arith.constant 0.000000e+00 : f32
    %231 = vector.broadcast %cst_113 : f32 to vector<32x2048xf32>
    %232 = arith.maximumf %230, %231 : vector<32x2048xf32>
    %233 = arith.truncf %232 : vector<32x2048xf32> to vector<32x2048xbf16>
    %c1_114 = arith.constant 1 : index
    %c0_115 = arith.constant 0 : index
    %c0_116 = arith.constant 0 : index
    %234 = vector.load %arg16[%c1_114, %c0_115, %c0_116] : memref<2x2048x32xbf16, #tpu.memory_space<vmem>>, vector<1x2048x32xbf16>
    %235 = vector.shape_cast %234 : vector<1x2048x32xbf16> to vector<2048x32xbf16>
    %cst_117 = arith.constant dense<0.000000e+00> : vector<32x32xf32>
    %236 = tpu.matmul %233, %235, %cst_117 {dimension_numbers = #tpu.dot_dimension_numbers<[1], [0], [0], [1], [0, 0, 1, 1], [], []>} : vector<32x2048xbf16>, vector<2048x32xbf16>, vector<32x32xf32> -> vector<32x32xf32>
    %c1_118 = arith.constant 1 : index
    %c0_119 = arith.constant 0 : index
    %c0_120 = arith.constant 0 : index
    %237 = vector.load %arg17[%c1_118, %c0_119, %c0_120] : memref<2x1x32xf32, #tpu.memory_space<vmem>>, vector<1x1x32xf32>
    %238 = vector.shape_cast %237 : vector<1x1x32xf32> to vector<1x32xf32>
    %239 = vector.broadcast %238 : vector<1x32xf32> to vector<32x32xf32>
    %240 = arith.addf %236, %239 : vector<32x32xf32>
    %241 = arith.addf %196, %240 : vector<32x32xf32>
    %242 = vector.extract_strided_slice %241 {offsets = [0, 0], sizes = [1, 32], strides = [1, 1]} : vector<32x32xf32> to vector<1x32xf32>
    %c0_121 = arith.constant 0 : index
    %c0_122 = arith.constant 0 : index
    %243 = vector.load %arg18[%c0_121, %c0_122] : memref<1x32xf32, #tpu.memory_space<vmem>>, vector<1x32xf32>
    %c0_123 = arith.constant 0 : index
    %c0_124 = arith.constant 0 : index
    %244 = vector.load %arg19[%c0_123, %c0_124] : memref<1x32xf32, #tpu.memory_space<vmem>>, vector<1x32xf32>
    %cst_125 = arith.constant dense<0.000000e+00> : vector<1xf32>
    %245 = vector.multi_reduction <add>, %242, %cst_125 [1] : vector<1x32xf32> to vector<1xf32>
    %246 = vector.shape_cast %245 : vector<1xf32> to vector<1x1xf32>
    %cst_126 = arith.constant 3.200000e+01 : f32
    %247 = vector.broadcast %cst_126 : f32 to vector<1x1xf32>
    %248 = arith.divf %246, %247 : vector<1x1xf32>
    %249 = vector.broadcast %248 : vector<1x1xf32> to vector<1x32xf32>
    %250 = arith.subf %242, %249 : vector<1x32xf32>
    %251 = arith.mulf %250, %250 : vector<1x32xf32>
    %cst_127 = arith.constant dense<0.000000e+00> : vector<1xf32>
    %252 = vector.multi_reduction <add>, %251, %cst_127 [1] : vector<1x32xf32> to vector<1xf32>
    %253 = vector.shape_cast %252 : vector<1xf32> to vector<1x1xf32>
    %cst_128 = arith.constant 3.200000e+01 : f32
    %254 = vector.broadcast %cst_128 : f32 to vector<1x1xf32>
    %255 = arith.divf %253, %254 : vector<1x1xf32>
    %256 = vector.broadcast %248 : vector<1x1xf32> to vector<1x32xf32>
    %257 = arith.subf %242, %256 : vector<1x32xf32>
    %cst_129 = arith.constant 9.99999974E-6 : f32
    %258 = vector.broadcast %cst_129 : f32 to vector<1x1xf32>
    %259 = arith.addf %255, %258 : vector<1x1xf32>
    %260 = math.rsqrt %259 : vector<1x1xf32>
    %261 = vector.broadcast %260 : vector<1x1xf32> to vector<1x32xf32>
    %262 = arith.mulf %257, %261 : vector<1x32xf32>
    %263 = arith.mulf %262, %243 : vector<1x32xf32>
    %264 = arith.addf %263, %244 : vector<1x32xf32>
    %265 = arith.truncf %264 : vector<1x32xf32> to vector<1x32xbf16>
    %c0_130 = arith.constant 0 : index
    %c0_131 = arith.constant 0 : index
    %266 = vector.load %arg20[%c0_130, %c0_131] : memref<32x128xbf16, #tpu.memory_space<vmem>>, vector<32x128xbf16>
    %cst_132 = arith.constant dense<0.000000e+00> : vector<1x128xf32>
    %267 = tpu.matmul %265, %266, %cst_132 {dimension_numbers = #tpu.dot_dimension_numbers<[1], [0], [0], [1], [0, 0, 1, 1], [], []>} : vector<1x32xbf16>, vector<32x128xbf16>, vector<1x128xf32> -> vector<1x128xf32>
    %c0_133 = arith.constant 0 : index
    %c0_134 = arith.constant 0 : index
    %268 = vector.load %arg21[%c0_133, %c0_134] : memref<1x128xf32, #tpu.memory_space<vmem>>, vector<1x128xf32>
    %269 = arith.addf %267, %268 : vector<1x128xf32>
    %c0_135 = arith.constant 0 : index
    %c0_136 = arith.constant 0 : index
    %c0_137 = arith.constant 0 : index
    %270 = vector.load %arg22[%c0_135, %c0_136, %c0_137] : memref<1x1x128xf32, #tpu.memory_space<vmem>>, vector<1x1x128xf32>
    %271 = vector.shape_cast %270 : vector<1x1x128xf32> to vector<1x128xf32>
    %272 = vector.shape_cast %269 : vector<1x128xf32> to vector<1x1x128xf32>
    tpu.vector_store %arg22[%c0_135, %c0_136, %c0_137], %272 {strides = array<i32>} : memref<1x1x128xf32, #tpu.memory_space<vmem>>, vector<1x1x128xf32>,
    return
  }
  func.func @transform_0(%arg0: i32) -> (i32, i32, i32) {
    %c0_i32 = arith.constant 0 : i32
    %c0_i32_0 = arith.constant 0 : i32
    %c0_i32_1 = arith.constant 0 : i32
    return %arg0, %c0_i32, %c0_i32_0 : i32, i32, i32
  }
  func.func @transform_1(%arg0: i32) -> (i32, i32) {
    %c0_i32 = arith.constant 0 : i32
    %c0_i32_0 = arith.constant 0 : i32
    %c0_i32_1 = arith.constant 0 : i32
    return %c0_i32, %c0_i32_0 : i32, i32
  }
  func.func @transform_2(%arg0: i32) -> (i32, i32) {
    %c0_i32 = arith.constant 0 : i32
    %c0_i32_0 = arith.constant 0 : i32
    %c0_i32_1 = arith.constant 0 : i32
    return %c0_i32, %c0_i32_0 : i32, i32
  }
  func.func @transform_3(%arg0: i32) -> (i32, i32) {
    %c0_i32 = arith.constant 0 : i32
    %c0_i32_0 = arith.constant 0 : i32
    %c0_i32_1 = arith.constant 0 : i32
    return %c0_i32, %c0_i32_0 : i32, i32
  }
  func.func @transform_4(%arg0: i32) -> (i32, i32) {
    %c0_i32 = arith.constant 0 : i32
    %c0_i32_0 = arith.constant 0 : i32
    %c0_i32_1 = arith.constant 0 : i32
    return %c0_i32, %c0_i32_0 : i32, i32
  }
  func.func @transform_5(%arg0: i32) -> (i32, i32, i32) {
    %c0_i32 = arith.constant 0 : i32
    %c0_i32_0 = arith.constant 0 : i32
    %c0_i32_1 = arith.constant 0 : i32
    %c0_i32_2 = arith.constant 0 : i32
    return %c0_i32, %c0_i32_0, %c0_i32_1 : i32, i32, i32
  }
  func.func @transform_6(%arg0: i32) -> (i32, i32, i32) {
    %c0_i32 = arith.constant 0 : i32
    %c0_i32_0 = arith.constant 0 : i32
    %c0_i32_1 = arith.constant 0 : i32
    %c0_i32_2 = arith.constant 0 : i32
    return %c0_i32, %c0_i32_0, %c0_i32_1 : i32, i32, i32
  }
  func.func @transform_7(%arg0: i32) -> (i32, i32, i32) {
    %c0_i32 = arith.constant 0 : i32
    %c0_i32_0 = arith.constant 0 : i32
    %c0_i32_1 = arith.constant 0 : i32
    %c0_i32_2 = arith.constant 0 : i32
    return %c0_i32, %c0_i32_0, %c0_i32_1 : i32, i32, i32
  }
  func.func @transform_8(%arg0: i32) -> (i32, i32, i32) {
    %c0_i32 = arith.constant 0 : i32
    %c0_i32_0 = arith.constant 0 : i32
    %c0_i32_1 = arith.constant 0 : i32
    %c0_i32_2 = arith.constant 0 : i32
    return %c0_i32, %c0_i32_0, %c0_i32_1 : i32, i32, i32
  }
  func.func @transform_9(%arg0: i32) -> (i32, i32, i32) {
    %c0_i32 = arith.constant 0 : i32
    %c0_i32_0 = arith.constant 0 : i32
    %c0_i32_1 = arith.constant 0 : i32
    %c0_i32_2 = arith.constant 0 : i32
    return %c0_i32, %c0_i32_0, %c0_i32_1 : i32, i32, i32
  }
  func.func @transform_10(%arg0: i32) -> (i32, i32, i32) {
    %c0_i32 = arith.constant 0 : i32
    %c0_i32_0 = arith.constant 0 : i32
    %c0_i32_1 = arith.constant 0 : i32
    %c0_i32_2 = arith.constant 0 : i32
    return %c0_i32, %c0_i32_0, %c0_i32_1 : i32, i32, i32
  }
  func.func @transform_11(%arg0: i32) -> (i32, i32, i32) {
    %c0_i32 = arith.constant 0 : i32
    %c0_i32_0 = arith.constant 0 : i32
    %c0_i32_1 = arith.constant 0 : i32
    %c0_i32_2 = arith.constant 0 : i32
    return %c0_i32, %c0_i32_0, %c0_i32_1 : i32, i32, i32
  }
  func.func @transform_12(%arg0: i32) -> (i32, i32, i32) {
    %c0_i32 = arith.constant 0 : i32
    %c0_i32_0 = arith.constant 0 : i32
    %c0_i32_1 = arith.constant 0 : i32
    %c0_i32_2 = arith.constant 0 : i32
    return %c0_i32, %c0_i32_0, %c0_i32_1 : i32, i32, i32
  }
  func.func @transform_13(%arg0: i32) -> (i32, i32, i32) {
    %c0_i32 = arith.constant 0 : i32
    %c0_i32_0 = arith.constant 0 : i32
    %c0_i32_1 = arith.constant 0 : i32
    %c0_i32_2 = arith.constant 0 : i32
    return %c0_i32, %c0_i32_0, %c0_i32_1 : i32, i32, i32
  }
  func.func @transform_14(%arg0: i32) -> (i32, i32, i32) {
    %c0_i32 = arith.constant 0 : i32
    %c0_i32_0 = arith.constant 0 : i32
    %c0_i32_1 = arith.constant 0 : i32
    %c0_i32_2 = arith.constant 0 : i32
    return %c0_i32, %c0_i32_0, %c0_i32_1 : i32, i32, i32
  }
  func.func @transform_15(%arg0: i32) -> (i32, i32, i32) {
    %c0_i32 = arith.constant 0 : i32
    %c0_i32_0 = arith.constant 0 : i32
    %c0_i32_1 = arith.constant 0 : i32
    %c0_i32_2 = arith.constant 0 : i32
    return %c0_i32, %c0_i32_0, %c0_i32_1 : i32, i32, i32
  }
  func.func @transform_16(%arg0: i32) -> (i32, i32, i32) {
    %c0_i32 = arith.constant 0 : i32
    %c0_i32_0 = arith.constant 0 : i32
    %c0_i32_1 = arith.constant 0 : i32
    %c0_i32_2 = arith.constant 0 : i32
    return %c0_i32, %c0_i32_0, %c0_i32_1 : i32, i32, i32
  }
  func.func @transform_17(%arg0: i32) -> (i32, i32) {
    %c0_i32 = arith.constant 0 : i32
    %c0_i32_0 = arith.constant 0 : i32
    %c0_i32_1 = arith.constant 0 : i32
    return %c0_i32, %c0_i32_0 : i32, i32
  }
  func.func @transform_18(%arg0: i32) -> (i32, i32) {
    %c0_i32 = arith.constant 0 : i32
    %c0_i32_0 = arith.constant 0 : i32
    %c0_i32_1 = arith.constant 0 : i32
    return %c0_i32, %c0_i32_0 : i32, i32
  }
  func.func @transform_19(%arg0: i32) -> (i32, i32) {
    %c0_i32 = arith.constant 0 : i32
    %c0_i32_0 = arith.constant 0 : i32
    %c0_i32_1 = arith.constant 0 : i32
    return %c0_i32, %c0_i32_0 : i32, i32
  }
  func.func @transform_20(%arg0: i32) -> (i32, i32) {
    %c0_i32 = arith.constant 0 : i32
    %c0_i32_0 = arith.constant 0 : i32
    %c0_i32_1 = arith.constant 0 : i32
    return %c0_i32, %c0_i32_0 : i32, i32
  }
  func.func @transform_21(%arg0: i32) -> (i32, i32, i32) {
    %c0_i32 = arith.constant 0 : i32
    %c0_i32_0 = arith.constant 0 : i32
    %c0_i32_1 = arith.constant 0 : i32
    return %arg0, %c0_i32, %c0_i32_0 : i32, i32, i32
  }
}

</mosaic_0001>

<bundles_post_ra>
// kernel: tpu_custom_call.1
= control target key start
LH: loop header
LB: loop body
LE: loop exit
PB: predicated region body
PF: predicated region fallthrough
CT: control target
= control target key end

     0   :  { %s12124_s0 = inlined_call_operand.vmem [shape: bf16[2,32,64], index: 0, kind: input, shape index: {}]   ;;  %s12125_s1 = inlined_call_operand.vmem [shape: bf16[64,32], index: 1, kind: input, shape index: {}]   ;;  %s12126_s2 = inlined_call_operand.vmem [shape: f32[32,32], index: 2, kind: input, shape index: {}]   ;;  %s12127_s3 = inlined_call_operand.vmem [shape: f32[128,32], index: 3, kind: input, shape index: {}]   ;;  %s12128_s4 = inlined_call_operand.vmem [shape: f32[1,32], index: 4, kind: input, shape index: {}]   ;;  %s12129_s5 = inlined_call_operand.vmem [shape: bf16[2,32,96], index: 5, kind: input, shape index: {}]   ;;  %s12130_s6 = inlined_call_operand.vmem [shape: f32[2,1,96], index: 6, kind: input, shape index: {}]   ;;  %s12131_s7 = inlined_call_operand.vmem [shape: bf16[2,32,32], index: 7, kind: input, shape index: {}]   ;;  %s12132_s8 = inlined_call_operand.vmem [shape: f32[2,1,32], index: 8, kind: input, shape index: {}]   ;;  %s12133_s9 = inlined_call_operand.vmem [shape: f32[2,1,32], index: 9, kind: input, shape index: {}]   ;;  %s12134_s10 = inlined_call_operand.vmem [shape: f32[2,1,32], index: 10, kind: input, shape index: {}]   ;;  %s12135_s11 = inlined_call_operand.vmem [shape: f32[2,1,32], index: 11, kind: input, shape index: {}]   ;;  %s12136_s12 = inlined_call_operand.vmem [shape: f32[2,1,32], index: 12, kind: input, shape index: {}]   ;;  %s12137_s13 = inlined_call_operand.vmem [shape: bf16[2,32,2048], index: 13, kind: input, shape index: {}]   ;;  %s12138_s14 = inlined_call_operand.vmem [shape: f32[2,1,2048], index: 14, kind: input, shape index: {}]   ;;  %s12139_s15 = inlined_call_operand.vmem [shape: bf16[2,2048,32], index: 15, kind: input, shape index: {}]   ;;  %s12140_s16 = inlined_call_operand.vmem [shape: f32[2,1,32], index: 16, kind: input, shape index: {}]   ;;  %s12141_s17 = inlined_call_operand.vmem [shape: f32[1,32], index: 17, kind: input, shape index: {}]   ;;  %s12142_s18 = inlined_call_operand.vmem [shape: f32[1,32], index: 18, kind: input, shape index: {}]   ;;  %s12143_s19 = inlined_call_operand.vmem [shape: bf16[32,128], index: 19, kind: input, shape index: {}]   ;;  %s12144_s20 = inlined_call_operand.vmem [shape: f32[1,128], index: 20, kind: input, shape index: {}]   ;;  %s12145_s21 = inlined_call_operand.hbm [shape: f32[2,1,128], index: 21, kind: output, shape index: {}]  }
   0x1   :  { %12167 = sst [smem:[#allocation11_spill]] %s12124_s0 }
   0x2   :  { %12168 = sst [smem:[#allocation12_spill]] %s12125_s1 }
   0x3   :  { %12169 = sst [smem:[#allocation13_spill]] %s12126_s2 }
   0x4   :  { %12170 = sst [smem:[#allocation14_spill]] %s12127_s3 }
   0x5   :  { %12171 = sst [smem:[#allocation15_spill]] %s12128_s4 }
   0x6   :  { %12172 = sst [smem:[#allocation16_spill]] %s12129_s5 }
   0x7   :  { %12173 = sst [smem:[#allocation17_spill]] %s12145_s21 }
   0x8   :  { %26 = vsyncpa [#allocation3], 0 }
   0x9   :  { %28 = vsyncpa [#allocation3 + $0x1], 0  ;;  %s9614_s2 = smov 0   ;;  %s9616_s25 = smov 0  }
   0xa   :  { %s9618_s26 = smov 0   ;;  %s9620_s27 = smov 0  }
   0xb LB: > { %12174 = sst [smem:[#allocation5_spill]] %s9484_s2  ;;  %s9635_s3 = sadd.s32 4294967295, %s9496_s27   ;;  %s9496_s27 = sphi %s9620_s27, %s12198_s27   ;;  %s9492_s26 = sphi %s9618_s26, %s12200_s26   ;;  %s9488_s25 = sphi %s9616_s25, %s12202_s25   ;;  %s9484_s2 = sphi %s9614_s2, %s12201_s2  }
   0xc   : > { %12175 = sst [smem:[#allocation6_spill]] %s9492_s26  ;;  %s7345_s28 = sadd.s32 4294967294, %s9496_s27  }
   0xd   : > { %12176 = sst [smem:[#allocation7_spill]] %s9496_s27  ;;  %s9639_s29 = sadd.s32 1, %s9496_s27  }
   0xe   : > { %12177 = sst [smem:[#allocation8_spill]] %s9639_s29  ;;  %s487_s0 = sadd.s32 1, %s9492_s26 }
   0xf   : > { %s484_s4 = ssub.s32 %s9496_s27, %s9639_s29  ;;  %p497_p0 = scmp.ne.s32.totalorder %s9492_s26, %s9488_s25 }
  0x10   : > { %p485_p1 = scmp.eq.s32.totalorder %s484_s4, 0  ;;  %p498_p2 = scmp.eq.s32.totalorder %s9635_s3, 1 }
  0x11   : > { %p503_p3 = scmp.ne.s32.totalorder %s9488_s25, %s9484_s2  ;;  %p504_p4 = scmp.eq.s32.totalorder %s7345_s28, 1 }
  0x12   : > { %s9650_s30 = scalar_select %p485_p1, %s9492_s26, %s487_s0  }
  0x13   : > { %p9652_p5 = por %p498_p2, %p497_p0  ;;  %p9656_p6 = por %p504_p4, %p503_p3 }
  0x14   : > { %12178 = sst [smem:[#allocation9_spill]] %s9650_s30  ;;  %p7348_p7 = scmp.ge.s32.totalorder %s9496_s27, 1 }
  0x15   : > { %s12180_s22 = scalar_select %p9656_p6, 1, 0 }
  0x16   : > { %p590_p8 = scmp.lt.s32.totalorder %s9496_s27, 3 }
  0x17   : > { %12181 = sst [smem:[#allocation10_spill]] %s12180_s22 }
  0x18   : > { %p591_p9 = pnand %p7348_p7, %p590_p8 }
  0x19   : > { %s12182_s24 = sld [smem:[#allocation12_spill]] (!%p591_p9)  ;;  %p649_p10 = scmp.lt.s32.totalorder (!%p591_p9), %s9635_s3, 1  ;;  %vm705_vm0 = vcmask (!%p591_p9), 523264   ;;  %vm780_vm1 = vcmask (!%p591_p9), 261120   ;;  %v7359_v58 = vld [vmem:[%s12133_s9] ss:$0 sm:$0xff] (!%p591_p9) }
  0x1a   : > { %594 = sbr.rel (%p591_p9) target bundleno = 5974 (0x1756), region = 104  ;;  %s12183_s1 = sld [smem:[#allocation11_spill]] (!%p591_p9)  ;;  %v7360_v63 = vld [vmem:[%s12134_s10] ss:$0 sm:$0xff] (!%p591_p9)  ;;  %vm9755_vm2 = vmpackc.low (!%p591_p9), %vm780_vm1, %vm780_vm1  ;;  %vm7199_vm3 = vcmask (!%p591_p9), 253952   ;;  %vm9502_vm4 = vmmov (!%p591_p9), 0  }
  0x1b   : > { %s12184_s28 = sld [smem:[#allocation13_spill]] (!%p591_p9)  ;;  %s12186_s26 = sld [smem:[#allocation14_spill]] (!%p591_p9) }
  0x1c   : > { %s12160_s0 = smov (!%p591_p9), 96   ;;  %s12190_s22 = sld [smem:[#allocation15_spill]] (!%p591_p9) }
  0x1d   : > { %s8122_s27 = sshll.u32 (!%p591_p9), %s9635_s3, 4 }
  0x1f   : > { %v8983_v0 = vld [vmem:[%s12182_s24] sm:$0xff] (!%p591_p9)   ;;  %v8984_v1 = vld [vmem:[%s12182_s24 + $0x8] sm:$0xff] (!%p591_p9)   ;;  %v8985_v2 = vld [vmem:[%s12182_s24 + $0x10] sm:$0xff] (!%p591_p9)  }
  0x20   : > { %8679 = vmatprep.subr.bf16.mxu0 (!%p591_p9), %v8983_v0  ;;  %v8986_v4 = vld [vmem:[%s12182_s24 + $0x18] sm:$0xff] (!%p591_p9)  }
  0x21   : > { %s650_s4 = scalar_select %p649_p10, %s9635_s3, 1  ;;  %8680 = vmatpush3.bf16.msra.mxu0 %v8983_v0  ;;  %v669_v6 = vld [vmem:[%s12184_s28 + $0x10] sm:$0xff]  ;;  %v667_v7 = vld [vmem:[%s12184_s28] sm:$0xff]  ;;  %v670_v9 = vld [vmem:[%s12184_s28 + $0x18] sm:$0xff] }
  0x22   : > { %8681 = vmatprep.subr.bf16.mxu0 %v8984_v1  ;;  %v668_v12 = vld [vmem:[%s12184_s28 + $0x8] sm:$0xff]  ;;  %s12187_s30 = smov %s12186_s26  ;;  %s12194_s28 = sld [smem:[#allocation17_spill]] }
  0x23   : > { %s8125_s29 = sshll.u32 %s650_s4, 4  ;;  %s647_s4 = sand.u32 1, %s9488_s25  }
  0x24   : > { %s653_s2 = scalar_lea.vmem %s12183_s1, %s8125_s29  ;;  %s12185_s1 = sld [smem:[#allocation16_spill]] }
  0x25   : > { %v8987_v3 = vld [vmem:[%s653_s2] sm:$0xff]   ;;  %8682 = vmatpush3.bf16.msra.mxu0 %v8984_v1  ;;  %v8988_v5 = vld [vmem:[%s653_s2 + $0x8] sm:$0xff]   ;;  %s12158_s29 = smov 64   ;;  %s12191_s2 = smov 96  }
  0x26   : > { %8683 = vmatprep.subr.bf16.mxu0 %v8985_v2  ;;  %8687 = vmatprep.mubr.msk.bf16.mxu0 %vm705_vm0, %v8987_v3  ;;  %s648_s23 = scalar_lea.vmem [#allocation2], %s647_s4  ;;  %s7278_s21 = scalar_lea.sflag [#allocation3], %s647_s4 }
  0x29   : > { %8684 = vmatpush3.bf16.msra.mxu0 %v8985_v2 }
  0x2a   : > { %8685 = vmatprep.subr.bf16.mxu0 %v8986_v4  ;;  %v8989_v42 = vld [vmem:[%s12185_s1] sm:$0xff]   ;;  %v8990_v43 = vld [vmem:[%s12185_s1 + $0x8] sm:$0xff]  }
  0x2b   : > { %8691 = vmatprep.subr.bf16.mxu1 %v8989_v42 }
  0x2c   : > { %8692 = vmatpush3.bf16.msra.mxu1 %v8989_v42  ;;  %v9783_v42 = vld [vmem:[%s12187_s30 + $0x18] sm:$0xff] }
  0x2d   : > { %8686 = vmatpush3.bf16.msra.mxu0 %v8986_v4  ;;  %8693 = vmatprep.subr.bf16.mxu1 %v8990_v43 }
  0x30   : > { %8688 = vmatmul.mubr.msk.bf16.vlgmr.msra.gmra.mrb[0].mxu0 %vm705_vm0, %v8988_v5  ;;  %8694 = vmatpush3.bf16.msra.mxu1 %v8990_v43  ;;  %v9789_v43 = vld [vmem:[%s12187_s30 + $0x20] sm:$0xff] }
 0x103   : > { %v8689_v8 = vpop.f32.mrb[0].mxu0 }
 0x104   : > { %v9688_v10 = vadd.f32 %v8689_v8, %v669_v6  ;;  %v746_v11 = vpop.f32.mrb[1].mxu0 }
 0x105   : > { %v9693_v13 = vadd.f32 %v746_v11, %v667_v7  ;;  %v8690_v14 = vpop.f32.mrb[2].mxu0 }
 0x106   : > { %v9695_v15 = vadd.f32 %v8690_v14, %v670_v9  ;;  %v749_v16 = vpop.f32.mrb[3].mxu0  ;;  %v787_v17 = vsel %vm780_vm1, %v9688_v10, 0.0  ;;  %v7361_v14 = vld [vmem:[%s12130_s6] ss:$0 sm:$0xff] }
 0x107   : > { %v9699_v18 = vadd.f32 %v749_v16, %v668_v12  ;;  %788 = vadd.xlane.f32.xlu1 %v787_v17  ;;  %v781_v19 = vsel %vm780_vm1, %v9693_v13, 0.0 }
 0x108   : > { %782 = vadd.xlane.f32.xlu0 %v781_v19  ;;  %v790_v20 = vsel %vm780_vm1, %v9695_v15, 0.0  ;;  %v9735_v19 = vld [vmem:[%s12186_s26] sm:$0xff]  ;;  %s12192_s26 = smov 64  }
 0x109   : > { %v784_v21 = vsel %vm780_vm1, %v9699_v18, 0.0 }
 0x10b   : > { %791 = vadd.xlane.f32.xlu1 %v790_v20 }
 0x10c   : > { %785 = vadd.xlane.f32.xlu0 %v784_v21 }
 0x194   : > { %v789_v22 = vpop.xlane.xlu1 %788 }
 0x195   : > { %v796_v23 = vmul.f32 0.03125, %v789_v22  ;;  %v783_v24 = vpop.xlane.xlu0 %782 }
 0x196   : > { %v794_v25 = vmul.f32 0.03125, %v783_v24 }
 0x197   : > { %v800_v26 = vsub.f32 %v9688_v10, %v796_v23 }
 0x198   : > { %v798_v27 = vsub.f32 %v9693_v13, %v794_v25  ;;  %v792_v28 = vpop.xlane.xlu1 %791 }
 0x199   : > { %v797_v29 = vmul.f32 0.03125, %v792_v28  ;;  %v786_v30 = vpop.xlane.xlu0 %785  ;;  %v804_v36 = vmul.f32 %v800_v26, %v800_v26 }
 0x19a   : > { %v795_v31 = vmul.f32 0.03125, %v786_v30  ;;  %v802_v32 = vmul.f32 %v798_v27, %v798_v27 }
 0x19b   : > { %v801_v33 = vsub.f32 %v9695_v15, %v797_v29  ;;  %v812_v38 = vsel %vm780_vm1, %v804_v36, 0.0 }
 0x19c   : > { %v799_v34 = vsub.f32 %v9699_v18, %v795_v31  ;;  %v806_v35 = vsel %vm780_vm1, %v802_v32, 0.0 }
 0x19d   : > { %807 = vadd.xlane.f32.xlu0 %v806_v35  ;;  %v805_v40 = vmul.f32 %v801_v33, %v801_v33  ;;  %v10981_v35 = vld [vmem:[%s12187_s30 + $0x18] sm:$0xff] }
 0x19e   : > { %v803_v37 = vmul.f32 %v799_v34, %v799_v34 }
 0x19f   : > { %v815_v41 = vsel %vm780_vm1, %v805_v40, 0.0 }
 0x1a0   : > { %v809_v39 = vsel %vm780_vm1, %v803_v37, 0.0 }
 0x1a1   : > { %813 = vadd.xlane.f32.xlu0 %v812_v38  ;;  %810 = vadd.xlane.f32.xlu1 %v809_v39  ;;  %v9770_v38 = vld [vmem:[%s12187_s30 + $0x8] sm:$0xff]  ;;  %v9775_v39 = vld [vmem:[%s12187_s30 + $0x10] sm:$0xff] }
 0x1a5   : > { %816 = vadd.xlane.f32.xlu1 %v815_v41 }
 0x22a   : > { %v808_v44 = vpop.xlane.xlu0 %807 }
 0x22b   : > { %v818_v45 = vmul.f32 0.03125, %v808_v44 }
 0x22d   : > { %v822_v46 = vadd.f32 1e-05, %v818_v45 }
 0x22e   : > { %v811_v47 = vpop.xlane.xlu1 %810  ;;  %v814_v48 = vpop.xlane.xlu0 %813 }
 0x22f   : > { %9255 = vrsqrt.f32 %v822_v46  ;;  %v819_v49 = vmul.f32 0.03125, %v811_v47  ;;  %v820_v50 = vmul.f32 0.03125, %v814_v48  ;;  %v9798_v46 = vld [vmem:[%s12187_s30 + $0x28] sm:$0xff]  ;;  %v9804_v47 = vld [vmem:[%s12187_s30 + $0x30] sm:$0xff] }
 0x231   : > { %v823_v51 = vadd.f32 1e-05, %v819_v49  ;;  %v824_v52 = vadd.f32 1e-05, %v820_v50  ;;  %v9813_v50 = vld [vmem:[%s12187_s30 + $0x38] sm:$0xff] }
 0x232   : > { %v817_v53 = vpop.xlane.xlu1 %816 }
 0x233   : > { %9257 = vrsqrt.f32 %v823_v51  ;;  %v821_v54 = vmul.f32 0.03125, %v817_v53  ;;  %v9819_v51 = vld [vmem:[%s12187_s30 + $0x40] sm:$0xff] }
 0x234   : > { %9259 = vrsqrt.f32 %v824_v52 }
 0x235   : > { %v825_v55 = vadd.f32 1e-05, %v821_v54  ;;  %v9828_v54 = vld [vmem:[%s12187_s30 + $0x48] sm:$0xff] }
 0x237   : > { %9261 = vrsqrt.f32 %v825_v55  ;;  %v9834_v55 = vld [vmem:[%s12187_s30 + $0x50] sm:$0xff] }
 0x239   : > { %v9256_v56 = vpop.eup %9255 }
 0x23a   : > { %v830_v57 = vmul.f32 %v9256_v56, %v798_v27 }
 0x23c   : > { %v840_v62 = vmul.f32 %v7359_v58, %v830_v57 }
 0x23d   : > { %v9258_v59 = vpop.eup %9257 }
 0x23e   : > { %v9260_v60 = vpop.eup %9259  ;;  %v831_v61 = vmul.f32 %v9258_v59, %v799_v34  ;;  %v850_v3 = vadd.f32 %v7360_v63, %v840_v62  ;;  %v9849_v59 = vld [vmem:[%s12187_s30 + $0x60] sm:$0xff]  ;;  %v9858_v62 = vld [vmem:[%s12187_s30 + $0x68] sm:$0xff] }
 0x23f   : > { %v832_v0 = vmul.f32 %v9260_v60, %v800_v26 }
 0x240   : > { %v841_v1 = vmul.f32 %v7359_v58, %v831_v61 }
 0x241   : > { %v9262_v2 = vpop.eup %9261  ;;  %v842_v6 = vmul.f32 %v7359_v58, %v832_v0 }
 0x242   : > { %v851_v4 = vadd.f32 %v7360_v63, %v841_v1  ;;  %v833_v5 = vmul.f32 %v9262_v2, %v801_v33  ;;  %v9873_v2 = vld [vmem:[%s12187_s30 + $0x78] sm:$0xff] }
 0x243   : > { %v852_v9 = vadd.f32 %v7360_v63, %v842_v6 }
 0x244   : > { %v854_v7 = vpack.c.bf16 %v851_v4, %v850_v3  ;;  %v843_v8 = vmul.f32 %v7359_v58, %v833_v5  ;;  %v9843_v58 = vld [vmem:[%s12187_s30 + $0x58] sm:$0xff]  ;;  %v9883_v5 = vld [vmem:[%s12190_s22] ss:$0 sm:$0xff] }
 0x246   : > { %8695 = vmatprep.mubr.msk.bf16.mxu1 %vm780_vm1, %v854_v7  ;;  %v853_v11 = vadd.f32 %v7360_v63, %v843_v8  ;;  %v9864_v63 = vld [vmem:[%s12187_s30 + $0x70] sm:$0xff] }
 0x248   : > { %v855_v12 = vpack.c.bf16 %v853_v11, %v852_v9 }
 0x24a   : > { %8696 = vmatmul.mubr.msk.bf16.vlgmr.msra.gmra.mrb[0].mxu1 %vm780_vm1, %v855_v12 }
 0x31d   : > { %v8697_v16 = vpop.f32.mrb[0].mxu1 }
 0x31e   : > { %v919_v17 = vpop.f32.mrb[1].mxu1  ;;  %v9737_v22 = vadd.f32 %v8697_v16, %v7361_v14 }
 0x31f   : > { %v920_v20 = vadd.f32 %v7361_v14, %v919_v17  ;;  %v8698_v21 = vpop.f32.mrb[2].mxu1 }
 0x320   : > { %v9739_v23 = vadd.f32 %v8698_v21, %v7361_v14  ;;  %v922_v24 = vpop.f32.mrb[3].mxu1  ;;  %v936_v41 = vmul.f32 %v9737_v22, %v9775_v39  ;;  %v940_v49 = vmul.f32 %v9737_v22, %v9804_v47  ;;  %v944_v57 = vmul.f32 %v9737_v22, %v9834_v55 }
 0x321   : > { %v923_v25 = vadd.f32 %v7361_v14, %v922_v24  ;;  %v934_v26 = vmul.f32 %v920_v20, %v9735_v19  ;;  %v938_v45 = vmul.f32 %v920_v20, %v9789_v43  ;;  %v942_v53 = vmul.f32 %v920_v20, %v9819_v51 }
 0x322   : > { %v9744_v27 = vpack.i.bf16 %v9739_v23, %v9737_v22  ;;  %v937_v44 = vmul.f32 %v9739_v23, %v9783_v42  ;;  %v941_v52 = vmul.f32 %v9739_v23, %v9813_v50  ;;  %v945_v60 = vmul.f32 %v9739_v23, %v9843_v58 }
 0x323   : > { %8707 = vmatprep.mubr.msk.f32.mxu1 %vm780_vm1, %v934_v26  ;;  %v9747_v28 = vpack.i.bf16 %v923_v25, %v920_v20  ;;  %v935_v40 = vmul.f32 %v923_v25, %v9770_v38  ;;  %v939_v48 = vmul.f32 %v923_v25, %v9798_v46  ;;  %v943_v56 = vmul.f32 %v923_v25, %v9828_v54 }
 0x324   : > { %8949 = vrot.lane.b32.xlu1 %v9744_v27, %s12160_s0  ;;  %v946_v61 = vmul.f32 %v920_v20, %v9849_v59  ;;  %v947_v0 = vmul.f32 %v923_v25, %v9858_v62  ;;  %v948_v1 = vmul.f32 %v9737_v22, %v9864_v63  ;;  %v949_v3 = vmul.f32 %v9739_v23, %v9873_v2 }
 0x325   : > { %8944 = vrot.lane.b32.xlu0 %v9747_v28, %s12160_s0 }
 0x396   : > { %v8950_v29 = vpop.permute.xlu1 %8949 }
 0x397   : > { %v8945_v30 = vpop.permute.xlu0 %8944  ;;  %v8952_v31 = vunpack.i.h.bf16 %v8950_v29  ;;  %v8951_v32 = vunpack.i.l.bf16 %v8950_v29 }
 0x398   : > { %v8947_v33 = vunpack.i.h.bf16 %v8945_v30  ;;  %v8946_v34 = vunpack.i.l.bf16 %v8945_v30 }
 0x399   : > { %v8865_v37 = vpack.c.bf16 %v8952_v31, %v8951_v32 }
 0x39a   : > { %v8859_v36 = vpack.c.bf16 %v8947_v33, %v8946_v34 }
 0x39c   : > { %8861 = vmatprep.subr.msk.bf16.mxu1 %vm9755_vm2, %v8859_v36 }
 0x39d   : > { %8864 = vmatpush3.bf16.xpose.msk.msra.mxu1 %vm9755_vm2, %v8859_v36 }
 0x39e   : > { %8867 = vmatprep.subr.msk.bf16.mxu1 %vm9755_vm2, %v8865_v37 }
 0x3a5   : > { %8870 = vmatpush3.bf16.xpose.msk.msra.mxu1 %vm9755_vm2, %v8865_v37 }
 0x3ac   : > { %8708 = vmatmul.mubr.msk.f32.vlgmr.msra.gmra.mrb[4].mxu1 %vm780_vm1, %v935_v40 }
 0x3ad   : > { %8710 = vmatprep.mubr.msk.f32.mxu1 %vm780_vm1, %v936_v41 }
 0x3b0   : > { %8711 = vmatmul.mubr.msk.f32.gmra.mrb[6].mxu1 %vm780_vm1, %v937_v44 }
 0x3b1   : > { %8713 = vmatprep.mubr.msk.f32.mxu1 %vm780_vm1, %v938_v45 }
 0x3b4   : > { %8714 = vmatmul.mubr.msk.f32.gmra.mrb[8].mxu1 %vm780_vm1, %v939_v48 }
 0x3b5   : > { %8716 = vmatprep.mubr.msk.f32.mxu1 %vm780_vm1, %v940_v49 }
 0x3b8   : > { %8717 = vmatmul.mubr.msk.f32.gmra.mrb[10].mxu1 %vm780_vm1, %v941_v52 }
 0x3b9   : > { %8719 = vmatprep.mubr.msk.f32.mxu1 %vm780_vm1, %v942_v53 }
 0x3bc   : > { %8720 = vmatmul.mubr.msk.f32.gmra.mrb[12].mxu1 %vm780_vm1, %v943_v56 }
 0x3bd   : > { %8722 = vmatprep.mubr.msk.f32.mxu1 %vm780_vm1, %v944_v57 }
 0x3c0   : > { %8723 = vmatmul.mubr.msk.f32.gmra.mrb[14].mxu1 %vm780_vm1, %v945_v60 }
 0x3c1   : > { %8725 = vmatprep.mubr.msk.f32.mxu1 %vm780_vm1, %v946_v61 }
 0x3c4   : > { %8726 = vmatmul.mubr.msk.f32.gmra.mrb[16].mxu1 %vm780_vm1, %v947_v0 }
 0x3c5   : > { %8728 = vmatprep.mubr.msk.f32.mxu1 %vm780_vm1, %v948_v1 }
 0x3c8   : > { %8729 = vmatmul.mubr.msk.f32.gmra.mrb[18].mxu1 %vm780_vm1, %v949_v3 }
 0x47f   : > { %v8709_v4 = vpop.f32.mrb[4].mxu1 }
 0x480   : > { %v1164_v6 = vmul.f32 0.35355338, %v8709_v4  ;;  %v1084_v7 = vpop.f32.mrb[5].mxu1 }
 0x481   : > { %v1163_v8 = vmul.f32 0.35355338, %v1084_v7 }
 0x482   : > { %v9886_v9 = vadd.f32 %v9883_v5, %v1164_v6 }
 0x483   : > { %v8712_v11 = vpop.f32.mrb[6].mxu1  ;;  %v9889_v12 = vadd.f32 %v9883_v5, %v1163_v8 }
 0x484   : > { %v1166_v14 = vmul.f32 0.35355338, %v8712_v11  ;;  %v1094_v16 = vpop.f32.mrb[7].mxu1  ;;  %v1204_v17 = vsel %vm780_vm1, %v9886_v9, -inf }
 0x485   : > { %v1165_v20 = vmul.f32 0.35355338, %v1094_v16  ;;  %1205 = vmax.xlane.f32.xlu0 %v1204_v17  ;;  %v1201_v21 = vsel %vm780_vm1, %v9889_v12, -inf }
 0x486   : > { %1202 = vmax.xlane.f32.xlu1 %v1201_v21  ;;  %v9896_v22 = vadd.f32 %v9883_v5, %v1166_v14 }
 0x487   : > { %v8715_v23 = vpop.f32.mrb[8].mxu1  ;;  %v9899_v24 = vadd.f32 %v9883_v5, %v1165_v20 }
 0x488   : > { %v1168_v25 = vmul.f32 0.35355338, %v8715_v23  ;;  %v1104_v26 = vpop.f32.mrb[9].mxu1  ;;  %v1210_v29 = vsel %vm780_vm1, %v9896_v22, -inf }
 0x489   : > { %v1167_v30 = vmul.f32 0.35355338, %v1104_v26  ;;  %v1207_v31 = vsel %vm780_vm1, %v9899_v24, -inf }
 0x48a   : > { %1211 = vmax.xlane.f32.xlu1 %v1210_v29  ;;  %1208 = vmax.xlane.f32.xlu0 %v1207_v31  ;;  %v9906_v32 = vadd.f32 %v9883_v5, %v1168_v25 }
 0x48b   : > { %v8718_v33 = vpop.f32.mrb[10].mxu1  ;;  %v9909_v34 = vadd.f32 %v9883_v5, %v1167_v30 }
 0x48c   : > { %v1170_v36 = vmul.f32 0.35355338, %v8718_v33  ;;  %v1114_v37 = vpop.f32.mrb[11].mxu1  ;;  %v1216_v40 = vsel %vm780_vm1, %v9906_v32, -inf }
 0x48d   : > { %v1169_v41 = vmul.f32 0.35355338, %v1114_v37  ;;  %v1213_v44 = vsel %vm780_vm1, %v9909_v34, -inf }
 0x48e   : > { %1217 = vmax.xlane.f32.xlu1 %v1216_v40  ;;  %1214 = vmax.xlane.f32.xlu0 %v1213_v44  ;;  %v9916_v45 = vadd.f32 %v9883_v5, %v1170_v36 }
 0x48f   : > { %v8721_v48 = vpop.f32.mrb[12].mxu1  ;;  %v9919_v49 = vadd.f32 %v9883_v5, %v1169_v41 }
 0x490   : > { %v1172_v52 = vmul.f32 0.35355338, %v8721_v48  ;;  %v1124_v53 = vpop.f32.mrb[13].mxu1  ;;  %v1222_v56 = vsel %vm780_vm1, %v9916_v45, -inf }
 0x491   : > { %v1171_v57 = vmul.f32 0.35355338, %v1124_v53  ;;  %v1219_v60 = vsel %vm780_vm1, %v9919_v49, -inf }
 0x492   : > { %1223 = vmax.xlane.f32.xlu1 %v1222_v56  ;;  %1220 = vmax.xlane.f32.xlu0 %v1219_v60  ;;  %v9926_v61 = vadd.f32 %v9883_v5, %v1172_v52 }
 0x493   : > { %v8724_v0 = vpop.f32.mrb[14].mxu1  ;;  %v9929_v1 = vadd.f32 %v9883_v5, %v1171_v57 }
 0x494   : > { %v1174_v3 = vmul.f32 0.35355338, %v8724_v0  ;;  %v1134_v4 = vpop.f32.mrb[15].mxu1  ;;  %v1228_v6 = vsel %vm780_vm1, %v9926_v61, -inf }
 0x495   : > { %v1173_v7 = vmul.f32 0.35355338, %v1134_v4  ;;  %v1225_v8 = vsel %vm780_vm1, %v9929_v1, -inf }
 0x496   : > { %1229 = vmax.xlane.f32.xlu1 %v1228_v6  ;;  %1226 = vmax.xlane.f32.xlu0 %v1225_v8  ;;  %v9936_v11 = vadd.f32 %v9883_v5, %v1174_v3 }
 0x497   : > { %v8727_v14 = vpop.f32.mrb[16].mxu1  ;;  %v9939_v16 = vadd.f32 %v9883_v5, %v1173_v7 }
 0x498   : > { %v1176_v17 = vmul.f32 0.35355338, %v8727_v14  ;;  %v1144_v20 = vpop.f32.mrb[17].mxu1  ;;  %v1234_v21 = vsel %vm780_vm1, %v9936_v11, -inf }
 0x499   : > { %v1175_v23 = vmul.f32 0.35355338, %v1144_v20  ;;  %v1231_v25 = vsel %vm780_vm1, %v9939_v16, -inf }
 0x49a   : > { %1235 = vmax.xlane.f32.xlu1 %v1234_v21  ;;  %1232 = vmax.xlane.f32.xlu0 %v1231_v25  ;;  %v9946_v26 = vadd.f32 %v9883_v5, %v1176_v17 }
 0x49b   : > { %v8730_v29 = vpop.f32.mrb[18].mxu1  ;;  %v9949_v30 = vadd.f32 %v9883_v5, %v1175_v23 }
 0x49c   : > { %v1178_v31 = vmul.f32 0.35355338, %v8730_v29  ;;  %v1154_v33 = vpop.f32.mrb[19].mxu1  ;;  %v1240_v36 = vsel %vm780_vm1, %v9946_v26, -inf }
 0x49d   : > { %v1177_v37 = vmul.f32 0.35355338, %v1154_v33  ;;  %v1237_v40 = vsel %vm780_vm1, %v9949_v30, -inf }
 0x49e   : > { %1241 = vmax.xlane.f32.xlu1 %v1240_v36  ;;  %1238 = vmax.xlane.f32.xlu0 %v1237_v40  ;;  %v9956_v41 = vadd.f32 %v9883_v5, %v1178_v31 }
 0x49f   : > { %v9959_v44 = vadd.f32 %v9883_v5, %v1177_v37 }
 0x4a0   : > { %v1246_v48 = vsel %vm780_vm1, %v9956_v41, -inf }
 0x4a1   : > { %v1243_v52 = vsel %vm780_vm1, %v9959_v44, -inf }
 0x4a2   : > { %1247 = vmax.xlane.f32.xlu1 %v1246_v48  ;;  %1244 = vmax.xlane.f32.xlu0 %v1243_v52 }
 0x512   : > { %v1206_v53 = vpop.xlane.xlu0 %1205 }
 0x513   : > { %v1250_v56 = vsub.f32 %v9886_v9, %v1206_v53  ;;  %v1203_v57 = vpop.xlane.xlu1 %1202 }
 0x514   : > { %v1249_v60 = vsub.f32 %v9889_v12, %v1203_v57 }
 0x515   : > { %v1267_v0 = vmul.f32 1.442695, %v1250_v56 }
 0x516   : > { %v1265_v3 = vmul.f32 1.442695, %v1249_v60 }
 0x517   : > { %9263 = vpow2.f32 %v1267_v0  ;;  %v1212_v4 = vpop.xlane.xlu1 %1211  ;;  %v1209_v5 = vpop.xlane.xlu0 %1208 }
 0x518   : > { %9265 = vpow2.f32 %v1265_v3  ;;  %v1252_v6 = vsub.f32 %v9896_v22, %v1212_v4  ;;  %v1251_v7 = vsub.f32 %v9899_v24, %v1209_v5 }
 0x51a   : > { %v1271_v8 = vmul.f32 1.442695, %v1252_v6  ;;  %v1269_v14 = vmul.f32 1.442695, %v1251_v7 }
 0x51b   : > { %v1218_v17 = vpop.xlane.xlu1 %1217  ;;  %v1215_v20 = vpop.xlane.xlu0 %1214 }
 0x51c   : > { %9267 = vpow2.f32 %v1271_v8  ;;  %v1254_v9 = vsub.f32 %v9906_v32, %v1218_v17  ;;  %v1253_v21 = vsub.f32 %v9909_v34, %v1215_v20 }
 0x51d   : > { %9269 = vpow2.f32 %v1269_v14 }
 0x51e   : > { %v1275_v12 = vmul.f32 1.442695, %v1254_v9  ;;  %v1273_v23 = vmul.f32 1.442695, %v1253_v21 }
 0x51f   : > { %v1224_v25 = vpop.xlane.xlu1 %1223  ;;  %v1221_v29 = vpop.xlane.xlu0 %1220 }
 0x520   : > { %9271 = vpow2.f32 %v1275_v12  ;;  %v1256_v31 = vsub.f32 %v9916_v45, %v1224_v25  ;;  %v1255_v22 = vsub.f32 %v9919_v49, %v1221_v29 }
 0x521   : > { %v9973_v24 = vpop.eup %9263  ;;  %9273 = vpow2.f32 %v1273_v23 }
 0x522   : > { %v9975_v33 = vpop.eup %9265  ;;  %v1279_v36 = vmul.f32 1.442695, %v1256_v31  ;;  %v1277_v37 = vmul.f32 1.442695, %v1255_v22  ;;  %v1300_v32 = vsel %vm780_vm1, %v9973_v24, 0.0 }
 0x523   : > { %v1230_v34 = vpop.xlane.xlu1 %1229  ;;  %v1227_v40 = vpop.xlane.xlu0 %1226  ;;  %1301 = vadd.xlane.f32.xlu1 %v1300_v32  ;;  %v1297_v48 = vsel %vm780_vm1, %v9975_v33, 0.0 }
 0x524   : > { %9275 = vpow2.f32 %v1279_v36  ;;  %v1258_v45 = vsub.f32 %v9926_v61, %v1230_v34  ;;  %v1257_v49 = vsub.f32 %v9929_v1, %v1227_v40  ;;  %1298 = vadd.xlane.f32.xlu0 %v1297_v48 }
 0x525   : > { %9277 = vpow2.f32 %v1277_v37 }
 0x526   : > { %v9983_v52 = vpop.eup %9267  ;;  %v1283_v53 = vmul.f32 1.442695, %v1258_v45  ;;  %v1281_v56 = vmul.f32 1.442695, %v1257_v49 }
 0x527   : > { %v9985_v57 = vpop.eup %9269  ;;  %v1236_v60 = vpop.xlane.xlu1 %1235  ;;  %v1306_v3 = vsel %vm780_vm1, %v9983_v52, 0.0 }
 0x528   : > { %v1233_v0 = vpop.xlane.xlu0 %1232  ;;  %9279 = vpow2.f32 %v1283_v53  ;;  %v1260_v4 = vsub.f32 %v9936_v11, %v1236_v60  ;;  %1307 = vadd.xlane.f32.xlu1 %v1306_v3  ;;  %v1303_v1 = vsel %vm780_vm1, %v9985_v57, 0.0 }
 0x529   : > { %v1259_v61 = vsub.f32 %v9939_v16, %v1233_v0  ;;  %9281 = vpow2.f32 %v1281_v56  ;;  %1304 = vadd.xlane.f32.xlu0 %v1303_v1 }
 0x52a   : > { %v9993_v5 = vpop.eup %9271  ;;  %v1287_v6 = vmul.f32 1.442695, %v1260_v4 }
 0x52b   : > { %v1285_v7 = vmul.f32 1.442695, %v1259_v61  ;;  %v9995_v8 = vpop.eup %9273  ;;  %v1312_v14 = vsel %vm780_vm1, %v9993_v5, 0.0  ;;  %v1242_v32 = vpop.xlane.xlu1 %1241 }
 0x52c   : > { %9283 = vpow2.f32 %v1287_v6  ;;  %1313 = vadd.xlane.f32.xlu1 %v1312_v14  ;;  %v1309_v11 = vsel %vm780_vm1, %v9995_v8, 0.0  ;;  %v1239_v37 = vpop.xlane.xlu0 %1238  ;;  %v1262_v53 = vsub.f32 %v9946_v26, %v1242_v32 }
 0x52d   : > { %1310 = vadd.xlane.f32.xlu0 %v1309_v11  ;;  %9285 = vpow2.f32 %v1285_v7  ;;  %v1261_v34 = vsub.f32 %v9949_v30, %v1239_v37 }
 0x52e   : > { %v10001_v16 = vpop.eup %9275  ;;  %v1291_v0 = vmul.f32 1.442695, %v1262_v53 }
 0x52f   : > { %v10003_v17 = vpop.eup %9277  ;;  %v1318_v20 = vsel %vm780_vm1, %v10001_v16, 0.0  ;;  %v1289_v48 = vmul.f32 1.442695, %v1261_v34  ;;  %v1248_v49 = vpop.xlane.xlu1 %1247 }
 0x530   : > { %1319 = vadd.xlane.f32.xlu1 %v1318_v20  ;;  %v1315_v9 = vsel %vm780_vm1, %v10003_v17, 0.0  ;;  %v1245_v40 = vpop.xlane.xlu0 %1244  ;;  %v1264_v56 = vsub.f32 %v9956_v41, %v1248_v49 }
 0x531   : > { %1316 = vadd.xlane.f32.xlu0 %v1315_v9  ;;  %v1263_v45 = vsub.f32 %v9959_v44, %v1245_v40  ;;  %9287 = vpow2.f32 %v1289_v48 }
 0x532   : > { %v10009_v21 = vpop.eup %9279 }
 0x533   : > { %v10011_v12 = vpop.eup %9281  ;;  %v1324_v23 = vsel %vm780_vm1, %v10009_v21, 0.0  ;;  %v1293_v60 = vmul.f32 1.442695, %v1263_v45 }
 0x534   : > { %1325 = vadd.xlane.f32.xlu1 %v1324_v23  ;;  %v1321_v25 = vsel %vm780_vm1, %v10011_v12, 0.0 }
 0x535   : > { %1322 = vadd.xlane.f32.xlu0 %v1321_v25  ;;  %9289 = vpow2.f32 %v1293_v60 }
 0x536   : > { %v10017_v29 = vpop.eup %9283  ;;  %9291 = vpow2.f32 %v1291_v0 }
 0x537   : > { %v1330_v31 = vsel %vm780_vm1, %v10017_v29, 0.0  ;;  %v10021_v22 = vpop.eup %9285 }
 0x538   : > { %1331 = vadd.xlane.f32.xlu1 %v1330_v31  ;;  %v1327_v36 = vsel %vm780_vm1, %v10021_v22, 0.0 }
 0x53c   : > { %1328 = vadd.xlane.f32.xlu1 %v1327_v36 }
 0x54b   : > { %8954 = vrot.lane.b32.xlu0 %v9747_v28, %s12158_s29  ;;  %v1295_v28 = vmul.f32 1.442695, %v1264_v56 }
 0x54d   : > { %8959 = vrot.lane.b32.xlu1 %v9744_v27, %s12158_s29  ;;  %9293 = vpow2.f32 %v1295_v28  ;;  %v10033_v27 = vpop.eup %9287  ;;  %s12082_s29 = scalar_lea.hbm %s12194_s28, %s8122_s27 }
 0x54e   : > { %v1333_v30 = vsel %vm780_vm1, %v10033_v27, 0.0  ;;  %v10037_v3 = vpop.eup %9289 }
 0x54f   : > { %v10039_v44 = vpop.eup %9291  ;;  %v1339_v26 = vsel %vm780_vm1, %v10037_v3, 0.0 }
 0x550   : > { %v1336_v4 = vsel %vm780_vm1, %v10039_v44, 0.0 }
 0x557   : > { %v10043_v41 = vpop.eup %9293 }
 0x558   : > { %v1342_v61 = vsel %vm780_vm1, %v10043_v41, 0.0 }
 0x56a   : > { %1334 = vadd.xlane.f32.xlu0 %v1333_v30 }
 0x56e   : > { %1340 = vadd.xlane.f32.xlu0 %v1339_v26 }
 0x571   : > { %1337 = vadd.xlane.f32.xlu1 %v1336_v4 }
 0x572   : > { %1343 = vadd.xlane.f32.xlu0 %v1342_v61 }
 0x5b0   : > { %v1302_v1 = vpop.xlane.xlu1 %1301 }
 0x5b1   : > { %v1299_v6 = vpop.xlane.xlu0 %1298 }
 0x5b2   : > { %9295 = vrcp.f32 %v1299_v6 }
 0x5b3   : > { %9297 = vrcp.f32 %v1302_v1 }
 0x5b5   : > { %v1308_v7 = vpop.xlane.xlu1 %1307 }
 0x5b6   : > { %v1305_v14 = vpop.xlane.xlu0 %1304 }
 0x5b7   : > { %9299 = vrcp.f32 %v1305_v14 }
 0x5b8   : > { %9301 = vrcp.f32 %v1308_v7 }
 0x5b9   : > { %v1314_v11 = vpop.xlane.xlu1 %1313 }
 0x5ba   : > { %v1311_v20 = vpop.xlane.xlu0 %1310 }
 0x5bb   : > { %9303 = vrcp.f32 %v1311_v20 }
 0x5bc   : > { %v9296_v9 = vpop.eup %9295  ;;  %9305 = vrcp.f32 %v1314_v11 }
 0x5bd   : > { %v1320_v23 = vpop.xlane.xlu1 %1319  ;;  %v1361_v25 = vmul.f32 %v9296_v9, %v9975_v33  ;;  %v9298_v0 = vpop.eup %9297 }
 0x5be   : > { %v1317_v31 = vpop.xlane.xlu0 %1316  ;;  %v1362_v30 = vmul.f32 %v9298_v0, %v9973_v24 }
 0x5bf   : > { %8739 = vmatprep.mubr.msk.f32.mxu0 %vm780_vm1, %v1361_v25  ;;  %9307 = vrcp.f32 %v1317_v31 }
 0x5c0   : > { %9309 = vrcp.f32 %v1320_v23 }
 0x5c1   : > { %v1326_v36 = vpop.xlane.xlu1 %1325  ;;  %v9300_v28 = vpop.eup %9299 }
 0x5c2   : > { %v1323_v37 = vpop.xlane.xlu0 %1322  ;;  %v9302_v26 = vpop.eup %9301  ;;  %v1363_v4 = vmul.f32 %v9300_v28, %v9985_v57 }
 0x5c3   : > { %9311 = vrcp.f32 %v1323_v37  ;;  %v1364_v1 = vmul.f32 %v9302_v26, %v9983_v52 }
 0x5c4   : > { %9313 = vrcp.f32 %v1326_v36 }
 0x5c5   : > { %v1332_v32 = vpop.xlane.xlu1 %1331  ;;  %v9304_v61 = vpop.eup %9303 }
 0x5c6   : > { %v8955_v34 = vpop.permute.xlu0 %8954  ;;  %v9306_v6 = vpop.eup %9305  ;;  %v1365_v7 = vmul.f32 %v9304_v61, %v9995_v8 }
 0x5c7   : > { %v8957_v40 = vunpack.i.h.bf16 %v8955_v34  ;;  %v8956_v48 = vunpack.i.l.bf16 %v8955_v34  ;;  %v1366_v24 = vmul.f32 %v9306_v6, %v9993_v5 }
 0x5c9   : > { %v8871_v45 = vpack.c.bf16 %v8957_v40, %v8956_v48  ;;  %v1329_v49 = vpop.xlane.xlu1 %1328  ;;  %v9308_v14 = vpop.eup %9307 }
 0x5ca   : > { %9315 = vrcp.f32 %v1329_v49  ;;  %v9310_v57 = vpop.eup %9309  ;;  %v1367_v11 = vmul.f32 %v9308_v14, %v10003_v17  ;;  %v8992_v49 = vld [vmem:[%s12131_s7 + $0x8] sm:$0xff]  }
 0x5cb   : > { %8872 = vmatprep.subr.bf16.mxu0 %v8871_v45  ;;  %9317 = vrcp.f32 %v1332_v32  ;;  %v1368_v52 = vmul.f32 %v9310_v57, %v10001_v16 }
 0x5cc   : > { %8874 = vmatpush3.bf16.msra.mxu0 %v8871_v45 }
 0x5cd   : > { %v8960_v53 = vpop.permute.xlu1 %8959  ;;  %v9312_v20 = vpop.eup %9311 }
 0x5ce   : > { %v8962_v56 = vunpack.i.h.bf16 %v8960_v53  ;;  %v8961_v33 = vunpack.i.l.bf16 %v8960_v53  ;;  %v9314_v9 = vpop.eup %9313  ;;  %v1369_v8 = vmul.f32 %v9312_v20, %v10011_v12 }
 0x5cf   : > { %v1370_v5 = vmul.f32 %v9314_v9, %v10009_v21 }
 0x5d0   : > { %v8875_v60 = vpack.c.bf16 %v8962_v56, %v8961_v33 }
 0x5d2   : > { %8876 = vmatprep.subr.bf16.mxu0 %v8875_v60 }
 0x5d3   : > { %8878 = vmatpush3.bf16.msra.mxu0 %v8875_v60 }
 0x5d4   : > { %v9316_v23 = vpop.eup %9315 }
 0x5d5   : > { %v9318_v25 = vpop.eup %9317  ;;  %v1371_v17 = vmul.f32 %v9316_v23, %v10021_v22 }
 0x5d6   : > { %8740 = vmatmul.mubr.msk.f32.vlgmr.msra.gmra.mrb[4].mxu0 %vm780_vm1, %v1362_v30  ;;  %v1372_v31 = vmul.f32 %v9318_v25, %v10017_v29 }
 0x5d7   : > { %8742 = vmatprep.mubr.msk.f32.mxu0 %vm780_vm1, %v1363_v4 }
 0x5da   : > { %8743 = vmatmul.mubr.msk.f32.gmra.mrb[6].mxu0 %vm780_vm1, %v1364_v1 }
 0x5db   : > { %8745 = vmatprep.mubr.msk.f32.mxu0 %vm780_vm1, %v1365_v7 }
 0x5de   : > { %8746 = vmatmul.mubr.msk.f32.gmra.mrb[8].mxu0 %vm780_vm1, %v1366_v24 }
 0x5df   : > { %8748 = vmatprep.mubr.msk.f32.mxu0 %vm780_vm1, %v1367_v11 }
 0x5e2   : > { %8749 = vmatmul.mubr.msk.f32.gmra.mrb[10].mxu0 %vm780_vm1, %v1368_v52 }
 0x5e3   : > { %8751 = vmatprep.mubr.msk.f32.mxu0 %vm780_vm1, %v1369_v8 }
 0x5e6   : > { %8752 = vmatmul.mubr.msk.f32.gmra.mrb[12].mxu0 %vm780_vm1, %v1370_v5 }
 0x5e7   : > { %8754 = vmatprep.mubr.msk.f32.mxu0 %vm780_vm1, %v1371_v17 }
 0x5ea   : > { %8755 = vmatmul.mubr.msk.f32.gmra.mrb[14].mxu0 %vm780_vm1, %v1372_v31 }
 0x5f7   : > { %v1335_v16 = vpop.xlane.xlu0 %1334 }
 0x5f8   : > { %9319 = vrcp.f32 %v1335_v16 }
 0x5fb   : > { %v1341_v12 = vpop.xlane.xlu0 %1340 }
 0x5fc   : > { %9321 = vrcp.f32 %v1341_v12 }
 0x5fe   : > { %v1338_v36 = vpop.xlane.xlu1 %1337 }
 0x5ff   : > { %9323 = vrcp.f32 %v1338_v36  ;;  %v1344_v37 = vpop.xlane.xlu0 %1343 }
 0x600   : > { %9325 = vrcp.f32 %v1344_v37 }
 0x602   : > { %v9320_v21 = vpop.eup %9319 }
 0x603   : > { %v1373_v32 = vmul.f32 %v9320_v21, %v10033_v27  ;;  %v8991_v27 = vld [vmem:[%s12131_s7] sm:$0xff]  }
 0x604   : > { %8763 = vmatprep.subr.bf16.mxu0 %v8991_v27 }
 0x605   : > { %8757 = vmatprep.mubr.msk.f32.mxu0 %vm780_vm1, %v1373_v32  ;;  %8764 = vmatpush3.bf16.msra.mxu0 %v8991_v27 }
 0x606   : > { %v9322_v22 = vpop.eup %9321  ;;  %8765 = vmatprep.subr.bf16.mxu0 %v8992_v49 }
 0x607   : > { %v1375_v48 = vmul.f32 %v9322_v22, %v10037_v3 }
 0x609   : > { %v9324_v34 = vpop.eup %9323  ;;  %8766 = vmatpush3.bf16.msra.mxu0 %v8992_v49 }
 0x60a   : > { %v1374_v40 = vmul.f32 %v9324_v34, %v10039_v44  ;;  %v9326_v29 = vpop.eup %9325 }
 0x60b   : > { %v1376_v45 = vmul.f32 %v9326_v29, %v10043_v41 }
 0x60c   : > { %8758 = vmatmul.mubr.msk.f32.gmra.mrb[16].mxu0 %vm780_vm1, %v1374_v40 }
 0x60d   : > { %8760 = vmatprep.mubr.msk.f32.mxu0 %vm780_vm1, %v1375_v48 }
 0x610   : > { %8761 = vmatmul.mubr.msk.f32.gmra.mrb[18].mxu0 %vm780_vm1, %v1376_v45 }
 0x6a9   : > { %v8741_v3 = vpop.f32.mrb[4].mxu0 }
 0x6aa   : > { %v1503_v44 = vpop.f32.mrb[5].mxu0  ;;  %v1583_v41 = vmul.f32 %v8741_v3, %v9770_v38 }
 0x6ab   : > { %v1582_v28 = vmul.f32 %v1503_v44, %v9735_v19 }
 0x6ad   : > { %v8744_v53 = vpop.f32.mrb[6].mxu0 }
 0x6ae   : > { %v1513_v56 = vpop.f32.mrb[7].mxu0  ;;  %v1585_v1 = vmul.f32 %v8744_v53, %v9783_v42 }
 0x6af   : > { %v1584_v14 = vmul.f32 %v1513_v56, %v9775_v39 }
 0x6b1   : > { %v8747_v33 = vpop.f32.mrb[8].mxu0 }
 0x6b2   : > { %v1587_v60 = vmul.f32 %v8747_v33, %v9798_v46  ;;  %v1523_v0 = vpop.f32.mrb[9].mxu0 }
 0x6b3   : > { %v1586_v30 = vmul.f32 %v1523_v0, %v9789_v43 }
 0x6b4   : > { %v1599_v26 = vadd.f32 %v1587_v60, %v1583_v41 }
 0x6b5   : > { %v1598_v4 = vadd.f32 %v1586_v30, %v1582_v28  ;;  %v8750_v61 = vpop.f32.mrb[10].mxu0 }
 0x6b6   : > { %v1589_v6 = vmul.f32 %v8750_v61, %v9813_v50  ;;  %v1533_v7 = vpop.f32.mrb[11].mxu0 }
 0x6b7   : > { %v1588_v24 = vmul.f32 %v1533_v7, %v9804_v47 }
 0x6b8   : > { %v1601_v38 = vadd.f32 %v1589_v6, %v1585_v1 }
 0x6b9   : > { %v1600_v57 = vadd.f32 %v1588_v24, %v1584_v14  ;;  %v8753_v46 = vpop.f32.mrb[12].mxu0 }
 0x6ba   : > { %v1591_v11 = vmul.f32 %v8753_v46, %v9828_v54  ;;  %v1543_v19 = vpop.f32.mrb[13].mxu0 }
 0x6bb   : > { %v1590_v43 = vmul.f32 %v1543_v19, %v9819_v51 }
 0x6bc   : > { %v1603_v20 = vadd.f32 %v1599_v26, %v1591_v11 }
 0x6bd   : > { %v1602_v52 = vadd.f32 %v1598_v4, %v1590_v43  ;;  %v8756_v9 = vpop.f32.mrb[14].mxu0 }
 0x6be   : > { %v1593_v42 = vmul.f32 %v8756_v9, %v9843_v58  ;;  %v1553_v8 = vpop.f32.mrb[15].mxu0 }
 0x6bf   : > { %v1592_v50 = vmul.f32 %v1553_v8, %v9834_v55  ;;  %v1786_v8 = vld [vmem:[%s12137_s13 + $0x80] sm:$0xff] }
 0x6c0   : > { %v1605_v23 = vadd.f32 %v1601_v38, %v1593_v42 }
 0x6c1   : > { %v1604_v39 = vadd.f32 %v1600_v57, %v1592_v50  ;;  %v1794_v50 = vld [vmem:[%s12137_s13 + $0xc0] sm:$0xff] }
 0x6df   : > { %v8759_v5 = vpop.f32.mrb[16].mxu0 }
 0x6e0   : > { %v1595_v47 = vmul.f32 %v8759_v5, %v9858_v62  ;;  %v1563_v25 = vpop.f32.mrb[17].mxu0  ;;  %v1795_v5 = vld [vmem:[%s12137_s13 + $0xc8] sm:$0xff] }
 0x6e1   : > { %v1594_v17 = vmul.f32 %v1563_v25, %v9849_v59  ;;  %v7403_v59 = vld [vmem:[%s12132_s8] ss:$0 sm:$0xff] }
 0x6e2   : > { %v1607_v54 = vadd.f32 %v1603_v20, %v1595_v47  ;;  %v1771_v20 = vld [vmem:[%s12137_s13 + $0x8] sm:$0xff]  ;;  %v7426_v47 = vcombine.low %v1786_v8, %v1794_v50 }
 0x6e3   : > { %v1606_v31 = vadd.f32 %v1602_v52, %v1594_v17  ;;  %v8762_v16 = vpop.f32.mrb[18].mxu0  ;;  %v1779_v52 = vld [vmem:[%s12137_s13 + $0x48] sm:$0xff] }
 0x6e4   : > { %v1597_v51 = vmul.f32 %v8762_v16, %v9873_v2  ;;  %v1573_v12 = vpop.f32.mrb[19].mxu0  ;;  %v7413_v9 = vcombine.high %v1771_v20, %v1779_v52  ;;  %v7412_v42 = vcombine.low %v1771_v20, %v1779_v52  ;;  %v1780_v16 = vld [vmem:[%s12137_s13 + $0x50] sm:$0xff]  ;;  %v1783_v20 = vld [vmem:[%s12137_s13 + $0x68] sm:$0xff] }
 0x6e5   : > { %v1610_v36 = vpack.c.bf16 %v1607_v54, %v1606_v31  ;;  %v1596_v58 = vmul.f32 %v1573_v12, %v9864_v63  ;;  %v12164_v54 = vmov 0   ;;  %v1772_v31 = vld [vmem:[%s12137_s13 + $0x10] sm:$0xff] }
 0x6e6   : > { %v1609_v37 = vadd.f32 %v1605_v23, %v1597_v51  ;;  %2105 = vmatprep.subr.bf16.mxu0 %v7413_v9  ;;  %v1787_v23 = vld [vmem:[%s12137_s13 + $0x88] sm:$0xff]  ;;  %2084 = vmatprep.mubr.bf16.mxu1 %v12164_v54  ;;  %v1773_v51 = vld [vmem:[%s12137_s13 + $0x18] sm:$0xff]  ;;  %v7414_v12 = vcombine.low %v1772_v31, %v1780_v16 }
 0x6e7   : > { %v1608_v21 = vadd.f32 %v1604_v39, %v1596_v58  ;;  %8767 = vmatprep.mubr.msk.bf16.mxu0 %vm780_vm1, %v1610_v36  ;;  %v7427_v39 = vcombine.high %v1786_v8, %v1794_v50  ;;  %v7428_v25 = vcombine.low %v1787_v23, %v1795_v5  ;;  %v7429_v17 = vcombine.high %v1787_v23, %v1795_v5  ;;  %v1781_v58 = vld [vmem:[%s12137_s13 + $0x58] sm:$0xff]  ;;  %v1790_v5 = vld [vmem:[%s12137_s13 + $0xa0] sm:$0xff] }
 0x6e8   : > { %v7415_v36 = vcombine.high %v1772_v31, %v1780_v16 }
 0x6e9   : > { %v1611_v55 = vpack.c.bf16 %v1609_v37, %v1608_v21  ;;  %v7416_v37 = vcombine.low %v1773_v51, %v1781_v58  ;;  %v7417_v21 = vcombine.high %v1773_v51, %v1781_v58  ;;  %v1784_v58 = vld [vmem:[%s12137_s13 + $0x70] sm:$0xff] }
 0x6eb   : > { %8768 = vmatmul.mubr.msk.bf16.vlgmr.msra.gmra.mrb[20].mxu0 %vm780_vm1, %v1611_v55 }
 0x6ec   : > { %2106 = vmatpush1.bf16.msra.mxu0 %v7412_v42  ;;  %2137 = vmatprep.mubr.bf16.mxu0 %v12164_v54 }
 0x6ed   : > { %2107 = vmatprep.subr.bf16.mxu0 %v7429_v17  ;;  %v1799_v17 = vld [vmem:[%s12137_s13 + $0xe8] sm:$0xff] }
 0x6f0   : > { %2108 = vmatpush1.bf16.msra.mxu0 %v7428_v25  ;;  %v1791_v25 = vld [vmem:[%s12137_s13 + $0xa8] sm:$0xff] }
 0x6f1   : > { %2211 = vmatprep.subr.bf16.mxu0 %v7417_v21  ;;  %v1785_v21 = vld [vmem:[%s12137_s13 + $0x78] sm:$0xff] }
 0x7be   : > { %v8769_v62 = vpop.f32.mrb[20].mxu0 }
 0x7bf   : > { %v1675_v32 = vpop.f32.mrb[21].mxu0  ;;  %v1684_v22 = vadd.f32 %v8769_v62, %v7403_v59 }
 0x7c0   : > { %v1676_v34 = vadd.f32 %v7403_v59, %v1675_v32  ;;  %v8770_v2 = vpop.f32.mrb[22].mxu0 }
 0x7c1   : > { %v1678_v40 = vpop.f32.mrb[23].mxu0  ;;  %v1687_v63 = vadd.f32 %v8770_v2, %v7403_v59  ;;  %v10112_v45 = vadd.f32 %v1684_v22, %v9688_v10 }
 0x7c2   : > { %v10109_v29 = vadd.f32 %v1676_v34, %v9693_v13  ;;  %v1679_v48 = vadd.f32 %v7403_v59, %v1678_v40 }
 0x7c3   : > { %v10120_v3 = vadd.f32 %v1687_v63, %v9695_v15  ;;  %v1702_v13 = vsel %vm780_vm1, %v10112_v45, 0.0  ;;  %v1778_v15 = vld [vmem:[%s12137_s13 + $0x40] sm:$0xff] }
 0x7c4   : > { %v10115_v27 = vadd.f32 %v1679_v48, %v9699_v18  ;;  %v1696_v49 = vsel %vm780_vm1, %v10109_v29, 0.0  ;;  %v1770_v18 = vld [vmem:[%s12137_s13] sm:$0xff] }
 0x7c5   : > { %1697 = vadd.xlane.f32.xlu0 %v1696_v49  ;;  %v1705_v10 = vsel %vm780_vm1, %v10120_v3, 0.0  ;;  %v7410_v53 = vcombine.low %v1770_v18, %v1778_v15  ;;  %v7411_v56 = vcombine.high %v1770_v18, %v1778_v15 }
 0x7c6   : > { %v1699_v44 = vsel %vm780_vm1, %v10115_v27, 0.0 }
 0x7c7   : > { %1700 = vadd.xlane.f32.xlu1 %v1699_v44  ;;  %2052 = vmatprep.subr.bf16.mxu1 %v7411_v56 }
 0x7c8   : > { %2053 = vmatpush1.bf16.msra.mxu1 %v7410_v53 }
 0x7c9   : > { %1703 = vadd.xlane.f32.xlu0 %v1702_v13  ;;  %2054 = vmatprep.subr.bf16.mxu1 %v7427_v39 }
 0x7cb   : > { %1706 = vadd.xlane.f32.xlu1 %v1705_v10  ;;  %v7408_v10 = vld [vmem:[%s12135_s11] ss:$0 sm:$0xff] }
 0x7cc   : > { %2055 = vmatpush1.bf16.msra.mxu1 %v7426_v47  ;;  %v1798_v47 = vld [vmem:[%s12137_s13 + $0xe0] sm:$0xff] }
 0x7cd   : > { %2158 = vmatprep.subr.bf16.mxu1 %v7415_v36  ;;  %v7435_v51 = vcombine.high %v1790_v5, %v1798_v47  ;;  %v1776_v36 = vld [vmem:[%s12137_s13 + $0x30] sm:$0xff] }
 0x852   : > { %v1698_v33 = vpop.xlane.xlu0 %1697 }
 0x853   : > { %v1708_v41 = vmul.f32 0.03125, %v1698_v33 }
 0x854   : > { %v1701_v60 = vpop.xlane.xlu1 %1700 }
 0x855   : > { %v10135_v0 = vsub.f32 %v10109_v29, %v1708_v41  ;;  %v1709_v28 = vmul.f32 0.03125, %v1701_v60  ;;  %v7409_v41 = vld [vmem:[%s12136_s12] ss:$0 sm:$0xff] }
 0x856   : > { %v1704_v30 = vpop.xlane.xlu0 %1703 }
 0x857   : > { %v10138_v26 = vsub.f32 %v10115_v27, %v1709_v28  ;;  %v1710_v4 = vmul.f32 0.03125, %v1704_v30  ;;  %v1716_v61 = vmul.f32 %v10135_v0, %v10135_v0  ;;  %v1788_v30 = vld [vmem:[%s12137_s13 + $0x90] sm:$0xff] }
 0x858   : > { %v1707_v1 = vpop.xlane.xlu1 %1706 }
 0x859   : > { %v10143_v6 = vsub.f32 %v10112_v45, %v1710_v4  ;;  %v1711_v7 = vmul.f32 0.03125, %v1707_v1  ;;  %v1720_v14 = vsel %vm780_vm1, %v1716_v61, 0.0  ;;  %v1717_v24 = vmul.f32 %v10138_v26, %v10138_v26 }
 0x85a   : > { %1721 = vadd.xlane.f32.xlu0 %v1720_v14  ;;  %v1797_v14 = vld [vmem:[%s12137_s13 + $0xd8] sm:$0xff] }
 0x85b   : > { %v10149_v38 = vsub.f32 %v10120_v3, %v1711_v7  ;;  %v1723_v57 = vsel %vm780_vm1, %v1717_v24, 0.0  ;;  %v1718_v46 = vmul.f32 %v10143_v6, %v10143_v6  ;;  %v1789_v7 = vld [vmem:[%s12137_s13 + $0x98] sm:$0xff] }
 0x85c   : > { %1724 = vadd.xlane.f32.xlu1 %v1723_v57  ;;  %v7432_v42 = vcombine.low %v1789_v7, %v1797_v14 }
 0x85d   : > { %v1726_v11 = vsel %vm780_vm1, %v1718_v46, 0.0  ;;  %v1719_v19 = vmul.f32 %v10149_v38, %v10149_v38 }
 0x85e   : > { %1727 = vadd.xlane.f32.xlu0 %v1726_v11  ;;  %v7433_v11 = vcombine.high %v1789_v7, %v1797_v14  ;;  %v9007_v7 = vld [vmem:[%s12139_s15 + $0x18] sm:$0xff]  }
 0x85f   : > { %v1729_v43 = vsel %vm780_vm1, %v1719_v19, 0.0  ;;  %v1782_v19 = vld [vmem:[%s12137_s13 + $0x60] sm:$0xff]  ;;  %v9008_v14 = vld [vmem:[%s12139_s15 + $0x98] sm:$0xff]  }
 0x860   : > { %1730 = vadd.xlane.f32.xlu1 %v1729_v43  ;;  %v1775_v43 = vld [vmem:[%s12137_s13 + $0x28] sm:$0xff] }
 0x861   : > { %v7421_v50 = vcombine.high %v1775_v43, %v1783_v20  ;;  %v7420_v16 = vcombine.low %v1775_v43, %v1783_v20  ;;  %v9016_v43 = vld [vmem:[%s12139_s15 + $0xa8] sm:$0xff]   ;;  %v9017_v20 = vld [vmem:[%s12139_s15 + $0x70] sm:$0xff]  }
 0x8e7   : > { %v1722_v55 = vpop.xlane.xlu0 %1721 }
 0x8e8   : > { %v1732_v59 = vmul.f32 0.03125, %v1722_v55  ;;  %v7434_v55 = vcombine.low %v1790_v5, %v1798_v47  ;;  %v9025_v5 = vld [vmem:[%s12139_s15 + $0x140] sm:$0xff]  }
 0x8e9   : > { %v1725_v62 = vpop.xlane.xlu1 %1724  ;;  %v9026_v47 = vld [vmem:[%s12139_s15 + $0x1c0] sm:$0xff]  }
 0x8ea   : > { %v1736_v32 = vadd.f32 1e-05, %v1732_v59  ;;  %v1733_v22 = vmul.f32 0.03125, %v1725_v62  ;;  %v7436_v59 = vcombine.low %v1791_v25, %v1799_v17  ;;  %v7423_v62 = vcombine.high %v1776_v36, %v1784_v58 }
 0x8eb   : > { %v1728_v34 = vpop.xlane.xlu0 %1727 }
 0x8ec   : > { %9327 = vrsqrt.f32 %v1736_v32  ;;  %v1737_v2 = vadd.f32 1e-05, %v1733_v22  ;;  %v1734_v40 = vmul.f32 0.03125, %v1728_v34  ;;  %v1792_v22 = vld [vmem:[%s12137_s13 + $0xb0] sm:$0xff] }
 0x8ed   : > { %v1731_v63 = vpop.xlane.xlu1 %1730  ;;  %v1800_v34 = vld [vmem:[%s12137_s13 + $0xf0] sm:$0xff] }
 0x8ee   : > { %9329 = vrsqrt.f32 %v1737_v2  ;;  %v1738_v48 = vadd.f32 1e-05, %v1734_v40  ;;  %v1735_v49 = vmul.f32 0.03125, %v1731_v63  ;;  %v1793_v2 = vld [vmem:[%s12137_s13 + $0xb8] sm:$0xff]  ;;  %v7422_v63 = vcombine.low %v1776_v36, %v1784_v58 }
 0x8ef   : > { %v1801_v40 = vld [vmem:[%s12137_s13 + $0xf8] sm:$0xff] }
 0x8f0   : > { %9331 = vrsqrt.f32 %v1738_v48  ;;  %v1739_v44 = vadd.f32 1e-05, %v1735_v49  ;;  %v7439_v49 = vcombine.high %v1792_v22, %v1800_v34 }
 0x8f2   : > { %9333 = vrsqrt.f32 %v1739_v44  ;;  %v7441_v44 = vcombine.high %v1793_v2, %v1801_v40 }
 0x8f6   : > { %v9328_v13 = vpop.eup %9327 }
 0x8f7   : > { %v1744_v18 = vmul.f32 %v9328_v13, %v10135_v0  ;;  %v7438_v13 = vcombine.low %v1792_v22, %v1800_v34 }
 0x8f8   : > { %v9330_v15 = vpop.eup %9329 }
 0x8f9   : > { %v1754_v53 = vmul.f32 %v7408_v10, %v1744_v18  ;;  %v1745_v56 = vmul.f32 %v9330_v15, %v10138_v26  ;;  %v1796_v26 = vld [vmem:[%s12137_s13 + $0xd0] sm:$0xff]  ;;  %v8993_v18 = vld [vmem:[%s12139_s15 + $0x40] sm:$0xff]  }
 0x8fa   : > { %v9332_v33 = vpop.eup %9331  ;;  %v7431_v46 = vcombine.high %v1788_v30, %v1796_v26  ;;  %v7430_v9 = vcombine.low %v1788_v30, %v1796_v26  ;;  %v8994_v15 = vld [vmem:[%s12139_s15 + $0xc0] sm:$0xff]   ;;  %v9001_v30 = vld [vmem:[%s12139_s15 + $0x50] sm:$0xff]   ;;  %v9006_v26 = vld [vmem:[%s12139_s15 + $0xd8] sm:$0xff]  }
 0x8fb   : > { %v1755_v60 = vmul.f32 %v7408_v10, %v1745_v56  ;;  %v1764_v4 = vadd.f32 %v7409_v41, %v1754_v53  ;;  %v1746_v1 = vmul.f32 %v9332_v33, %v10143_v6  ;;  %v1774_v6 = vld [vmem:[%s12137_s13 + $0x20] sm:$0xff]  ;;  %v8997_v33 = vld [vmem:[%s12139_s15 + $0x48] sm:$0xff]  }
 0x8fc   : > { %v9334_v28 = vpop.eup %9333  ;;  %v7419_v8 = vcombine.high %v1774_v6, %v1782_v19  ;;  %v7418_v31 = vcombine.low %v1774_v6, %v1782_v19  ;;  %v8995_v53 = vld [vmem:[%s12139_s15] sm:$0xff]   ;;  %v9013_v6 = vld [vmem:[%s12139_s15 + $0x68] sm:$0xff]  }
 0x8fd   : > { %v1765_v61 = vadd.f32 %v7409_v41, %v1755_v60  ;;  %v1747_v0 = vmul.f32 %v9334_v28, %v10149_v38  ;;  %v1756_v38 = vmul.f32 %v7408_v10, %v1746_v1  ;;  %v8996_v56 = vld [vmem:[%s12139_s15 + $0x80] sm:$0xff]   ;;  %v8999_v60 = vld [vmem:[%s12139_s15 + $0x8] sm:$0xff]   ;;  %v9004_v1 = vld [vmem:[%s12139_s15 + $0x90] sm:$0xff]  }
 0x8fe   : > { %v9000_v28 = vld [vmem:[%s12139_s15 + $0x88] sm:$0xff]  }
 0x8ff   : > { %v10212_v24 = vpack.c.bf16 %v1765_v61, %v1764_v4  ;;  %v1757_v57 = vmul.f32 %v7408_v10, %v1747_v0  ;;  %v1766_v23 = vadd.f32 %v7409_v41, %v1756_v38  ;;  %v7440_v10 = vcombine.low %v1793_v2, %v1801_v40  ;;  %v9002_v4 = vld [vmem:[%s12139_s15 + $0xd0] sm:$0xff]   ;;  %v9005_v0 = vld [vmem:[%s12139_s15 + $0x58] sm:$0xff]   ;;  %v9014_v38 = vld [vmem:[%s12139_s15 + $0xe8] sm:$0xff]  }
 0x900   : > { %v9003_v61 = vld [vmem:[%s12139_s15 + $0x10] sm:$0xff]   ;;  %v9015_v19 = vld [vmem:[%s12139_s15 + $0x28] sm:$0xff]  }
 0x901   : > { %7442 = vmatmul.mubr.msk.bf16.vlgmr.msra.gmra.mrb[20].mxu1 %vm780_vm1, %v10212_v24  ;;  %7444 = vmatmul.mubr.msk.bf16.vlgmr.msra.gmra.mrb[24].mxu0 %vm780_vm1, %v10212_v24  ;;  %v1767_v52 = vadd.f32 %v7409_v41, %v1757_v57  ;;  %v8998_v41 = vld [vmem:[%s12139_s15 + $0xc8] sm:$0xff]   ;;  %v9010_v57 = vld [vmem:[%s12139_s15 + $0xe0] sm:$0xff]  }
 0x902   : > { %2094 = vmatprep.mubr.bf16.mxu1 %v12164_v54  ;;  %2147 = vmatprep.mubr.bf16.mxu0 %v12164_v54 }
 0x903   : > { %2159 = vmatpush1.bf16.msra.mxu1 %v7414_v12  ;;  %2212 = vmatpush1.bf16.msra.mxu0 %v7416_v37  ;;  %v10232_v39 = vpack.c.bf16 %v1767_v52, %v1766_v23  ;;  %v7437_v12 = vcombine.high %v1791_v25, %v1799_v17  ;;  %v1777_v37 = vld [vmem:[%s12137_s13 + $0x38] sm:$0xff]  ;;  %v9018_v52 = vld [vmem:[%s12139_s15 + $0xf0] sm:$0xff]   ;;  %v1806_v25 = vlaneseq }
 0x904   : > { %2160 = vmatprep.subr.bf16.mxu1 %v7431_v46  ;;  %2213 = vmatprep.subr.bf16.mxu0 %v7433_v11  ;;  %v7425_v32 = vcombine.high %v1777_v37, %v1785_v21  ;;  %v7424_v48 = vcombine.low %v1777_v37, %v1785_v21  ;;  %v9011_v46 = vld [vmem:[%s12139_s15 + $0x20] sm:$0xff]   ;;  %v9023_v23 = vld [vmem:[%s12139_s15 + $0x38] sm:$0xff]  }
 0x905   : > { %v9012_v11 = vld [vmem:[%s12139_s15 + $0xa0] sm:$0xff]   ;;  %v1807_v17 = vshrl.u32 %v1806_v25, 7 }
 0x907   : > { %2161 = vmatpush1.bf16.msra.mxu1 %v7430_v9  ;;  %2214 = vmatpush1.bf16.msra.mxu0 %v7432_v42  ;;  %v9019_v9 = vld [vmem:[%s12139_s15 + $0x30] sm:$0xff]   ;;  %v10423_v36 = vsub.s32 3, %v1807_v17 }
 0x908   : > { %2264 = vmatprep.subr.bf16.mxu1 %v7419_v8  ;;  %2317 = vmatprep.subr.bf16.mxu0 %v7421_v50  ;;  %v9020_v42 = vld [vmem:[%s12139_s15 + $0xb0] sm:$0xff]   ;;  %v9021_v8 = vld [vmem:[%s12139_s15 + $0x78] sm:$0xff]  }
 0x909   : > { %7443 = vmatmul.mubr.msk.bf16.gmra.mrb[24].mxu1 %vm780_vm1, %v10232_v39  ;;  %7445 = vmatmul.mubr.msk.bf16.gmra.mrb[28].mxu0 %vm780_vm1, %v10232_v39  ;;  %v9022_v50 = vld [vmem:[%s12139_s15 + $0xf8] sm:$0xff]  }
 0x90a   : > { %2190 = vmatprep.mubr.bf16.mxu1 %v12164_v54  ;;  %2243 = vmatprep.mubr.bf16.mxu0 %v12164_v54 }
 0x911   : > { %7446 = vmatmul.mubr.msk.bf16.vlgmr.msra.gmra.mrb[28].mxu1 %vm780_vm1, %v10212_v24  ;;  %7448 = vmatmul.mubr.msk.bf16.vlgmr.msra.gmra.mrb[32].mxu0 %vm780_vm1, %v10212_v24 }
 0x912   : > { %2200 = vmatprep.mubr.bf16.mxu1 %v12164_v54  ;;  %2253 = vmatprep.mubr.bf16.mxu0 %v12164_v54 }
 0x913   : > { %2265 = vmatpush1.bf16.msra.mxu1 %v7418_v31  ;;  %2318 = vmatpush1.bf16.msra.mxu0 %v7420_v16  ;;  %v10412_v31 = vsub.s32 0, %v1807_v17  ;;  %v10414_v16 = vsub.s32 2, %v1807_v17 }
 0x914   : > { %2266 = vmatprep.subr.bf16.mxu1 %v7435_v51  ;;  %2319 = vmatprep.subr.bf16.mxu0 %v7437_v12  ;;  %v10419_v51 = vld [vmem:[%s12138_s14] sm:$0xff]  ;;  %v10421_v12 = vsub.s32 1, %v1807_v17 }
 0x915   : > { %v1809_v58 = vrot.slane %v10419_v51, %v10412_v31  ;;  %v1817_v37 = vrot.slane %v10419_v51, %v10414_v16 }
 0x916   : > { %v1813_v21 = vrot.slane %v10419_v51, %v10421_v12 }
 0x917   : > { %2267 = vmatpush1.bf16.msra.mxu1 %v7434_v55  ;;  %2320 = vmatpush1.bf16.msra.mxu0 %v7436_v59  ;;  %v1821_v55 = vrot.slane %v10419_v51, %v10423_v36 }
 0x918   : > { %2370 = vmatprep.subr.bf16.mxu1 %v7423_v62  ;;  %2423 = vmatprep.subr.bf16.mxu0 %v7425_v32 }
 0x919   : > { %7447 = vmatmul.mubr.msk.bf16.gmra.mrb[32].mxu1 %vm780_vm1, %v10232_v39  ;;  %7449 = vmatmul.mubr.msk.bf16.gmra.mrb[36].mxu0 %vm780_vm1, %v10232_v39 }
 0x91a   : > { %2296 = vmatprep.mubr.bf16.mxu1 %v12164_v54  ;;  %2349 = vmatprep.mubr.bf16.mxu0 %v12164_v54 }
 0x921   : > { %7450 = vmatmul.mubr.msk.bf16.vlgmr.msra.gmra.mrb[36].mxu1 %vm780_vm1, %v10212_v24  ;;  %7452 = vmatmul.mubr.msk.bf16.vlgmr.msra.gmra.mrb[40].mxu0 %vm780_vm1, %v10212_v24 }
 0x922   : > { %2306 = vmatprep.mubr.bf16.mxu1 %v12164_v54  ;;  %2359 = vmatprep.mubr.bf16.mxu0 %v12164_v54 }
 0x923   : > { %2371 = vmatpush1.bf16.msra.mxu1 %v7422_v63  ;;  %2424 = vmatpush1.bf16.msra.mxu0 %v7424_v48 }
 0x924   : > { %2372 = vmatprep.subr.bf16.mxu1 %v7439_v49  ;;  %2425 = vmatprep.subr.bf16.mxu0 %v7441_v44 }
 0x927   : > { %2373 = vmatpush1.bf16.msra.mxu1 %v7438_v13  ;;  %2426 = vmatpush1.bf16.msra.mxu0 %v7440_v10 }
 0x928   : > { %8180 = vmatprep.subr.bf16.mxu1 %v8993_v18  ;;  %8208 = vmatprep.subr.bf16.mxu0 %v8994_v15 }
 0x929   : > { %7451 = vmatmul.mubr.msk.bf16.gmra.mrb[40].mxu1 %vm780_vm1, %v10232_v39  ;;  %7453 = vmatmul.mubr.msk.bf16.gmra.mrb[44].mxu0 %vm780_vm1, %v10232_v39 }
 0x92a   : > { %2402 = vmatprep.mubr.bf16.mxu1 %v12164_v54  ;;  %2455 = vmatprep.mubr.bf16.mxu0 %v12164_v54 }
 0x931   : > { %7454 = vmatmul.mubr.msk.bf16.vlgmr.msra.gmra.mrb[44].mxu1 %vm780_vm1, %v10212_v24  ;;  %7456 = vmatmul.mubr.msk.bf16.vlgmr.msra.gmra.mrb[48].mxu0 %vm780_vm1, %v10212_v24  ;;  %v9009_v24 = vld [vmem:[%s12139_s15 + $0x60] sm:$0xff]  }
 0x932   : > { %2412 = vmatprep.mubr.bf16.mxu1 %v12164_v54  ;;  %2465 = vmatprep.mubr.bf16.mxu0 %v12164_v54 }
 0x933   : > { %8181 = vmatpush3.bf16.msra.mxu1 %v8995_v53  ;;  %8209 = vmatpush3.bf16.msra.mxu0 %v8996_v56  ;;  %v10433_v56 = vsub.s32 4, %v1807_v17 }
 0x934   : > { %8182 = vmatprep.subr.bf16.mxu1 %v8997_v33  ;;  %8210 = vmatprep.subr.bf16.mxu0 %v8998_v41  ;;  %v10435_v33 = vsub.s32 6, %v1807_v17 }
 0x936   : > { %v10459_v25 = vrot.slane %v10419_v51, %v10435_v33 }
 0x937   : > { %8183 = vmatpush3.bf16.msra.mxu1 %v8999_v60  ;;  %8211 = vmatpush3.bf16.msra.mxu0 %v9000_v28 }
 0x938   : > { %8184 = vmatprep.subr.bf16.mxu1 %v9001_v30  ;;  %8212 = vmatprep.subr.bf16.mxu0 %v9002_v4 }
 0x939   : > { %7455 = vmatmul.mubr.msk.bf16.gmra.mrb[48].mxu1 %vm780_vm1, %v10232_v39  ;;  %7457 = vmatmul.mubr.msk.bf16.gmra.mrb[52].mxu0 %vm780_vm1, %v10232_v39  ;;  %v9024_v39 = vld [vmem:[%s12139_s15 + $0xb8] sm:$0xff]  }
 0x93b   : > { %8185 = vmatpush3.bf16.msra.mxu1 %v9003_v61  ;;  %8213 = vmatpush3.bf16.msra.mxu0 %v9004_v1 }
 0x93c   : > { %8186 = vmatprep.subr.bf16.mxu1 %v9005_v0  ;;  %8214 = vmatprep.subr.bf16.mxu0 %v9006_v26 }
 0x93f   : > { %8187 = vmatpush3.bf16.msra.mxu1 %v9007_v7  ;;  %8215 = vmatpush3.bf16.msra.mxu0 %v9008_v14  ;;  %v10437_v14 = vsub.s32 5, %v1807_v17 }
 0x940   : > { %8188 = vmatprep.subr.bf16.mxu1 %v9009_v24  ;;  %8216 = vmatprep.subr.bf16.mxu0 %v9010_v57 }
 0x943   : > { %8189 = vmatpush3.bf16.msra.mxu1 %v9011_v46  ;;  %8217 = vmatpush3.bf16.msra.mxu0 %v9012_v11 }
 0x944   : > { %8190 = vmatprep.subr.bf16.mxu1 %v9013_v6  ;;  %8218 = vmatprep.subr.bf16.mxu0 %v9014_v38  ;;  %v9027_v6 = vld [vmem:[%s12139_s15 + $0x100] sm:$0xff]  }
 0x945   : > { %v9028_v38 = vld [vmem:[%s12139_s15 + $0x180] sm:$0xff]  }
 0x947   : > { %8191 = vmatpush3.bf16.msra.mxu1 %v9015_v19  ;;  %8219 = vmatpush3.bf16.msra.mxu0 %v9016_v43  ;;  %v10445_v19 = vsub.s32 7, %v1807_v17 }
 0x948   : > { %8192 = vmatprep.subr.bf16.mxu1 %v9017_v20  ;;  %8220 = vmatprep.subr.bf16.mxu0 %v9018_v52 }
 0x94b   : > { %8193 = vmatpush3.bf16.msra.mxu1 %v9019_v9  ;;  %8221 = vmatpush3.bf16.msra.mxu0 %v9020_v42  ;;  %v9029_v42 = vld [vmem:[%s12139_s15 + $0x148] sm:$0xff]  }
 0x94c   : > { %8194 = vmatprep.subr.bf16.mxu1 %v9021_v8  ;;  %8222 = vmatprep.subr.bf16.mxu0 %v9022_v50  ;;  %v9030_v8 = vld [vmem:[%s12139_s15 + $0x1c8] sm:$0xff]   ;;  %v10455_v50 = vrot.slane %v10419_v51, %v10433_v56 }
 0x94f   : > { %8195 = vmatpush3.bf16.msra.mxu1 %v9023_v23  ;;  %8223 = vmatpush3.bf16.msra.mxu0 %v9024_v39 }
 0x950   : > { %8236 = vmatprep.subr.bf16.mxu1 %v9025_v5  ;;  %8264 = vmatprep.subr.bf16.mxu0 %v9026_v47 }
 0x9d4   : > { %v2086_v59 = vpop.f32.mrb[20].mxu1  ;;  %v2139_v62 = vpop.f32.mrb[24].mxu0 }
 0x9d5   : > { %v2087_v32 = vadd.f32 %v2086_v59, %v1809_v58  ;;  %v2140_v22 = vadd.f32 %v2139_v62, %v1817_v37  ;;  %v2088_v34 = vpop.f32.mrb[21].mxu1  ;;  %v2141_v2 = vpop.f32.mrb[25].mxu0 }
 0x9d6   : > { %v2089_v40 = vadd.f32 %v2088_v34, %v1813_v21  ;;  %v2142_v63 = vadd.f32 %v2141_v2, %v1821_v55  ;;  %v2090_v48 = vpop.f32.mrb[22].mxu1  ;;  %v2143_v49 = vpop.f32.mrb[26].mxu0 }
 0x9d7   : > { %v2091_v44 = vadd.f32 %v2090_v48, %v1809_v58  ;;  %v2144_v13 = vadd.f32 %v2143_v49, %v1817_v37  ;;  %v2092_v10 = vpop.f32.mrb[23].mxu1  ;;  %v2145_v18 = vpop.f32.mrb[27].mxu0  ;;  %v2476_v41 = vmax.f32 %v2087_v32, 0.0  ;;  %v2478_v60 = vmax.f32 %v2140_v22, 0.0 }
 0x9d8   : > { %v2093_v15 = vadd.f32 %v2092_v10, %v1813_v21  ;;  %v2146_v53 = vadd.f32 %v2145_v18, %v1821_v55  ;;  %v2477_v4 = vmax.f32 %v2089_v40, 0.0  ;;  %v2479_v61 = vmax.f32 %v2142_v63, 0.0  ;;  %v9031_v40 = vld [vmem:[%s12139_s15 + $0x108] sm:$0xff]  }
 0x9d9   : > { %v2492_v28 = vmax.f32 %v2091_v44, 0.0  ;;  %v2494_v30 = vmax.f32 %v2144_v13, 0.0  ;;  %v10463_v22 = vrot.slane %v10419_v51, %v10437_v14 }
 0x9da   : > { %v2493_v1 = vmax.f32 %v2093_v15, 0.0  ;;  %v2495_v0 = vmax.f32 %v2146_v53, 0.0 }
 0x9db   : > { %v2540_v26 = vpack.c.bf16 %v2492_v28, %v2476_v41  ;;  %v2542_v7 = vpack.c.bf16 %v2494_v30, %v2478_v60 }
 0x9dc   : > { %v2541_v24 = vpack.c.bf16 %v2493_v1, %v2477_v4  ;;  %v2543_v57 = vpack.c.bf16 %v2495_v0, %v2479_v61  ;;  %v2096_v46 = vpop.f32.mrb[24].mxu1  ;;  %v2149_v11 = vpop.f32.mrb[28].mxu0  ;;  %v9035_v4 = vld [vmem:[%s12139_s15 + $0x110] sm:$0xff]  }
 0x9dd   : > { %v2097_v43 = vadd.f32 %v2096_v46, %v1809_v58  ;;  %v2150_v20 = vadd.f32 %v2149_v11, %v1817_v37  ;;  %v2098_v52 = vpop.f32.mrb[25].mxu1  ;;  %v2151_v9 = vpop.f32.mrb[29].mxu0  ;;  %v9036_v61 = vld [vmem:[%s12139_s15 + $0x190] sm:$0xff]  }
 0x9de   : > { %v2099_v23 = vadd.f32 %v2098_v52, %v1813_v21  ;;  %v2152_v39 = vadd.f32 %v2151_v9, %v1821_v55  ;;  %v2100_v5 = vpop.f32.mrb[26].mxu1  ;;  %v2153_v47 = vpop.f32.mrb[30].mxu0  ;;  %3635 = vmatprep.mubr.bf16.mxu1 %v2541_v24  ;;  %3684 = vmatprep.mubr.bf16.mxu0 %v2543_v57  ;;  %v9037_v24 = vld [vmem:[%s12139_s15 + $0x158] sm:$0xff]  }
 0x9df   : > { %v2101_v17 = vadd.f32 %v2100_v5, %v1809_v58  ;;  %v2154_v59 = vadd.f32 %v2153_v47, %v1817_v37  ;;  %v2102_v62 = vpop.f32.mrb[27].mxu1  ;;  %v2155_v32 = vpop.f32.mrb[31].mxu0  ;;  %3636 = vmatmul.mubr.bf16.vlgmr.msra.gmra.mrb[52].mxu1 %v2540_v26  ;;  %3685 = vmatmul.mubr.bf16.vlgmr.msra.gmra.mrb[56].mxu0 %v2542_v7  ;;  %v9032_v58 = vld [vmem:[%s12139_s15 + $0x188] sm:$0xff]   ;;  %v10473_v37 = vrot.slane %v10419_v51, %v10445_v19  ;;  %v2508_v63 = vmax.f32 %v2097_v43, 0.0  ;;  %v9038_v57 = vld [vmem:[%s12139_s15 + $0x1d8] sm:$0xff]  }
 0x9e0   : > { %v2103_v34 = vadd.f32 %v2102_v62, %v1813_v21  ;;  %v2156_v2 = vadd.f32 %v2155_v32, %v1821_v55  ;;  %8237 = vmatpush3.bf16.msra.mxu1 %v9027_v6  ;;  %8265 = vmatpush3.bf16.msra.mxu0 %v9028_v38  ;;  %v2510_v48 = vmax.f32 %v2150_v20, 0.0  ;;  %v9033_v21 = vld [vmem:[%s12139_s15 + $0x150] sm:$0xff]   ;;  %v2509_v13 = vmax.f32 %v2099_v23, 0.0  ;;  %v9039_v23 = vld [vmem:[%s12139_s15 + $0x118] sm:$0xff]   ;;  %v9041_v62 = vld [vmem:[%s12139_s15 + $0x160] sm:$0xff]  }
 0x9e1   : > { %v2524_v49 = vmax.f32 %v2101_v17, 0.0  ;;  %v2526_v44 = vmax.f32 %v2154_v59, 0.0  ;;  %8238 = vmatprep.subr.bf16.mxu1 %v9029_v42  ;;  %8266 = vmatprep.subr.bf16.mxu0 %v9030_v8  ;;  %v9034_v55 = vld [vmem:[%s12139_s15 + $0x1d0] sm:$0xff]   ;;  %v2511_v10 = vmax.f32 %v2152_v39, 0.0  ;;  %v9040_v39 = vld [vmem:[%s12139_s15 + $0x198] sm:$0xff]   ;;  %v9042_v32 = vld [vmem:[%s12139_s15 + $0x1e0] sm:$0xff]  }
 0x9e2   : > { %v2525_v18 = vmax.f32 %v2103_v34, 0.0  ;;  %v2527_v15 = vmax.f32 %v2156_v2, 0.0 }
 0x9e3   : > { %v2556_v51 = vpack.c.bf16 %v2524_v49, %v2508_v63  ;;  %v2558_v53 = vpack.c.bf16 %v2526_v44, %v2510_v48  ;;  %v10520_v49 = vld [vmem:[%s12138_s14 + $0x8] sm:$0xff] }
 0x9e4   : > { %v2557_v41 = vpack.c.bf16 %v2525_v18, %v2509_v13  ;;  %v2559_v60 = vpack.c.bf16 %v2527_v15, %v2511_v10  ;;  %8239 = vmatpush3.bf16.msra.mxu1 %v9031_v40  ;;  %8267 = vmatpush3.bf16.msra.mxu0 %v9032_v58  ;;  %v2192_v28 = vpop.f32.mrb[28].mxu1  ;;  %v2245_v30 = vpop.f32.mrb[32].mxu0  ;;  %v9043_v10 = vld [vmem:[%s12139_s15 + $0x120] sm:$0xff]  }
 0x9e5   : > { %v2193_v1 = vadd.f32 %v2192_v28, %v10455_v50  ;;  %v2246_v0 = vadd.f32 %v2245_v30, %v10459_v25  ;;  %v2194_v26 = vpop.f32.mrb[29].mxu1  ;;  %v2247_v7 = vpop.f32.mrb[33].mxu0  ;;  %8240 = vmatprep.subr.bf16.mxu1 %v9033_v21  ;;  %8268 = vmatprep.subr.bf16.mxu0 %v9034_v55  ;;  %v9044_v18 = vld [vmem:[%s12139_s15 + $0x1a0] sm:$0xff]   ;;  %v9046_v28 = vld [vmem:[%s12139_s15 + $0x1e8] sm:$0xff]  }
 0x9e6   : > { %v2195_v46 = vadd.f32 %v2194_v26, %v10463_v22  ;;  %v2248_v11 = vadd.f32 %v2247_v7, %v10473_v37  ;;  %v2196_v6 = vpop.f32.mrb[30].mxu1  ;;  %v2249_v38 = vpop.f32.mrb[34].mxu0  ;;  %3643 = vmatprep.mubr.bf16.mxu1 %v2557_v41  ;;  %3692 = vmatprep.mubr.bf16.mxu0 %v2559_v60  ;;  %v9045_v60 = vld [vmem:[%s12139_s15 + $0x168] sm:$0xff]  }
 0x9e7   : > { %v2197_v43 = vadd.f32 %v2196_v6, %v10455_v50  ;;  %v2250_v20 = vadd.f32 %v2249_v38, %v10459_v25  ;;  %v2198_v52 = vpop.f32.mrb[31].mxu1  ;;  %v2251_v9 = vpop.f32.mrb[35].mxu0  ;;  %3644 = vmatmul.mubr.bf16.gmra.mrb[56].mxu1 %v2556_v51  ;;  %3693 = vmatmul.mubr.bf16.gmra.mrb[60].mxu0 %v2558_v53  ;;  %v2480_v5 = vmax.f32 %v2193_v1, 0.0  ;;  %v2482_v47 = vmax.f32 %v2246_v0, 0.0 }
 0x9e8   : > { %v2199_v42 = vadd.f32 %v2198_v52, %v10463_v22  ;;  %v2252_v8 = vadd.f32 %v2251_v9, %v10473_v37  ;;  %8241 = vmatpush3.bf16.msra.mxu1 %v9035_v4  ;;  %8269 = vmatpush3.bf16.msra.mxu0 %v9036_v61  ;;  %v2481_v34 = vmax.f32 %v2195_v46, 0.0  ;;  %v2483_v2 = vmax.f32 %v2248_v11, 0.0 }
 0x9e9   : > { %v2496_v17 = vmax.f32 %v2197_v43, 0.0  ;;  %v2498_v59 = vmax.f32 %v2250_v20, 0.0  ;;  %8242 = vmatprep.subr.bf16.mxu1 %v9037_v24  ;;  %8270 = vmatprep.subr.bf16.mxu0 %v9038_v57  ;;  %v10540_v0 = vrot.slane %v10520_v49, %v10412_v31  ;;  %v10546_v46 = vrot.slane %v10520_v49, %v10414_v16 }
 0x9ea   : > { %v2497_v40 = vmax.f32 %v2199_v42, 0.0  ;;  %v2499_v58 = vmax.f32 %v2252_v8, 0.0  ;;  %v10550_v11 = vrot.slane %v10520_v49, %v10421_v12  ;;  %v10562_v43 = vrot.slane %v10520_v49, %v10423_v36  ;;  %v9050_v42 = vld [vmem:[%s12139_s15 + $0x1f0] sm:$0xff]  }
 0x9eb   : > { %v10513_v63 = vpack.c.bf16 %v2496_v17, %v2480_v5  ;;  %v10515_v48 = vpack.c.bf16 %v2498_v59, %v2482_v47 }
 0x9ec   : > { %v2545_v44 = vpack.c.bf16 %v2497_v40, %v2481_v34  ;;  %v2547_v21 = vpack.c.bf16 %v2499_v58, %v2483_v2  ;;  %8243 = vmatpush3.bf16.msra.mxu1 %v9039_v23  ;;  %8271 = vmatpush3.bf16.msra.mxu0 %v9040_v39  ;;  %v2202_v55 = vpop.f32.mrb[32].mxu1  ;;  %v2255_v13 = vpop.f32.mrb[36].mxu0  ;;  %v9051_v2 = vld [vmem:[%s12139_s15 + $0x130] sm:$0xff]  }
 0x9ed   : > { %v2203_v15 = vadd.f32 %v2202_v55, %v10455_v50  ;;  %v2256_v51 = vadd.f32 %v2255_v13, %v10459_v25  ;;  %v2204_v53 = vpop.f32.mrb[33].mxu1  ;;  %v2257_v41 = vpop.f32.mrb[37].mxu0  ;;  %8244 = vmatprep.subr.bf16.mxu1 %v9041_v62  ;;  %8272 = vmatprep.subr.bf16.mxu0 %v9042_v32  ;;  %v9052_v40 = vld [vmem:[%s12139_s15 + $0x1b0] sm:$0xff]   ;;  %v9053_v13 = vld [vmem:[%s12139_s15 + $0x178] sm:$0xff]  }
 0x9ee   : > { %v2205_v30 = vadd.f32 %v2204_v53, %v10463_v22  ;;  %v2258_v4 = vadd.f32 %v2257_v41, %v10473_v37  ;;  %v2206_v61 = vpop.f32.mrb[34].mxu1  ;;  %v2259_v1 = vpop.f32.mrb[38].mxu0  ;;  %3733 = vmatprep.mubr.bf16.mxu1 %v2545_v44  ;;  %3782 = vmatprep.mubr.bf16.mxu0 %v2547_v21 }
 0x9ef   : > { %v2207_v26 = vadd.f32 %v2206_v61, %v10455_v50  ;;  %v2260_v7 = vadd.f32 %v2259_v1, %v10459_v25  ;;  %v2208_v24 = vpop.f32.mrb[35].mxu1  ;;  %v2261_v57 = vpop.f32.mrb[39].mxu0  ;;  %v9047_v50 = vld [vmem:[%s12139_s15 + $0x128] sm:$0xff]   ;;  %v2512_v20 = vmax.f32 %v2203_v15, 0.0  ;;  %v2514_v52 = vmax.f32 %v2256_v51, 0.0  ;;  %v9055_v1 = vld [vmem:[%s12139_s15 + $0x138] sm:$0xff]  }
 0x9f0   : > { %v2209_v6 = vadd.f32 %v2208_v24, %v10463_v22  ;;  %v2262_v38 = vadd.f32 %v2261_v57, %v10473_v37  ;;  %8245 = vmatpush3.bf16.msra.mxu1 %v9043_v10  ;;  %8273 = vmatpush3.bf16.msra.mxu0 %v9044_v18  ;;  %v9048_v25 = vld [vmem:[%s12139_s15 + $0x1a8] sm:$0xff]   ;;  %v9049_v37 = vld [vmem:[%s12139_s15 + $0x170] sm:$0xff]   ;;  %v2513_v8 = vmax.f32 %v2205_v30, 0.0  ;;  %v2515_v23 = vmax.f32 %v2258_v4, 0.0  ;;  %v9054_v10 = vld [vmem:[%s12139_s15 + $0x1f8] sm:$0xff]  }
 0x9f1   : > { %v2528_v9 = vmax.f32 %v2207_v26, 0.0  ;;  %v2530_v22 = vmax.f32 %v2260_v7, 0.0  ;;  %8246 = vmatprep.subr.bf16.mxu1 %v9045_v60  ;;  %8274 = vmatprep.subr.bf16.mxu0 %v9046_v28  ;;  %v9056_v26 = vld [vmem:[%s12139_s15 + $0x1b8] sm:$0xff]  }
 0x9f2   : > { %v2529_v39 = vmax.f32 %v2209_v6, 0.0  ;;  %v2531_v5 = vmax.f32 %v2262_v38, 0.0  ;;  %v9057_v38 = vld [vmem:[%s12139_s15 + $0x240] sm:$0xff]  }
 0x9f3   : > { %v10570_v47 = vpack.c.bf16 %v2528_v9, %v2512_v20  ;;  %v10572_v17 = vpack.c.bf16 %v2530_v22, %v2514_v52 }
 0x9f4   : > { %v10574_v59 = vpack.c.bf16 %v2529_v39, %v2513_v8  ;;  %v10576_v62 = vpack.c.bf16 %v2531_v5, %v2515_v23  ;;  %8247 = vmatpush3.bf16.msra.mxu1 %v9047_v50  ;;  %8275 = vmatpush3.bf16.msra.mxu0 %v9048_v25  ;;  %v2298_v32 = vpop.f32.mrb[36].mxu1  ;;  %v2351_v34 = vpop.f32.mrb[40].mxu0  ;;  %v9058_v50 = vld [vmem:[%s12139_s15 + $0x2c0] sm:$0xff]  }
 0x9f5   : > { %v2299_v58 = vadd.f32 %v2298_v32, %v10540_v0  ;;  %v2352_v44 = vadd.f32 %v2351_v34, %v10546_v46  ;;  %v2300_v21 = vpop.f32.mrb[37].mxu1  ;;  %v2353_v55 = vpop.f32.mrb[41].mxu0  ;;  %8248 = vmatprep.subr.bf16.mxu1 %v9049_v37  ;;  %8276 = vmatprep.subr.bf16.mxu0 %v9050_v42 }
 0x9f6   : > { %v2301_v18 = vadd.f32 %v2300_v21, %v10550_v11  ;;  %v2354_v15 = vadd.f32 %v2353_v55, %v10562_v43  ;;  %v2302_v51 = vpop.f32.mrb[38].mxu1  ;;  %v2355_v53 = vpop.f32.mrb[42].mxu0 }
 0x9f7   : > { %v2303_v41 = vadd.f32 %v2302_v51, %v10540_v0  ;;  %v2356_v60 = vadd.f32 %v2355_v53, %v10546_v46  ;;  %v2304_v28 = vpop.f32.mrb[39].mxu1  ;;  %v2357_v30 = vpop.f32.mrb[43].mxu0  ;;  %v2484_v7 = vmax.f32 %v2299_v58, 0.0  ;;  %v2486_v24 = vmax.f32 %v2352_v44, 0.0  ;;  %v9060_v58 = vld [vmem:[%s12139_s15 + $0x280] sm:$0xff]  }
 0x9f8   : > { %v2305_v4 = vadd.f32 %v2304_v28, %v10550_v11  ;;  %v2358_v61 = vadd.f32 %v2357_v30, %v10562_v43  ;;  %8249 = vmatpush3.bf16.msra.mxu1 %v9051_v2  ;;  %8277 = vmatpush3.bf16.msra.mxu0 %v9052_v40  ;;  %v2485_v25 = vmax.f32 %v2301_v18, 0.0  ;;  %v2487_v20 = vmax.f32 %v2354_v15, 0.0  ;;  %v9059_v40 = vld [vmem:[%s12139_s15 + $0x200] sm:$0xff]   ;;  %v9062_v18 = vld [vmem:[%s12139_s15 + $0x2c8] sm:$0xff]  }
 0x9f9   : > { %v2500_v57 = vmax.f32 %v2303_v41, 0.0  ;;  %v2502_v6 = vmax.f32 %v2356_v60, 0.0  ;;  %8250 = vmatprep.subr.bf16.mxu1 %v9053_v13  ;;  %8278 = vmatprep.subr.bf16.mxu0 %v9054_v10  ;;  %v9061_v10 = vld [vmem:[%s12139_s15 + $0x248] sm:$0xff]   ;;  %v10636_v15 = vrot.slane %v10520_v49, %v10433_v56  ;;  %v10640_v51 = vrot.slane %v10520_v49, %v10435_v33 }
 0x9fa   : > { %v2501_v52 = vmax.f32 %v2305_v4, 0.0  ;;  %v2503_v9 = vmax.f32 %v2358_v61, 0.0  ;;  %v10648_v30 = vrot.slane %v10520_v49, %v10437_v14 }
 0x9fb   : > { %v10610_v22 = vpack.c.bf16 %v2500_v57, %v2484_v7  ;;  %v10612_v37 = vpack.c.bf16 %v2502_v6, %v2486_v24  ;;  %v9066_v24 = vld [vmem:[%s12139_s15 + $0x2d0] sm:$0xff]  }
 0x9fc   : > { %v10614_v42 = vpack.c.bf16 %v2501_v52, %v2485_v25  ;;  %v10616_v8 = vpack.c.bf16 %v2503_v9, %v2487_v20  ;;  %8251 = vmatpush3.bf16.msra.mxu1 %v9055_v1  ;;  %8279 = vmatpush3.bf16.msra.mxu0 %v9056_v26  ;;  %v2308_v23 = vpop.f32.mrb[40].mxu1  ;;  %v2361_v39 = vpop.f32.mrb[44].mxu0 }
 0x9fd   : > { %v2309_v5 = vadd.f32 %v2308_v23, %v10540_v0  ;;  %v2362_v32 = vadd.f32 %v2361_v39, %v10546_v46  ;;  %v2310_v34 = vpop.f32.mrb[41].mxu1  ;;  %v2363_v2 = vpop.f32.mrb[45].mxu0  ;;  %8292 = vmatprep.subr.bf16.mxu1 %v9057_v38  ;;  %8320 = vmatprep.subr.bf16.mxu0 %v9058_v50 }
 0x9fe   : > { %v2311_v44 = vadd.f32 %v2310_v34, %v10550_v11  ;;  %v2364_v21 = vadd.f32 %v2363_v2, %v10562_v43  ;;  %v2312_v55 = vpop.f32.mrb[42].mxu1  ;;  %v2365_v13 = vpop.f32.mrb[46].mxu0 }
 0x9ff   : > { %v2313_v53 = vadd.f32 %v2312_v55, %v10540_v0  ;;  %v2366_v41 = vadd.f32 %v2365_v13, %v10546_v46  ;;  %3734 = vmatmul.mubr.bf16.vlgmr.msra.gmra.mrb[60].mxu1 %v10513_v63  ;;  %3783 = vmatmul.mubr.bf16.vlgmr.msra.gmra.mrb[64].mxu0 %v10515_v48  ;;  %v2314_v60 = vpop.f32.mrb[43].mxu1  ;;  %v2367_v28 = vpop.f32.mrb[47].mxu0  ;;  %v10656_v0 = vrot.slane %v10520_v49, %v10445_v19  ;;  %v2516_v63 = vmax.f32 %v2309_v5, 0.0  ;;  %v9065_v49 = vld [vmem:[%s12139_s15 + $0x250] sm:$0xff]  }
 0xa00   : > { %v2315_v4 = vadd.f32 %v2314_v60, %v10550_v11  ;;  %v2368_v61 = vadd.f32 %v2367_v28, %v10562_v43  ;;  %3741 = vmatprep.mubr.bf16.mxu1 %v10574_v59  ;;  %3790 = vmatprep.mubr.bf16.mxu0 %v10576_v62  ;;  %v2518_v48 = vmax.f32 %v2362_v32, 0.0  ;;  %v9063_v11 = vld [vmem:[%s12139_s15 + $0x208] sm:$0xff]   ;;  %v2517_v59 = vmax.f32 %v2311_v44, 0.0  ;;  %v9067_v5 = vld [vmem:[%s12139_s15 + $0x210] sm:$0xff]   ;;  %v9069_v44 = vld [vmem:[%s12139_s15 + $0x258] sm:$0xff]  }
 0xa01   : > { %v2532_v46 = vmax.f32 %v2313_v53, 0.0  ;;  %v2534_v1 = vmax.f32 %v2366_v41, 0.0  ;;  %8293 = vmatpush3.bf16.msra.mxu1 %v9059_v40  ;;  %8321 = vmatpush3.bf16.msra.mxu0 %v9060_v58  ;;  %v9064_v43 = vld [vmem:[%s12139_s15 + $0x288] sm:$0xff]   ;;  %v2519_v62 = vmax.f32 %v2364_v21, 0.0  ;;  %v9068_v32 = vld [vmem:[%s12139_s15 + $0x290] sm:$0xff]   ;;  %v9070_v21 = vld [vmem:[%s12139_s15 + $0x2d8] sm:$0xff]  }
 0xa02   : > { %v2533_v26 = vmax.f32 %v2315_v4, 0.0  ;;  %v2535_v7 = vmax.f32 %v2368_v61, 0.0  ;;  %8294 = vmatprep.subr.bf16.mxu1 %v9061_v10  ;;  %8322 = vmatprep.subr.bf16.mxu0 %v9062_v18 }
 0xa03   : > { %v10670_v57 = vpack.c.bf16 %v2532_v46, %v2516_v63  ;;  %v10672_v6 = vpack.c.bf16 %v2534_v1, %v2518_v48  ;;  %v9074_v1 = vld [vmem:[%s12139_s15 + $0x2e0] sm:$0xff]  }
 0xa04   : > { %v10674_v38 = vpack.c.bf16 %v2533_v26, %v2517_v59  ;;  %v10676_v50 = vpack.c.bf16 %v2535_v7, %v2519_v62  ;;  %v2404_v25 = vpop.f32.mrb[44].mxu1  ;;  %v2457_v20 = vpop.f32.mrb[48].mxu0 }
 0xa05   : > { %8295 = vmatpush3.bf16.msra.mxu1 %v9063_v11  ;;  %8323 = vmatpush3.bf16.msra.mxu0 %v9064_v43  ;;  %v2405_v52 = vadd.f32 %v2404_v25, %v10636_v15  ;;  %v2458_v9 = vadd.f32 %v2457_v20, %v10640_v51  ;;  %v2406_v23 = vpop.f32.mrb[45].mxu1  ;;  %v2459_v39 = vpop.f32.mrb[49].mxu0 }
 0xa06   : > { %v2407_v34 = vadd.f32 %v2406_v23, %v10648_v30  ;;  %v2460_v2 = vadd.f32 %v2459_v39, %v10656_v0  ;;  %v2408_v40 = vpop.f32.mrb[46].mxu1  ;;  %v2461_v58 = vpop.f32.mrb[50].mxu0  ;;  %8296 = vmatprep.subr.bf16.mxu1 %v9065_v49  ;;  %8324 = vmatprep.subr.bf16.mxu0 %v9066_v24 }
 0xa07   : > { %v2409_v55 = vadd.f32 %v2408_v40, %v10636_v15  ;;  %v2462_v13 = vadd.f32 %v2461_v58, %v10640_v51  ;;  %3742 = vmatmul.mubr.bf16.gmra.mrb[64].mxu1 %v10570_v47  ;;  %3791 = vmatmul.mubr.bf16.gmra.mrb[68].mxu0 %v10572_v17  ;;  %v2410_v10 = vpop.f32.mrb[47].mxu1  ;;  %v2463_v18 = vpop.f32.mrb[51].mxu0  ;;  %v2488_v60 = vmax.f32 %v2405_v52, 0.0  ;;  %v2490_v28 = vmax.f32 %v2458_v9, 0.0  ;;  %v9071_v47 = vld [vmem:[%s12139_s15 + $0x218] sm:$0xff]   ;;  %v9075_v52 = vld [vmem:[%s12139_s15 + $0x220] sm:$0xff]  }
 0xa08   : > { %v2411_v53 = vadd.f32 %v2410_v10, %v10648_v30  ;;  %v2464_v41 = vadd.f32 %v2463_v18, %v10656_v0  ;;  %3831 = vmatprep.mubr.bf16.mxu1 %v10614_v42  ;;  %3880 = vmatprep.mubr.bf16.mxu0 %v10616_v8  ;;  %v9072_v17 = vld [vmem:[%s12139_s15 + $0x298] sm:$0xff]   ;;  %v2489_v63 = vmax.f32 %v2407_v34, 0.0  ;;  %v2491_v48 = vmax.f32 %v2460_v2, 0.0  ;;  %v9073_v8 = vld [vmem:[%s12139_s15 + $0x260] sm:$0xff]   ;;  %v9077_v34 = vld [vmem:[%s12139_s15 + $0x268] sm:$0xff]  }
 0xa09   : > { %v2504_v4 = vmax.f32 %v2409_v55, 0.0  ;;  %v2506_v61 = vmax.f32 %v2462_v13, 0.0  ;;  %8297 = vmatpush3.bf16.msra.mxu1 %v9067_v5  ;;  %8325 = vmatpush3.bf16.msra.mxu0 %v9068_v32  ;;  %v9076_v9 = vld [vmem:[%s12139_s15 + $0x2a0] sm:$0xff]   ;;  %v9078_v2 = vld [vmem:[%s12139_s15 + $0x2e8] sm:$0xff]  }
 0xa0a   : > { %v2505_v46 = vmax.f32 %v2411_v53, 0.0  ;;  %v2507_v42 = vmax.f32 %v2464_v41, 0.0  ;;  %8298 = vmatprep.subr.bf16.mxu1 %v9069_v44  ;;  %8326 = vmatprep.subr.bf16.mxu0 %v9070_v21 }
 0xa0b   : > { %v10714_v11 = vpack.c.bf16 %v2504_v4, %v2488_v60  ;;  %v10716_v43 = vpack.c.bf16 %v2506_v61, %v2490_v28  ;;  %v9079_v60 = vld [vmem:[%s12139_s15 + $0x228] sm:$0xff]   ;;  %v9082_v61 = vld [vmem:[%s12139_s15 + $0x2f0] sm:$0xff]  }
 0xa0c   : > { %v10718_v59 = vpack.c.bf16 %v2505_v46, %v2489_v63  ;;  %v10720_v62 = vpack.c.bf16 %v2507_v42, %v2491_v48  ;;  %v2414_v26 = vpop.f32.mrb[48].mxu1  ;;  %v2467_v7 = vpop.f32.mrb[52].mxu0  ;;  %v9083_v46 = vld [vmem:[%s12139_s15 + $0x230] sm:$0xff]  }
 0xa0d   : > { %8299 = vmatpush3.bf16.msra.mxu1 %v9071_v47  ;;  %8327 = vmatpush3.bf16.msra.mxu0 %v9072_v17  ;;  %v2415_v49 = vadd.f32 %v2414_v26, %v10636_v15  ;;  %v2468_v24 = vadd.f32 %v2467_v7, %v10640_v51  ;;  %v2416_v25 = vpop.f32.mrb[49].mxu1  ;;  %v2469_v20 = vpop.f32.mrb[53].mxu0  ;;  %v9084_v42 = vld [vmem:[%s12139_s15 + $0x2b0] sm:$0xff]   ;;  %v9087_v26 = vld [vmem:[%s12139_s15 + $0x238] sm:$0xff]  }
 0xa0e   : > { %v2417_v23 = vadd.f32 %v2416_v25, %v10648_v30  ;;  %v2470_v39 = vadd.f32 %v2469_v20, %v10656_v0  ;;  %v2418_v5 = vpop.f32.mrb[50].mxu1  ;;  %v2471_v32 = vpop.f32.mrb[54].mxu0  ;;  %8300 = vmatprep.subr.bf16.mxu1 %v9073_v8  ;;  %8328 = vmatprep.subr.bf16.mxu0 %v9074_v1  ;;  %v9085_v8 = vld [vmem:[%s12139_s15 + $0x278] sm:$0xff]   ;;  %v9091_v25 = vld [vmem:[%s12139_s15 + $0x300] sm:$0xff]  }
 0xa0f   : > { %v2419_v40 = vadd.f32 %v2418_v5, %v10636_v15  ;;  %v2472_v58 = vadd.f32 %v2471_v32, %v10640_v51  ;;  %v2420_v44 = vpop.f32.mrb[51].mxu1  ;;  %v2473_v21 = vpop.f32.mrb[55].mxu0  ;;  %v2520_v10 = vmax.f32 %v2415_v49, 0.0  ;;  %v2522_v18 = vmax.f32 %v2468_v24, 0.0  ;;  %v9080_v15 = vld [vmem:[%s12139_s15 + $0x2a8] sm:$0xff]   ;;  %v9086_v1 = vld [vmem:[%s12139_s15 + $0x2f8] sm:$0xff]  }
 0xa10   : > { %v2421_v55 = vadd.f32 %v2420_v44, %v10648_v30  ;;  %v2474_v13 = vadd.f32 %v2473_v21, %v10656_v0  ;;  %v2521_v51 = vmax.f32 %v2417_v23, 0.0  ;;  %v2523_v28 = vmax.f32 %v2470_v39, 0.0  ;;  %v9081_v0 = vld [vmem:[%s12139_s15 + $0x270] sm:$0xff]   ;;  %v9088_v7 = vld [vmem:[%s12139_s15 + $0x2b8] sm:$0xff]   ;;  %v9089_v49 = vld [vmem:[%s12139_s15 + $0x340] sm:$0xff]  }
 0xa11   : > { %v2536_v53 = vmax.f32 %v2419_v40, 0.0  ;;  %v2538_v41 = vmax.f32 %v2472_v58, 0.0  ;;  %8301 = vmatpush3.bf16.msra.mxu1 %v9075_v52  ;;  %8329 = vmatpush3.bf16.msra.mxu0 %v9076_v9  ;;  %v9090_v24 = vld [vmem:[%s12139_s15 + $0x3c0] sm:$0xff]   ;;  %v9093_v52 = vld [vmem:[%s12139_s15 + $0x348] sm:$0xff]   ;;  %v9101_v5 = vld [vmem:[%s12139_s15 + $0x358] sm:$0xff]  }
 0xa12   : > { %v2537_v4 = vmax.f32 %v2421_v55, 0.0  ;;  %v2539_v30 = vmax.f32 %v2474_v13, 0.0  ;;  %8302 = vmatprep.subr.bf16.mxu1 %v9077_v34  ;;  %8330 = vmatprep.subr.bf16.mxu0 %v9078_v2  ;;  %v9092_v20 = vld [vmem:[%s12139_s15 + $0x380] sm:$0xff]   ;;  %v9094_v9 = vld [vmem:[%s12139_s15 + $0x3c8] sm:$0xff]   ;;  %v9102_v32 = vld [vmem:[%s12139_s15 + $0x3d8] sm:$0xff]  }
 0xa13   : > { %v10754_v47 = vpack.c.bf16 %v2536_v53, %v2520_v10  ;;  %v10756_v17 = vpack.c.bf16 %v2538_v41, %v2522_v18  ;;  %v9095_v23 = vld [vmem:[%s12139_s15 + $0x308] sm:$0xff]   ;;  %v9103_v34 = vld [vmem:[%s12139_s15 + $0x318] sm:$0xff]   ;;  %v9113_v55 = vld [vmem:[%s12139_s15 + $0x370] sm:$0xff]  }
 0xa14   : > { %v10758_v63 = vpack.c.bf16 %v2537_v4, %v2521_v51  ;;  %v10760_v48 = vpack.c.bf16 %v2539_v30, %v2523_v28  ;;  %v9096_v39 = vld [vmem:[%s12139_s15 + $0x388] sm:$0xff]   ;;  %v9104_v2 = vld [vmem:[%s12139_s15 + $0x398] sm:$0xff]   ;;  %v9114_v13 = vld [vmem:[%s12139_s15 + $0x3f0] sm:$0xff]  }
 0xa15   : > { %8303 = vmatpush3.bf16.msra.mxu1 %v9079_v60  ;;  %8331 = vmatpush3.bf16.msra.mxu0 %v9080_v15  ;;  %v9109_v40 = vld [vmem:[%s12139_s15 + $0x368] sm:$0xff]   ;;  %v9115_v10 = vld [vmem:[%s12139_s15 + $0x330] sm:$0xff]   ;;  %v9117_v53 = vld [vmem:[%s12139_s15 + $0x378] sm:$0xff]  }
 0xa16   : > { %8304 = vmatprep.subr.bf16.mxu1 %v9081_v0  ;;  %8332 = vmatprep.subr.bf16.mxu0 %v9082_v61  ;;  %v9110_v58 = vld [vmem:[%s12139_s15 + $0x3e8] sm:$0xff]   ;;  %v9116_v18 = vld [vmem:[%s12139_s15 + $0x3b0] sm:$0xff]   ;;  %v9118_v41 = vld [vmem:[%s12139_s15 + $0x3f8] sm:$0xff]  }
 0xa17   : > { %v9111_v44 = vld [vmem:[%s12139_s15 + $0x328] sm:$0xff]   ;;  %v9119_v60 = vld [vmem:[%s12139_s15 + $0x338] sm:$0xff]   ;;  %v7458_v4 = vld [vmem:[%s12140_s16] ss:$0 sm:$0xff] }
 0xa18   : > { %v9112_v21 = vld [vmem:[%s12139_s15 + $0x3a8] sm:$0xff]   ;;  %v9120_v15 = vld [vmem:[%s12139_s15 + $0x3b8] sm:$0xff]  }
 0xa19   : > { %8305 = vmatpush3.bf16.msra.mxu1 %v9083_v46  ;;  %8333 = vmatpush3.bf16.msra.mxu0 %v9084_v42 }
 0xa1a   : > { %8306 = vmatprep.subr.bf16.mxu1 %v9085_v8  ;;  %8334 = vmatprep.subr.bf16.mxu0 %v9086_v1 }
 0xa1d   : > { %8307 = vmatpush3.bf16.msra.mxu1 %v9087_v26  ;;  %8335 = vmatpush3.bf16.msra.mxu0 %v9088_v7 }
 0xa1e   : > { %8348 = vmatprep.subr.bf16.mxu1 %v9089_v49  ;;  %8376 = vmatprep.subr.bf16.mxu0 %v9090_v24 }
 0xa20   : > { %3832 = vmatmul.mubr.bf16.vlgmr.msra.gmra.mrb[68].mxu1 %v10610_v22  ;;  %3881 = vmatmul.mubr.bf16.vlgmr.msra.gmra.mrb[72].mxu0 %v10612_v37  ;;  %v9097_v22 = vld [vmem:[%s12139_s15 + $0x350] sm:$0xff]  }
 0xa21   : > { %3839 = vmatprep.mubr.bf16.mxu1 %v10674_v38  ;;  %3888 = vmatprep.mubr.bf16.mxu0 %v10676_v50  ;;  %v9098_v37 = vld [vmem:[%s12139_s15 + $0x3d0] sm:$0xff]  }
 0xa22   : > { %8349 = vmatpush3.bf16.msra.mxu1 %v9091_v25  ;;  %8377 = vmatpush3.bf16.msra.mxu0 %v9092_v20  ;;  %v9099_v38 = vld [vmem:[%s12139_s15 + $0x310] sm:$0xff]  }
 0xa23   : > { %8350 = vmatprep.subr.bf16.mxu1 %v9093_v52  ;;  %8378 = vmatprep.subr.bf16.mxu0 %v9094_v9  ;;  %v9100_v50 = vld [vmem:[%s12139_s15 + $0x390] sm:$0xff]  }
 0xa26   : > { %8351 = vmatpush3.bf16.msra.mxu1 %v9095_v23  ;;  %8379 = vmatpush3.bf16.msra.mxu0 %v9096_v39 }
 0xa27   : > { %8352 = vmatprep.subr.bf16.mxu1 %v9097_v22  ;;  %8380 = vmatprep.subr.bf16.mxu0 %v9098_v37 }
 0xa28   : > { %3840 = vmatmul.mubr.bf16.gmra.mrb[72].mxu1 %v10670_v57  ;;  %3889 = vmatmul.mubr.bf16.gmra.mrb[76].mxu0 %v10672_v6  ;;  %v9105_v57 = vld [vmem:[%s12139_s15 + $0x360] sm:$0xff]  }
 0xa29   : > { %3929 = vmatprep.mubr.bf16.mxu1 %v10718_v59  ;;  %3978 = vmatprep.mubr.bf16.mxu0 %v10720_v62  ;;  %v9106_v6 = vld [vmem:[%s12139_s15 + $0x3e0] sm:$0xff]  }
 0xa2a   : > { %8353 = vmatpush3.bf16.msra.mxu1 %v9099_v38  ;;  %8381 = vmatpush3.bf16.msra.mxu0 %v9100_v50  ;;  %v9107_v59 = vld [vmem:[%s12139_s15 + $0x320] sm:$0xff]  }
 0xa2b   : > { %8354 = vmatprep.subr.bf16.mxu1 %v9101_v5  ;;  %8382 = vmatprep.subr.bf16.mxu0 %v9102_v32  ;;  %v9108_v62 = vld [vmem:[%s12139_s15 + $0x3a0] sm:$0xff]  }
 0xa2e   : > { %8355 = vmatpush3.bf16.msra.mxu1 %v9103_v34  ;;  %8383 = vmatpush3.bf16.msra.mxu0 %v9104_v2 }
 0xa2f   : > { %8356 = vmatprep.subr.bf16.mxu1 %v9105_v57  ;;  %8384 = vmatprep.subr.bf16.mxu0 %v9106_v6 }
 0xa32   : > { %8357 = vmatpush3.bf16.msra.mxu1 %v9107_v59  ;;  %8385 = vmatpush3.bf16.msra.mxu0 %v9108_v62 }
 0xa33   : > { %8358 = vmatprep.subr.bf16.mxu1 %v9109_v40  ;;  %8386 = vmatprep.subr.bf16.mxu0 %v9110_v58 }
 0xa36   : > { %8359 = vmatpush3.bf16.msra.mxu1 %v9111_v44  ;;  %8387 = vmatpush3.bf16.msra.mxu0 %v9112_v21 }
 0xa37   : > { %8360 = vmatprep.subr.bf16.mxu1 %v9113_v55  ;;  %8388 = vmatprep.subr.bf16.mxu0 %v9114_v13 }
 0xa3a   : > { %8361 = vmatpush3.bf16.msra.mxu1 %v9115_v10  ;;  %8389 = vmatpush3.bf16.msra.mxu0 %v9116_v18 }
 0xa3b   : > { %8362 = vmatprep.subr.bf16.mxu1 %v9117_v53  ;;  %8390 = vmatprep.subr.bf16.mxu0 %v9118_v41 }
 0xa3e   : > { %8363 = vmatpush3.bf16.msra.mxu1 %v9119_v60  ;;  %8391 = vmatpush3.bf16.msra.mxu0 %v9120_v15 }
 0xa41   : > { %3930 = vmatmul.mubr.bf16.vlgmr.msra.gmra.mrb[76].mxu1 %v10714_v11  ;;  %3979 = vmatmul.mubr.bf16.vlgmr.msra.gmra.mrb[80].mxu0 %v10716_v43 }
 0xa42   : > { %3937 = vmatprep.mubr.bf16.mxu1 %v10758_v63  ;;  %3986 = vmatprep.mubr.bf16.mxu0 %v10760_v48 }
 0xa49   : > { %3938 = vmatmul.mubr.bf16.gmra.mrb[80].mxu1 %v10754_v47  ;;  %3987 = vmatmul.mubr.bf16.gmra.mrb[84].mxu0 %v10756_v17 }
 0xab2   : > { %v8196_v51 = vpop.f32.mrb[52].mxu1  ;;  %v8224_v28 = vpop.f32.mrb[56].mxu0 }
 0xab3   : > { %v8197_v30 = vpop.f32.mrb[53].mxu1  ;;  %v8225_v0 = vpop.f32.mrb[57].mxu0 }
 0xab4   : > { %v8198_v61 = vadd.f32 %v8197_v30, %v8196_v51  ;;  %v8226_v11 = vadd.f32 %v8225_v0, %v8224_v28  ;;  %v8199_v46 = vpop.f32.mrb[54].mxu1  ;;  %v8227_v43 = vpop.f32.mrb[58].mxu0 }
 0xab5   : > { %v8200_v42 = vpop.f32.mrb[55].mxu1  ;;  %v8228_v63 = vpop.f32.mrb[59].mxu0 }
 0xab6   : > { %v3638_v8 = vadd.f32 %v8198_v61, %v7458_v4  ;;  %v8201_v48 = vadd.f32 %v8200_v42, %v8199_v46  ;;  %v8229_v1 = vadd.f32 %v8228_v63, %v8227_v43 }
 0xab8   : > { %v3687_v47 = vadd.f32 %v8226_v11, %v3638_v8  ;;  %v3641_v26 = vadd.f32 %v8201_v48, %v7458_v4 }
 0xaba   : > { %v3690_v17 = vadd.f32 %v8229_v1, %v3641_v26  ;;  %v8202_v7 = vpop.f32.mrb[56].mxu1  ;;  %v8230_v49 = vpop.f32.mrb[60].mxu0 }
 0xabb   : > { %v8203_v24 = vpop.f32.mrb[57].mxu1  ;;  %v8231_v25 = vpop.f32.mrb[61].mxu0 }
 0xabc   : > { %v8204_v20 = vadd.f32 %v8203_v24, %v8202_v7  ;;  %v8232_v52 = vadd.f32 %v8231_v25, %v8230_v49  ;;  %v8205_v9 = vpop.f32.mrb[58].mxu1  ;;  %v8233_v23 = vpop.f32.mrb[62].mxu0 }
 0xabd   : > { %v8206_v39 = vpop.f32.mrb[59].mxu1  ;;  %v8234_v22 = vpop.f32.mrb[63].mxu0 }
 0xabe   : > { %v3646_v37 = vadd.f32 %v8204_v20, %v7458_v4  ;;  %v8207_v38 = vadd.f32 %v8206_v39, %v8205_v9  ;;  %v8235_v50 = vadd.f32 %v8234_v22, %v8233_v23 }
 0xac0   : > { %v3695_v5 = vadd.f32 %v8232_v52, %v3646_v37  ;;  %v3649_v32 = vadd.f32 %v8207_v38, %v7458_v4 }
 0xac2   : > { %v3698_v34 = vadd.f32 %v8235_v50, %v3649_v32 }
 0xad2   : > { %v8252_v2 = vpop.f32.mrb[60].mxu1  ;;  %v8280_v57 = vpop.f32.mrb[64].mxu0 }
 0xad3   : > { %v8253_v6 = vpop.f32.mrb[61].mxu1  ;;  %v8281_v59 = vpop.f32.mrb[65].mxu0 }
 0xad4   : > { %v8254_v62 = vadd.f32 %v8253_v6, %v8252_v2  ;;  %v8282_v40 = vadd.f32 %v8281_v59, %v8280_v57  ;;  %v8255_v58 = vpop.f32.mrb[62].mxu1  ;;  %v8283_v44 = vpop.f32.mrb[66].mxu0 }
 0xad5   : > { %v8256_v21 = vpop.f32.mrb[63].mxu1  ;;  %v8284_v55 = vpop.f32.mrb[67].mxu0 }
 0xad6   : > { %v3736_v13 = vadd.f32 %v8254_v62, %v3687_v47  ;;  %v8257_v10 = vadd.f32 %v8256_v21, %v8255_v58  ;;  %v8285_v18 = vadd.f32 %v8284_v55, %v8283_v44 }
 0xad8   : > { %v3785_v53 = vadd.f32 %v8282_v40, %v3736_v13  ;;  %v3739_v41 = vadd.f32 %v8257_v10, %v3690_v17 }
 0xada   : > { %v3788_v60 = vadd.f32 %v8285_v18, %v3739_v41  ;;  %v8258_v15 = vpop.f32.mrb[64].mxu1  ;;  %v8286_v51 = vpop.f32.mrb[68].mxu0 }
 0xadb   : > { %v8259_v28 = vpop.f32.mrb[65].mxu1  ;;  %v8287_v4 = vpop.f32.mrb[69].mxu0 }
 0xadc   : > { %v8260_v30 = vadd.f32 %v8259_v28, %v8258_v15  ;;  %v8288_v0 = vadd.f32 %v8287_v4, %v8286_v51  ;;  %v8261_v61 = vpop.f32.mrb[66].mxu1  ;;  %v8289_v11 = vpop.f32.mrb[70].mxu0 }
 0xadd   : > { %v8262_v46 = vpop.f32.mrb[67].mxu1  ;;  %v8290_v43 = vpop.f32.mrb[71].mxu0 }
 0xade   : > { %v3744_v42 = vadd.f32 %v8260_v30, %v3695_v5  ;;  %v8263_v63 = vadd.f32 %v8262_v46, %v8261_v61  ;;  %v8291_v8 = vadd.f32 %v8290_v43, %v8289_v11 }
 0xae0   : > { %v3793_v48 = vadd.f32 %v8288_v0, %v3744_v42  ;;  %v3747_v1 = vadd.f32 %v8263_v63, %v3698_v34 }
 0xae2   : > { %v3796_v47 = vadd.f32 %v8291_v8, %v3747_v1 }
 0xaf3   : > { %v8308_v26 = vpop.f32.mrb[68].mxu1  ;;  %v8336_v7 = vpop.f32.mrb[72].mxu0 }
 0xaf4   : > { %v8309_v17 = vpop.f32.mrb[69].mxu1  ;;  %v8337_v49 = vpop.f32.mrb[73].mxu0 }
 0xaf5   : > { %v8310_v24 = vadd.f32 %v8309_v17, %v8308_v26  ;;  %v8338_v25 = vadd.f32 %v8337_v49, %v8336_v7  ;;  %v8311_v20 = vpop.f32.mrb[70].mxu1  ;;  %v8339_v52 = vpop.f32.mrb[74].mxu0 }
 0xaf6   : > { %v8312_v9 = vpop.f32.mrb[71].mxu1  ;;  %v8340_v23 = vpop.f32.mrb[75].mxu0 }
 0xaf7   : > { %v3834_v39 = vadd.f32 %v8310_v24, %v3785_v53  ;;  %v8313_v22 = vadd.f32 %v8312_v9, %v8311_v20  ;;  %v8341_v37 = vadd.f32 %v8340_v23, %v8339_v52 }
 0xaf9   : > { %v3883_v38 = vadd.f32 %v8338_v25, %v3834_v39  ;;  %v3837_v50 = vadd.f32 %v8313_v22, %v3788_v60 }
 0xafb   : > { %v3886_v5 = vadd.f32 %v8341_v37, %v3837_v50  ;;  %v8314_v32 = vpop.f32.mrb[72].mxu1  ;;  %v8342_v2 = vpop.f32.mrb[76].mxu0 }
 0xafc   : > { %v8315_v34 = vpop.f32.mrb[73].mxu1  ;;  %v8343_v57 = vpop.f32.mrb[77].mxu0 }
 0xafd   : > { %v8316_v6 = vadd.f32 %v8315_v34, %v8314_v32  ;;  %v8344_v59 = vadd.f32 %v8343_v57, %v8342_v2  ;;  %v8317_v62 = vpop.f32.mrb[74].mxu1  ;;  %v8345_v40 = vpop.f32.mrb[78].mxu0 }
 0xafe   : > { %v8318_v58 = vpop.f32.mrb[75].mxu1  ;;  %v8346_v44 = vpop.f32.mrb[79].mxu0 }
 0xaff   : > { %v3842_v21 = vadd.f32 %v8316_v6, %v3793_v48  ;;  %v8319_v55 = vadd.f32 %v8318_v58, %v8317_v62  ;;  %v8347_v13 = vadd.f32 %v8346_v44, %v8345_v40 }
 0xb01   : > { %v3891_v10 = vadd.f32 %v8344_v59, %v3842_v21  ;;  %v3845_v18 = vadd.f32 %v8319_v55, %v3796_v47 }
 0xb03   : > { %v3894_v53 = vadd.f32 %v8347_v13, %v3845_v18 }
 0xb14   : > { %v8364_v41 = vpop.f32.mrb[76].mxu1  ;;  %v8392_v15 = vpop.f32.mrb[80].mxu0 }
 0xb15   : > { %v8365_v60 = vpop.f32.mrb[77].mxu1  ;;  %v8393_v51 = vpop.f32.mrb[81].mxu0 }
 0xb16   : > { %v8366_v28 = vadd.f32 %v8365_v60, %v8364_v41  ;;  %v8394_v4 = vadd.f32 %v8393_v51, %v8392_v15  ;;  %v8367_v30 = vpop.f32.mrb[78].mxu1  ;;  %v8395_v0 = vpop.f32.mrb[82].mxu0 }
 0xb17   : > { %v8368_v61 = vpop.f32.mrb[79].mxu1  ;;  %v8396_v11 = vpop.f32.mrb[83].mxu0 }
 0xb18   : > { %v3932_v46 = vadd.f32 %v8366_v28, %v3883_v38  ;;  %v8369_v43 = vadd.f32 %v8368_v61, %v8367_v30  ;;  %v8397_v42 = vadd.f32 %v8396_v11, %v8395_v0  ;;  %v9121_v30 = vld [vmem:[%s12185_s1 + $0x10] sm:$0xff]   ;;  %v9122_v0 = vld [vmem:[%s12185_s1 + $0x18] sm:$0xff]  }
 0xb19   : > { %8771 = vmatprep.subr.bf16.mxu1 %v9121_v30 }
 0xb1a   : > { %v3981_v63 = vadd.f32 %v8394_v4, %v3932_v46  ;;  %v3935_v8 = vadd.f32 %v8369_v43, %v3886_v5  ;;  %8772 = vmatpush3.bf16.msra.mxu1 %v9121_v30 }
 0xb1b   : > { %8773 = vmatprep.subr.bf16.mxu1 %v9122_v0 }
 0xb1c   : > { %v10894_v48 = vadd.f32 %v3981_v63, %v10109_v29  ;;  %v3984_v1 = vadd.f32 %v8397_v42, %v3935_v8  ;;  %v8370_v47 = vpop.f32.mrb[80].mxu1  ;;  %v8398_v26 = vpop.f32.mrb[84].mxu0 }
 0xb1d   : > { %v8371_v7 = vpop.f32.mrb[81].mxu1  ;;  %v8399_v17 = vpop.f32.mrb[85].mxu0 }
 0xb1e   : > { %v10897_v49 = vadd.f32 %v3984_v1, %v10115_v27  ;;  %v8372_v24 = vadd.f32 %v8371_v7, %v8370_v47  ;;  %v8400_v25 = vadd.f32 %v8399_v17, %v8398_v26  ;;  %v8373_v20 = vpop.f32.mrb[82].mxu1  ;;  %v8401_v52 = vpop.f32.mrb[86].mxu0  ;;  %v4003_v9 = vsel %vm780_vm1, %v10894_v48, 0.0  ;;  %8774 = vmatpush3.bf16.msra.mxu1 %v9122_v0 }
 0xb1f   : > { %v8374_v23 = vpop.f32.mrb[83].mxu1  ;;  %v8402_v39 = vpop.f32.mrb[87].mxu0  ;;  %4004 = vadd.xlane.f32.xlu0 %v4003_v9 }
 0xb20   : > { %v3940_v29 = vadd.f32 %v8372_v24, %v3891_v10  ;;  %v8375_v22 = vadd.f32 %v8374_v23, %v8373_v20  ;;  %v8403_v37 = vadd.f32 %v8402_v39, %v8401_v52  ;;  %v4006_v38 = vsel %vm780_vm1, %v10897_v49, 0.0  ;;  %v7590_v39 = vld [vmem:[%s12134_s10 + $0x1] ss:$0 sm:$0xff] }
 0xb21   : > { %4007 = vadd.xlane.f32.xlu1 %v4006_v38 }
 0xb22   : > { %v3989_v50 = vadd.f32 %v8400_v25, %v3940_v29  ;;  %v3943_v27 = vadd.f32 %v8375_v22, %v3894_v53  ;;  %v7589_v25 = vld [vmem:[%s12133_s9 + $0x1] ss:$0 sm:$0xff] }
 0xb24   : > { %v10904_v5 = vadd.f32 %v3989_v50, %v10112_v45  ;;  %v3992_v32 = vadd.f32 %v8403_v37, %v3943_v27 }
 0xb26   : > { %v10907_v2 = vadd.f32 %v3992_v32, %v10120_v3  ;;  %v4009_v34 = vsel %vm780_vm1, %v10904_v5, 0.0 }
 0xb27   : > { %4010 = vadd.xlane.f32.xlu0 %v4009_v34 }
 0xb28   : > { %v4012_v57 = vsel %vm780_vm1, %v10907_v2, 0.0 }
 0xb29   : > { %4013 = vadd.xlane.f32.xlu1 %v4012_v57 }
 0xbac   : > { %v4005_v6 = vpop.xlane.xlu0 %4004 }
 0xbad   : > { %v4015_v59 = vmul.f32 0.03125, %v4005_v6 }
 0xbae   : > { %v4008_v62 = vpop.xlane.xlu1 %4007 }
 0xbaf   : > { %v4019_v40 = vsub.f32 %v10894_v48, %v4015_v59  ;;  %v4016_v58 = vmul.f32 0.03125, %v4008_v62 }
 0xbb1   : > { %v4020_v45 = vsub.f32 %v10897_v49, %v4016_v58  ;;  %v4023_v44 = vmul.f32 %v4019_v40, %v4019_v40  ;;  %v7596_v58 = vld [vmem:[%s12130_s6 + $0x1] ss:$0 sm:$0xff] }
 0xbb3   : > { %v4027_v3 = vsel %vm780_vm1, %v4023_v44, 0.0  ;;  %v4024_v21 = vmul.f32 %v4020_v45, %v4020_v45 }
 0xbb4   : > { %4028 = vadd.xlane.f32.xlu0 %v4027_v3  ;;  %v4011_v55 = vpop.xlane.xlu0 %4010 }
 0xbb5   : > { %v4017_v13 = vmul.f32 0.03125, %v4011_v55  ;;  %v4030_v10 = vsel %vm780_vm1, %v4024_v21, 0.0 }
 0xbb6   : > { %4031 = vadd.xlane.f32.xlu1 %v4030_v10  ;;  %v4014_v18 = vpop.xlane.xlu1 %4013 }
 0xbb7   : > { %v4021_v53 = vsub.f32 %v10904_v5, %v4017_v13  ;;  %v4018_v41 = vmul.f32 0.03125, %v4014_v18 }
 0xbb9   : > { %v4022_v15 = vsub.f32 %v10907_v2, %v4018_v41  ;;  %v4025_v60 = vmul.f32 %v4021_v53, %v4021_v53 }
 0xbbb   : > { %v4033_v51 = vsel %vm780_vm1, %v4025_v60, 0.0  ;;  %v4026_v28 = vmul.f32 %v4022_v15, %v4022_v15 }
 0xbbc   : > { %4034 = vadd.xlane.f32.xlu0 %v4033_v51 }
 0xbbd   : > { %v4036_v4 = vsel %vm780_vm1, %v4026_v28, 0.0 }
 0xbbe   : > { %4037 = vadd.xlane.f32.xlu1 %v4036_v4 }
 0xc41   : > { %v4029_v61 = vpop.xlane.xlu0 %4028 }
 0xc42   : > { %v4039_v11 = vmul.f32 0.03125, %v4029_v61 }
 0xc43   : > { %v4032_v46 = vpop.xlane.xlu1 %4031 }
 0xc44   : > { %v4043_v43 = vadd.f32 1e-05, %v4039_v11  ;;  %v4040_v42 = vmul.f32 0.03125, %v4032_v46 }
 0xc46   : > { %9335 = vrsqrt.f32 %v4043_v43  ;;  %v4044_v63 = vadd.f32 1e-05, %v4040_v42  ;;  %v10967_v43 = vld [vmem:[%s12187_s30 + $0x8] sm:$0xff] }
 0xc48   : > { %9337 = vrsqrt.f32 %v4044_v63  ;;  %v10973_v63 = vld [vmem:[%s12187_s30 + $0x10] sm:$0xff] }
 0xc49   : > { %v4035_v8 = vpop.xlane.xlu0 %4034 }
 0xc4a   : > { %v4041_v1 = vmul.f32 0.03125, %v4035_v8 }
 0xc4b   : > { %v4038_v47 = vpop.xlane.xlu1 %4037 }
 0xc4c   : > { %v4045_v26 = vadd.f32 1e-05, %v4041_v1  ;;  %v4042_v7 = vmul.f32 0.03125, %v4038_v47  ;;  %v10988_v47 = vld [vmem:[%s12187_s30 + $0x20] sm:$0xff] }
 0xc4e   : > { %9339 = vrsqrt.f32 %v4045_v26  ;;  %v4046_v17 = vadd.f32 1e-05, %v4042_v7  ;;  %v10996_v7 = vld [vmem:[%s12187_s30 + $0x28] sm:$0xff] }
 0xc50   : > { %v9336_v24 = vpop.eup %9335  ;;  %9341 = vrsqrt.f32 %v4046_v17 }
 0xc51   : > { %v4051_v20 = vmul.f32 %v9336_v24, %v4019_v40  ;;  %v11002_v24 = vld [vmem:[%s12187_s30 + $0x30] sm:$0xff] }
 0xc52   : > { %v9338_v52 = vpop.eup %9337 }
 0xc53   : > { %v4052_v9 = vmul.f32 %v9338_v52, %v4020_v45  ;;  %v4061_v23 = vmul.f32 %v7589_v25, %v4051_v20  ;;  %v11010_v20 = vld [vmem:[%s12187_s30 + $0x38] sm:$0xff] }
 0xc55   : > { %v4062_v29 = vmul.f32 %v7589_v25, %v4052_v9  ;;  %v4071_v22 = vadd.f32 %v7590_v39, %v4061_v23  ;;  %v11017_v9 = vld [vmem:[%s12187_s30 + $0x40] sm:$0xff] }
 0xc57   : > { %v4072_v37 = vadd.f32 %v7590_v39, %v4062_v29 }
 0xc58   : > { %v9340_v38 = vpop.eup %9339 }
 0xc59   : > { %v4053_v50 = vmul.f32 %v9340_v38, %v4021_v53  ;;  %v4075_v27 = vpack.c.bf16 %v4072_v37, %v4071_v22  ;;  %v10943_v53 = vld [vmem:[%s12187_s30] sm:$0xff]  ;;  %v11031_v22 = vld [vmem:[%s12187_s30 + $0x50] sm:$0xff]  ;;  %v11039_v38 = vld [vmem:[%s12187_s30 + $0x58] sm:$0xff] }
 0xc5a   : > { %v9342_v32 = vpop.eup %9341 }
 0xc5b   : > { %v4063_v34 = vmul.f32 %v7589_v25, %v4053_v50  ;;  %v4054_v57 = vmul.f32 %v9342_v32, %v4022_v15  ;;  %8775 = vmatprep.mubr.msk.bf16.mxu1 %vm780_vm1, %v4075_v27  ;;  %v11046_v27 = vld [vmem:[%s12187_s30 + $0x60] sm:$0xff] }
 0xc5d   : > { %v4064_v6 = vmul.f32 %v7589_v25, %v4054_v57  ;;  %v4073_v59 = vadd.f32 %v7590_v39, %v4063_v34  ;;  %v11054_v34 = vld [vmem:[%s12187_s30 + $0x68] sm:$0xff] }
 0xc5f   : > { %v4074_v62 = vadd.f32 %v7590_v39, %v4064_v6  ;;  %v11025_v39 = vld [vmem:[%s12187_s30 + $0x48] sm:$0xff]  ;;  %v11060_v6 = vld [vmem:[%s12187_s30 + $0x70] sm:$0xff] }
 0xc61   : > { %v4076_v40 = vpack.c.bf16 %v4074_v62, %v4073_v59  ;;  %v11068_v62 = vld [vmem:[%s12187_s30 + $0x78] sm:$0xff] }
 0xc63   : > { %8776 = vmatmul.mubr.msk.bf16.vlgmr.msra.gmra.mrb[84].mxu1 %vm780_vm1, %v4076_v40 }
 0xd36   : > { %v8777_v45 = vpop.f32.mrb[84].mxu1 }
 0xd37   : > { %v4142_v44 = vpop.f32.mrb[85].mxu1  ;;  %v4151_v55 = vadd.f32 %v8777_v45, %v7596_v58 }
 0xd38   : > { %v4143_v3 = vadd.f32 %v7596_v58, %v4142_v44  ;;  %v8778_v21 = vpop.f32.mrb[86].mxu1 }
 0xd39   : > { %v10938_v13 = vadd.f32 %v8778_v21, %v7596_v58  ;;  %v4145_v10 = vpop.f32.mrb[87].mxu1  ;;  %v4159_v8 = vmul.f32 %v10973_v63, %v4151_v55  ;;  %v4163_v25 = vmul.f32 %v11002_v24, %v4151_v55  ;;  %v4167_v37 = vmul.f32 %v11031_v22, %v4151_v55  ;;  %v11076_v21 = vld [vmem:[%s12190_s22] ss:$0 sm:$0xff] }
 0xd3a   : > { %v4146_v18 = vadd.f32 %v7596_v58, %v4145_v10  ;;  %v4157_v41 = vmul.f32 %v10943_v53, %v4143_v3  ;;  %v4161_v26 = vmul.f32 %v10988_v47, %v4143_v3  ;;  %v4165_v23 = vmul.f32 %v11017_v9, %v4143_v3 }
 0xd3b   : > { %v10947_v15 = vpack.i.bf16 %v10938_v13, %v4151_v55  ;;  %v4160_v1 = vmul.f32 %v10981_v35, %v10938_v13  ;;  %v4164_v52 = vmul.f32 %v11010_v20, %v10938_v13  ;;  %v4168_v50 = vmul.f32 %v11039_v38, %v10938_v13 }
 0xd3c   : > { %8787 = vmatprep.mubr.msk.f32.mxu0 %vm780_vm1, %v4157_v41  ;;  %v10950_v60 = vpack.i.bf16 %v4146_v18, %v4143_v3  ;;  %v4158_v42 = vmul.f32 %v10967_v43, %v4146_v18  ;;  %v4162_v17 = vmul.f32 %v10996_v7, %v4146_v18  ;;  %v4166_v29 = vmul.f32 %v11025_v39, %v4146_v18 }
 0xd3d   : > { %8969 = vrot.lane.b32.xlu1 %v10947_v15, %s12191_s2  ;;  %v4169_v32 = vmul.f32 %v11046_v27, %v4143_v3  ;;  %v4170_v57 = vmul.f32 %v11054_v34, %v4146_v18  ;;  %v4171_v59 = vmul.f32 %v11060_v6, %v4151_v55  ;;  %v4172_v40 = vmul.f32 %v11068_v62, %v10938_v13 }
 0xd3e   : > { %8964 = vrot.lane.b32.xlu0 %v10950_v60, %s12191_s2  ;;  %s9503_s2 = smov [#allocation2]  }
 0xd3f   : > { %s9438_s1 = sshll.u32 %s9503_s2, 4  ;;  %s9439_s1 = int_to_ptr.vmem [resolvable:$false] %s9438_s1 }
 0xd40   : > { %s9440_s0 = scalar_lea.vmem %s9439_s1, 32 }
 0xdaf   : > { %v8970_v51 = vpop.permute.xlu1 %8969 }
 0xdb0   : > { %v8965_v28 = vpop.permute.xlu0 %8964  ;;  %v8972_v4 = vunpack.i.h.bf16 %v8970_v51  ;;  %v8971_v30 = vunpack.i.l.bf16 %v8970_v51 }
 0xdb1   : > { %v8967_v0 = vunpack.i.h.bf16 %v8965_v28  ;;  %v8966_v61 = vunpack.i.l.bf16 %v8965_v28 }
 0xdb2   : > { %v8885_v46 = vpack.c.bf16 %v8972_v4, %v8971_v30 }
 0xdb3   : > { %v8879_v11 = vpack.c.bf16 %v8967_v0, %v8966_v61 }
 0xdb5   : > { %8881 = vmatprep.subr.msk.bf16.mxu0 %vm9755_vm2, %v8879_v11 }
 0xdb6   : > { %8884 = vmatpush3.bf16.xpose.msk.msra.mxu0 %vm9755_vm2, %v8879_v11 }
 0xdb7   : > { %8887 = vmatprep.subr.msk.bf16.mxu0 %vm9755_vm2, %v8885_v46 }
 0xdbe   : > { %8890 = vmatpush3.bf16.xpose.msk.msra.mxu0 %vm9755_vm2, %v8885_v46 }
 0xdc5   : > { %8788 = vmatmul.mubr.msk.f32.vlgmr.msra.gmra.mrb[88].mxu0 %vm780_vm1, %v4158_v42 }
 0xdc6   : > { %8790 = vmatprep.mubr.msk.f32.mxu0 %vm780_vm1, %v4159_v8 }
 0xdc9   : > { %8791 = vmatmul.mubr.msk.f32.gmra.mrb[90].mxu0 %vm780_vm1, %v4160_v1 }
 0xdca   : > { %8793 = vmatprep.mubr.msk.f32.mxu0 %vm780_vm1, %v4161_v26 }
 0xdcd   : > { %8794 = vmatmul.mubr.msk.f32.gmra.mrb[92].mxu0 %vm780_vm1, %v4162_v17 }
 0xdce   : > { %8796 = vmatprep.mubr.msk.f32.mxu0 %vm780_vm1, %v4163_v25 }
 0xdd1   : > { %8797 = vmatmul.mubr.msk.f32.gmra.mrb[94].mxu0 %vm780_vm1, %v4164_v52 }
 0xdd2   : > { %8799 = vmatprep.mubr.msk.f32.mxu0 %vm780_vm1, %v4165_v23 }
 0xdd5   : > { %8800 = vmatmul.mubr.msk.f32.gmra.mrb[96].mxu0 %vm780_vm1, %v4166_v29 }
 0xdd6   : > { %8802 = vmatprep.mubr.msk.f32.mxu0 %vm780_vm1, %v4167_v37 }
 0xdd9   : > { %8803 = vmatmul.mubr.msk.f32.gmra.mrb[98].mxu0 %vm780_vm1, %v4168_v50 }
 0xdda   : > { %8805 = vmatprep.mubr.msk.f32.mxu0 %vm780_vm1, %v4169_v32 }
 0xddd   : > { %8806 = vmatmul.mubr.msk.f32.gmra.mrb[100].mxu0 %vm780_vm1, %v4170_v57 }
 0xdde   : > { %8808 = vmatprep.mubr.msk.f32.mxu0 %vm780_vm1, %v4171_v59 }
 0xde1   : > { %8809 = vmatmul.mubr.msk.f32.gmra.mrb[102].mxu0 %vm780_vm1, %v4172_v40 }
 0xe98   : > { %v8789_v58 = vpop.f32.mrb[88].mxu0 }
 0xe99   : > { %v4387_v45 = vmul.f32 0.35355338, %v8789_v58  ;;  %v4307_v44 = vpop.f32.mrb[89].mxu0 }
 0xe9a   : > { %v4386_v3 = vmul.f32 0.35355338, %v4307_v44 }
 0xe9b   : > { %v11079_v55 = vadd.f32 %v11076_v21, %v4387_v45 }
 0xe9c   : > { %v8792_v10 = vpop.f32.mrb[90].mxu0  ;;  %v11082_v18 = vadd.f32 %v11076_v21, %v4386_v3 }
 0xe9d   : > { %v4389_v41 = vmul.f32 0.35355338, %v8792_v10  ;;  %v4317_v13 = vpop.f32.mrb[91].mxu0  ;;  %v4421_v51 = vsel %vm780_vm1, %v11079_v55, -inf }
 0xe9e   : > { %v4388_v28 = vmul.f32 0.35355338, %v4317_v13  ;;  %4422 = vmax.xlane.f32.xlu0 %v4421_v51  ;;  %v4418_v4 = vsel %vm780_vm1, %v11082_v18, -inf }
 0xe9f   : > { %4419 = vmax.xlane.f32.xlu1 %v4418_v4  ;;  %v11089_v30 = vadd.f32 %v11076_v21, %v4389_v41 }
 0xea0   : > { %v8795_v0 = vpop.f32.mrb[92].mxu0  ;;  %v11092_v61 = vadd.f32 %v11076_v21, %v4388_v28 }
 0xea1   : > { %v4391_v11 = vmul.f32 0.35355338, %v8795_v0  ;;  %v4327_v46 = vpop.f32.mrb[93].mxu0  ;;  %v4427_v42 = vsel %vm780_vm1, %v11089_v30, -inf }
 0xea2   : > { %v4390_v8 = vmul.f32 0.35355338, %v4327_v46  ;;  %v4424_v1 = vsel %vm780_vm1, %v11092_v61, -inf }
 0xea3   : > { %4428 = vmax.xlane.f32.xlu1 %v4427_v42  ;;  %4425 = vmax.xlane.f32.xlu0 %v4424_v1  ;;  %v11099_v26 = vadd.f32 %v11076_v21, %v4391_v11 }
 0xea4   : > { %v8798_v17 = vpop.f32.mrb[94].mxu0  ;;  %v11102_v25 = vadd.f32 %v11076_v21, %v4390_v8 }
 0xea5   : > { %v4393_v52 = vmul.f32 0.35355338, %v8798_v17  ;;  %v4337_v23 = vpop.f32.mrb[95].mxu0  ;;  %v4433_v29 = vsel %vm780_vm1, %v11099_v26, -inf }
 0xea6   : > { %v4392_v37 = vmul.f32 0.35355338, %v4337_v23  ;;  %v4430_v50 = vsel %vm780_vm1, %v11102_v25, -inf }
 0xea7   : > { %4434 = vmax.xlane.f32.xlu1 %v4433_v29  ;;  %4431 = vmax.xlane.f32.xlu0 %v4430_v50  ;;  %v11109_v32 = vadd.f32 %v11076_v21, %v4393_v52 }
 0xea8   : > { %v8801_v57 = vpop.f32.mrb[96].mxu0  ;;  %v11112_v59 = vadd.f32 %v11076_v21, %v4392_v37 }
 0xea9   : > { %v4395_v40 = vmul.f32 0.35355338, %v8801_v57  ;;  %v4347_v58 = vpop.f32.mrb[97].mxu0  ;;  %v4439_v45 = vsel %vm780_vm1, %v11109_v32, -inf }
 0xeaa   : > { %v4394_v44 = vmul.f32 0.35355338, %v4347_v58  ;;  %v4436_v3 = vsel %vm780_vm1, %v11112_v59, -inf }
 0xeab   : > { %4440 = vmax.xlane.f32.xlu1 %v4439_v45  ;;  %4437 = vmax.xlane.f32.xlu0 %v4436_v3  ;;  %v11119_v10 = vadd.f32 %v11076_v21, %v4395_v40 }
 0xeac   : > { %v8804_v41 = vpop.f32.mrb[98].mxu0  ;;  %v11122_v13 = vadd.f32 %v11076_v21, %v4394_v44 }
 0xead   : > { %v4397_v51 = vmul.f32 0.35355338, %v8804_v41  ;;  %v4357_v28 = vpop.f32.mrb[99].mxu0  ;;  %v4445_v4 = vsel %vm780_vm1, %v11119_v10, -inf }
 0xeae   : > { %v4396_v0 = vmul.f32 0.35355338, %v4357_v28  ;;  %v4442_v11 = vsel %vm780_vm1, %v11122_v13, -inf }
 0xeaf   : > { %4446 = vmax.xlane.f32.xlu1 %v4445_v4  ;;  %4443 = vmax.xlane.f32.xlu0 %v4442_v11  ;;  %v11129_v46 = vadd.f32 %v11076_v21, %v4397_v51 }
 0xeb0   : > { %v8807_v42 = vpop.f32.mrb[100].mxu0  ;;  %v11132_v8 = vadd.f32 %v11076_v21, %v4396_v0 }
 0xeb1   : > { %v4399_v1 = vmul.f32 0.35355338, %v8807_v42  ;;  %v4367_v17 = vpop.f32.mrb[101].mxu0  ;;  %v4451_v52 = vsel %vm780_vm1, %v11129_v46, -inf }
 0xeb2   : > { %v4398_v23 = vmul.f32 0.35355338, %v4367_v17  ;;  %v4448_v29 = vsel %vm780_vm1, %v11132_v8, -inf }
 0xeb3   : > { %4452 = vmax.xlane.f32.xlu1 %v4451_v52  ;;  %4449 = vmax.xlane.f32.xlu0 %v4448_v29  ;;  %v11139_v37 = vadd.f32 %v11076_v21, %v4399_v1 }
 0xeb4   : > { %v8810_v50 = vpop.f32.mrb[102].mxu0  ;;  %v11142_v57 = vadd.f32 %v11076_v21, %v4398_v23 }
 0xeb5   : > { %v4401_v40 = vmul.f32 0.35355338, %v8810_v50  ;;  %v4377_v58 = vpop.f32.mrb[103].mxu0  ;;  %v4457_v45 = vsel %vm780_vm1, %v11139_v37, -inf }
 0xeb6   : > { %v4400_v44 = vmul.f32 0.35355338, %v4377_v58  ;;  %v4454_v3 = vsel %vm780_vm1, %v11142_v57, -inf }
 0xeb7   : > { %4458 = vmax.xlane.f32.xlu1 %v4457_v45  ;;  %4455 = vmax.xlane.f32.xlu0 %v4454_v3  ;;  %v11149_v41 = vadd.f32 %v11076_v21, %v4401_v40 }
 0xeb8   : > { %v11152_v51 = vadd.f32 %v11076_v21, %v4400_v44 }
 0xeb9   : > { %v4463_v28 = vsel %vm780_vm1, %v11149_v41, -inf }
 0xeba   : > { %v4460_v4 = vsel %vm780_vm1, %v11152_v51, -inf }
 0xebb   : > { %4464 = vmax.xlane.f32.xlu1 %v4463_v28  ;;  %4461 = vmax.xlane.f32.xlu0 %v4460_v4 }
 0xf2b   : > { %v4423_v0 = vpop.xlane.xlu0 %4422 }
 0xf2c   : > { %v4467_v11 = vsub.f32 %v11079_v55, %v4423_v0  ;;  %v4420_v42 = vpop.xlane.xlu1 %4419 }
 0xf2d   : > { %v4466_v1 = vsub.f32 %v11082_v18, %v4420_v42 }
 0xf2e   : > { %v4484_v17 = vmul.f32 1.442695, %v4467_v11 }
 0xf2f   : > { %v4482_v52 = vmul.f32 1.442695, %v4466_v1 }
 0xf30   : > { %9343 = vpow2.f32 %v4484_v17  ;;  %v4429_v23 = vpop.xlane.xlu1 %4428  ;;  %v4426_v21 = vpop.xlane.xlu0 %4425 }
 0xf31   : > { %9345 = vpow2.f32 %v4482_v52  ;;  %v4469_v29 = vsub.f32 %v11089_v30, %v4429_v23  ;;  %v4468_v50 = vsub.f32 %v11092_v61, %v4426_v21 }
 0xf33   : > { %v4488_v40 = vmul.f32 1.442695, %v4469_v29  ;;  %v4486_v58 = vmul.f32 1.442695, %v4468_v50 }
 0xf34   : > { %v4435_v45 = vpop.xlane.xlu1 %4434  ;;  %v4432_v44 = vpop.xlane.xlu0 %4431 }
 0xf35   : > { %9347 = vpow2.f32 %v4488_v40  ;;  %v4471_v55 = vsub.f32 %v11099_v26, %v4435_v45  ;;  %v4470_v3 = vsub.f32 %v11102_v25, %v4432_v44 }
 0xf36   : > { %9349 = vpow2.f32 %v4486_v58 }
 0xf37   : > { %v4492_v18 = vmul.f32 1.442695, %v4471_v55  ;;  %v4490_v28 = vmul.f32 1.442695, %v4470_v3 }
 0xf38   : > { %v4441_v4 = vpop.xlane.xlu1 %4440  ;;  %v4438_v0 = vpop.xlane.xlu0 %4437 }
 0xf39   : > { %9351 = vpow2.f32 %v4492_v18  ;;  %v4473_v11 = vsub.f32 %v11109_v32, %v4441_v4  ;;  %v4472_v30 = vsub.f32 %v11112_v59, %v4438_v0 }
 0xf3a   : > { %v11166_v61 = vpop.eup %9343  ;;  %9353 = vpow2.f32 %v4490_v28 }
 0xf3b   : > { %v11168_v42 = vpop.eup %9345  ;;  %v4496_v1 = vmul.f32 1.442695, %v4473_v11  ;;  %v4494_v17 = vmul.f32 1.442695, %v4472_v30  ;;  %v4517_v26 = vsel %vm780_vm1, %v11166_v61, 0.0 }
 0xf3c   : > { %v4447_v25 = vpop.xlane.xlu1 %4446  ;;  %v4444_v52 = vpop.xlane.xlu0 %4443  ;;  %4518 = vadd.xlane.f32.xlu1 %v4517_v26  ;;  %v4514_v23 = vsel %vm780_vm1, %v11168_v42, 0.0 }
 0xf3d   : > { %9355 = vpow2.f32 %v4496_v1  ;;  %v4475_v32 = vsub.f32 %v11119_v10, %v4447_v25  ;;  %v4474_v59 = vsub.f32 %v11122_v13, %v4444_v52  ;;  %4515 = vadd.xlane.f32.xlu0 %v4514_v23 }
 0xf3e   : > { %9357 = vpow2.f32 %v4494_v17 }
 0xf3f   : > { %v11176_v21 = vpop.eup %9347  ;;  %v4500_v29 = vmul.f32 1.442695, %v4475_v32  ;;  %v4498_v50 = vmul.f32 1.442695, %v4474_v59 }
 0xf40   : > { %v11178_v40 = vpop.eup %9349  ;;  %v4453_v58 = vpop.xlane.xlu1 %4452  ;;  %v4523_v44 = vsel %vm780_vm1, %v11176_v21, 0.0 }
 0xf41   : > { %v4450_v45 = vpop.xlane.xlu0 %4449  ;;  %9359 = vpow2.f32 %v4500_v29  ;;  %v4477_v55 = vsub.f32 %v11129_v46, %v4453_v58  ;;  %4524 = vadd.xlane.f32.xlu1 %v4523_v44  ;;  %v4520_v13 = vsel %vm780_vm1, %v11178_v40, 0.0 }
 0xf42   : > { %v4476_v10 = vsub.f32 %v11132_v8, %v4450_v45  ;;  %9361 = vpow2.f32 %v4498_v50  ;;  %4521 = vadd.xlane.f32.xlu0 %v4520_v13 }
 0xf43   : > { %v11186_v3 = vpop.eup %9351  ;;  %v4504_v18 = vmul.f32 1.442695, %v4477_v55 }
 0xf44   : > { %v4502_v28 = vmul.f32 1.442695, %v4476_v10  ;;  %v11188_v4 = vpop.eup %9353  ;;  %v4529_v0 = vsel %vm780_vm1, %v11186_v3, 0.0  ;;  %v4459_v58 = vpop.xlane.xlu1 %4458 }
 0xf45   : > { %9363 = vpow2.f32 %v4504_v18  ;;  %4530 = vadd.xlane.f32.xlu1 %v4529_v0  ;;  %v4526_v46 = vsel %vm780_vm1, %v11188_v4, 0.0  ;;  %v4456_v50 = vpop.xlane.xlu0 %4455  ;;  %v4479_v18 = vsub.f32 %v11139_v37, %v4459_v58 }
 0xf46   : > { %4527 = vadd.xlane.f32.xlu0 %v4526_v46  ;;  %9365 = vpow2.f32 %v4502_v28  ;;  %v4478_v45 = vsub.f32 %v11142_v57, %v4456_v50 }
 0xf47   : > { %v11194_v8 = vpop.eup %9355  ;;  %v4508_v46 = vmul.f32 1.442695, %v4479_v18 }
 0xf48   : > { %v11196_v11 = vpop.eup %9357  ;;  %v4535_v30 = vsel %vm780_vm1, %v11194_v8, 0.0  ;;  %v4506_v55 = vmul.f32 1.442695, %v4478_v45  ;;  %v4465_v13 = vpop.xlane.xlu1 %4464 }
 0xf49   : > { %4536 = vadd.xlane.f32.xlu1 %v4535_v30  ;;  %v4532_v1 = vsel %vm780_vm1, %v11196_v11, 0.0  ;;  %v4462_v44 = vpop.xlane.xlu0 %4461  ;;  %v4481_v28 = vsub.f32 %v11149_v41, %v4465_v13 }
 0xf4a   : > { %4533 = vadd.xlane.f32.xlu0 %v4532_v1  ;;  %v4480_v10 = vsub.f32 %v11152_v51, %v4462_v44  ;;  %9367 = vpow2.f32 %v4506_v55 }
 0xf4b   : > { %v11202_v17 = vpop.eup %9359 }
 0xf4c   : > { %v11204_v26 = vpop.eup %9361  ;;  %v4541_v25 = vsel %vm780_vm1, %v11202_v17, 0.0  ;;  %v4510_v0 = vmul.f32 1.442695, %v4480_v10 }
 0xf4d   : > { %4542 = vadd.xlane.f32.xlu1 %v4541_v25  ;;  %v4538_v52 = vsel %vm780_vm1, %v11204_v26, 0.0 }
 0xf4e   : > { %4539 = vadd.xlane.f32.xlu0 %v4538_v52  ;;  %9369 = vpow2.f32 %v4510_v0 }
 0xf4f   : > { %v11210_v23 = vpop.eup %9363  ;;  %9371 = vpow2.f32 %v4508_v46 }
 0xf50   : > { %v4547_v32 = vsel %vm780_vm1, %v11210_v23, 0.0  ;;  %v11214_v59 = vpop.eup %9365 }
 0xf51   : > { %4548 = vadd.xlane.f32.xlu1 %v4547_v32  ;;  %v4544_v29 = vsel %vm780_vm1, %v11214_v59, 0.0 }
 0xf55   : > { %4545 = vadd.xlane.f32.xlu1 %v4544_v29 }
 0xf64   : > { %8974 = vrot.lane.b32.xlu0 %v10950_v60, %s12192_s26  ;;  %v4512_v60 = vmul.f32 1.442695, %v4481_v28 }
 0xf66   : > { %8979 = vrot.lane.b32.xlu1 %v10947_v15, %s12192_s26  ;;  %9373 = vpow2.f32 %v4512_v60  ;;  %v11226_v15 = vpop.eup %9367  ;;  %s7290_s26 = sshll.u32 %s648_s23, 4  ;;  %s12084_s26 = int_to_ptr.vmem [resolvable:$true] %s7290_s26 }
 0xf67   : > { %v4550_v57 = vsel %vm780_vm1, %v11226_v15, 0.0  ;;  %v11230_v30 = vpop.eup %9369  ;;  %s9434_s3 = scalar_lea.vmem %s12084_s26, 16  ;;  %p9441_p0 = scmp.lt.s32.totalorder %s12084_s26, %s9439_s1 }
 0xf68   : > { %v11232_v51 = vpop.eup %9371  ;;  %v4556_v37 = vsel %vm780_vm1, %v11230_v30, 0.0  ;;  %p9435_p11 = scmp.ne.s32.totalorder %s12084_s26, %s9434_s3  ;;  %p9442_p1 = scmp.lt.s32.totalorder %s9440_s0, %s9434_s3 }
 0xf69   : > { %v4553_v1 = vsel %vm780_vm1, %v11232_v51, 0.0 }
 0xf6a   : > { %p9436_p12 = pnand %p9435_p11, %p9652_p5  ;;  %p9443_p2 = por %p9442_p1, %p9441_p0 }
 0xf6c   : > { %p9437_p13 = pneg %p9436_p12 }
 0xf6e   : > { %p9444_p3 = pnand %p9443_p2, %p9437_p13 }
 0xf70   : > { %v11236_v41 = vpop.eup %9373 }
 0xf71   : > { %v4559_v25 = vsel %vm780_vm1, %v11236_v41, 0.0 }
 0xf83   : > { %4551 = vadd.xlane.f32.xlu0 %v4550_v57 }
 0xf87   : > { %4557 = vadd.xlane.f32.xlu0 %v4556_v37 }
 0xf8a   : > { %4554 = vadd.xlane.f32.xlu1 %v4553_v1 }
 0xf8b   : > { %4560 = vadd.xlane.f32.xlu0 %v4559_v25 }
 0xfc9   : > { %v4519_v52 = vpop.xlane.xlu1 %4518 }
 0xfca   : > { %v4516_v32 = vpop.xlane.xlu0 %4515 }
 0xfcb   : > { %9375 = vrcp.f32 %v4516_v32 }
 0xfcc   : > { %9377 = vrcp.f32 %v4519_v52 }
 0xfce   : > { %v4525_v29 = vpop.xlane.xlu1 %4524 }
 0xfcf   : > { %v4522_v50 = vpop.xlane.xlu0 %4521 }
 0xfd0   : > { %9379 = vrcp.f32 %v4522_v50 }
 0xfd1   : > { %9381 = vrcp.f32 %v4525_v29 }
 0xfd2   : > { %v4531_v58 = vpop.xlane.xlu1 %4530 }
 0xfd3   : > { %v4528_v45 = vpop.xlane.xlu0 %4527 }
 0xfd4   : > { %9383 = vrcp.f32 %v4528_v45 }
 0xfd5   : > { %v9376_v44 = vpop.eup %9375  ;;  %9385 = vrcp.f32 %v4531_v58 }
 0xfd6   : > { %v4537_v55 = vpop.xlane.xlu1 %4536  ;;  %v4578_v10 = vmul.f32 %v9376_v44, %v11168_v42 }
 0xfd7   : > { %v4534_v13 = vpop.xlane.xlu0 %4533 }
 0xfd8   : > { %8819 = vmatprep.mubr.msk.f32.mxu1 %vm780_vm1, %v4578_v10  ;;  %9387 = vrcp.f32 %v4534_v13  ;;  %v9378_v10 = vpop.eup %9377 }
 0xfd9   : > { %9389 = vrcp.f32 %v4537_v55  ;;  %v4579_v52 = vmul.f32 %v9378_v10, %v11166_v61 }
 0xfda   : > { %v4543_v18 = vpop.xlane.xlu1 %4542  ;;  %v9380_v54 = vpop.eup %9379 }
 0xfdb   : > { %v4540_v28 = vpop.xlane.xlu0 %4539  ;;  %v9382_v50 = vpop.eup %9381  ;;  %v4580_v29 = vmul.f32 %v9380_v54, %v11178_v40 }
 0xfdc   : > { %9391 = vrcp.f32 %v4540_v28  ;;  %v4581_v58 = vmul.f32 %v9382_v50, %v11176_v21 }
 0xfdd   : > { %9393 = vrcp.f32 %v4543_v18 }
 0xfde   : > { %v4549_v0 = vpop.xlane.xlu1 %4548 }
 0xfdf   : > { %v8975_v46 = vpop.permute.xlu0 %8974 }
 0xfe0   : > { %v8977_v60 = vunpack.i.h.bf16 %v8975_v46  ;;  %v8976_v57 = vunpack.i.l.bf16 %v8975_v46  ;;  %v9384_v46 = vpop.eup %9383 }
 0xfe1   : > { %v9386_v45 = vpop.eup %9385  ;;  %v4582_v13 = vmul.f32 %v9384_v46, %v11188_v4 }
 0xfe2   : > { %v8891_v37 = vpack.c.bf16 %v8977_v60, %v8976_v57  ;;  %v4546_v1 = vpop.xlane.xlu1 %4545  ;;  %v9388_v55 = vpop.eup %9387  ;;  %v4583_v54 = vmul.f32 %v9386_v45, %v11186_v3 }
 0xfe3   : > { %9395 = vrcp.f32 %v4546_v1  ;;  %v9390_v61 = vpop.eup %9389  ;;  %v4584_v40 = vmul.f32 %v9388_v55, %v11196_v11 }
 0xfe4   : > { %8892 = vmatprep.subr.bf16.mxu1 %v8891_v37  ;;  %9397 = vrcp.f32 %v4549_v0  ;;  %v4585_v21 = vmul.f32 %v9390_v61, %v11194_v8 }
 0xfe5   : > { %8894 = vmatpush3.bf16.msra.mxu1 %v8891_v37 }
 0xfe6   : > { %v8980_v25 = vpop.permute.xlu1 %8979  ;;  %v9392_v18 = vpop.eup %9391 }
 0xfe7   : > { %v8982_v32 = vunpack.i.h.bf16 %v8980_v25  ;;  %v8981_v42 = vunpack.i.l.bf16 %v8980_v25  ;;  %v9394_v28 = vpop.eup %9393  ;;  %v4586_v4 = vmul.f32 %v9392_v18, %v11204_v26 }
 0xfe8   : > { %v4587_v3 = vmul.f32 %v9394_v28, %v11202_v17 }
 0xfe9   : > { %v8895_v44 = vpack.c.bf16 %v8982_v32, %v8981_v42 }
 0xfeb   : > { %8896 = vmatprep.subr.bf16.mxu1 %v8895_v44 }
 0xfec   : > { %8898 = vmatpush3.bf16.msra.mxu1 %v8895_v44 }
 0xfed   : > { %v9396_v60 = vpop.eup %9395 }
 0xfee   : > { %v9398_v0 = vpop.eup %9397  ;;  %v4588_v11 = vmul.f32 %v9396_v60, %v11214_v59 }
 0xfef   : > { %8820 = vmatmul.mubr.msk.f32.vlgmr.msra.gmra.mrb[88].mxu1 %vm780_vm1, %v4579_v52  ;;  %v4589_v57 = vmul.f32 %v9398_v0, %v11210_v23  ;;  %v12193_v52 = vmov 0  }
 0xff0   : > { %8822 = vmatprep.mubr.msk.f32.mxu1 %vm780_vm1, %v4580_v29 }
 0xff3   : > { %8823 = vmatmul.mubr.msk.f32.gmra.mrb[90].mxu1 %vm780_vm1, %v4581_v58 }
 0xff4   : > { %8825 = vmatprep.mubr.msk.f32.mxu1 %vm780_vm1, %v4582_v13 }
 0xff7   : > { %8826 = vmatmul.mubr.msk.f32.gmra.mrb[92].mxu1 %vm780_vm1, %v4583_v54 }
 0xff8   : > { %8828 = vmatprep.mubr.msk.f32.mxu1 %vm780_vm1, %v4584_v40 }
 0xffb   : > { %8829 = vmatmul.mubr.msk.f32.gmra.mrb[94].mxu1 %vm780_vm1, %v4585_v21 }
 0xffc   : > { %8831 = vmatprep.mubr.msk.f32.mxu1 %vm780_vm1, %v4586_v4 }
 0xfff   : > { %8832 = vmatmul.mubr.msk.f32.gmra.mrb[96].mxu1 %vm780_vm1, %v4587_v3 }
0x1000   : > { %8834 = vmatprep.mubr.msk.f32.mxu1 %vm780_vm1, %v4588_v11 }
0x1003   : > { %8835 = vmatmul.mubr.msk.f32.gmra.mrb[98].mxu1 %vm780_vm1, %v4589_v57 }
0x1010   : > { %v4552_v8 = vpop.xlane.xlu0 %4551 }
0x1011   : > { %9399 = vrcp.f32 %v4552_v8 }
0x1014   : > { %v4558_v26 = vpop.xlane.xlu0 %4557 }
0x1015   : > { %9401 = vrcp.f32 %v4558_v26 }
0x1017   : > { %v4555_v37 = vpop.xlane.xlu1 %4554 }
0x1018   : > { %9403 = vrcp.f32 %v4555_v37  ;;  %v4561_v1 = vpop.xlane.xlu0 %4560 }
0x1019   : > { %9405 = vrcp.f32 %v4561_v1 }
0x101b   : > { %v9400_v17 = vpop.eup %9399 }
0x101c   : > { %v4590_v25 = vmul.f32 %v9400_v17, %v11226_v15  ;;  %v9123_v15 = vld [vmem:[%s12131_s7 + $0x10] sm:$0xff]  }
0x101d   : > { %8843 = vmatprep.subr.bf16.mxu0 %v9123_v15 }
0x101e   : > { %8837 = vmatprep.mubr.msk.f32.mxu1 %vm780_vm1, %v4590_v25  ;;  %8844 = vmatpush3.bf16.msra.mxu0 %v9123_v15 }
0x101f   : > { %v9402_v59 = vpop.eup %9401 }
0x1020   : > { %v4592_v44 = vmul.f32 %v9402_v59, %v11230_v30 }
0x1022   : > { %v9404_v32 = vpop.eup %9403 }
0x1023   : > { %v4591_v42 = vmul.f32 %v9404_v32, %v11232_v51  ;;  %v9406_v23 = vpop.eup %9405  ;;  %v9124_v51 = vld [vmem:[%s12131_s7 + $0x18] sm:$0xff]  }
0x1024   : > { %v4593_v10 = vmul.f32 %v9406_v23, %v11236_v41  ;;  %8845 = vmatprep.subr.bf16.mxu0 %v9124_v51 }
0x1025   : > { %8838 = vmatmul.mubr.msk.f32.gmra.mrb[100].mxu1 %vm780_vm1, %v4591_v42  ;;  %8846 = vmatpush3.bf16.msra.mxu0 %v9124_v51 }
0x1026   : > { %8840 = vmatprep.mubr.msk.f32.mxu1 %vm780_vm1, %v4592_v44 }
0x1029   : > { %8841 = vmatmul.mubr.msk.f32.gmra.mrb[102].mxu1 %vm780_vm1, %v4593_v10 }
0x102a   : > { %5307 = vmatprep.mubr.bf16.mxu1 %v12193_v52 }
0x10c2   : > { %v8821_v30 = vpop.f32.mrb[88].mxu1 }
0x10c3   : > { %v4720_v50 = vpop.f32.mrb[89].mxu1  ;;  %v4800_v58 = vmul.f32 %v10967_v43, %v8821_v30 }
0x10c4   : > { %v4799_v55 = vmul.f32 %v10943_v53, %v4720_v50 }
0x10c6   : > { %v8824_v29 = vpop.f32.mrb[90].mxu1 }
0x10c7   : > { %v4730_v41 = vpop.f32.mrb[91].mxu1  ;;  %v4802_v21 = vmul.f32 %v10981_v35, %v8824_v29 }
0x10c8   : > { %v4801_v60 = vmul.f32 %v10973_v63, %v4730_v41 }
0x10ca   : > { %v8827_v46 = vpop.f32.mrb[92].mxu1 }
0x10cb   : > { %v4804_v45 = vmul.f32 %v10996_v7, %v8827_v46  ;;  %v4740_v13 = vpop.f32.mrb[93].mxu1 }
0x10cc   : > { %v4803_v54 = vmul.f32 %v10988_v47, %v4740_v13 }
0x10cd   : > { %v4816_v61 = vadd.f32 %v4804_v45, %v4800_v58 }
0x10ce   : > { %v4815_v40 = vadd.f32 %v4803_v54, %v4799_v55  ;;  %v8830_v18 = vpop.f32.mrb[94].mxu1 }
0x10cf   : > { %v4806_v28 = vmul.f32 %v11010_v20, %v8830_v18  ;;  %v4750_v4 = vpop.f32.mrb[95].mxu1 }
0x10d0   : > { %v4805_v3 = vmul.f32 %v11002_v24, %v4750_v4 }
0x10d1   : > { %v4818_v43 = vadd.f32 %v4806_v28, %v4802_v21 }
0x10d2   : > { %v4817_v0 = vadd.f32 %v4805_v3, %v4801_v60  ;;  %v8833_v7 = vpop.f32.mrb[96].mxu1 }
0x10d3   : > { %v4808_v11 = vmul.f32 %v11025_v39, %v8833_v7  ;;  %v4760_v53 = vpop.f32.mrb[97].mxu1 }
0x10d4   : > { %v4807_v47 = vmul.f32 %v11017_v9, %v4760_v53 }
0x10d5   : > { %v4820_v57 = vadd.f32 %v4816_v61, %v4808_v11 }
0x10d6   : > { %v4819_v8 = vadd.f32 %v4815_v40, %v4807_v47  ;;  %v8836_v26 = vpop.f32.mrb[98].mxu1 }
0x10d7   : > { %v4810_v35 = vmul.f32 %v11039_v38, %v8836_v26  ;;  %v4770_v37 = vpop.f32.mrb[99].mxu1 }
0x10d8   : > { %v4809_v20 = vmul.f32 %v11031_v22, %v4770_v37 }
0x10d9   : > { %v4822_v1 = vadd.f32 %v4818_v43, %v4810_v35 }
0x10da   : > { %v4821_v63 = vadd.f32 %v4817_v0, %v4809_v20 }
0x10f8   : > { %v8839_v17 = vpop.f32.mrb[100].mxu1 }
0x10f9   : > { %v4812_v24 = vmul.f32 %v11054_v34, %v8839_v17  ;;  %v4780_v25 = vpop.f32.mrb[101].mxu1  ;;  %v7652_v17 = vld [vmem:[%s12137_s13 + $0x108] sm:$0xff] }
0x10fa   : > { %v4811_v59 = vmul.f32 %v11046_v27, %v4780_v25  ;;  %v7642_v27 = vld [vmem:[%s12132_s8 + $0x1] ss:$0 sm:$0xff] }
0x10fb   : > { %v4824_v39 = vadd.f32 %v4820_v57, %v4812_v24  ;;  %v7660_v24 = vld [vmem:[%s12137_s13 + $0x148] sm:$0xff] }
0x10fc   : > { %v4823_v32 = vadd.f32 %v4819_v8, %v4811_v59  ;;  %v8842_v42 = vpop.f32.mrb[102].mxu1  ;;  %v7688_v25 = vcombine.high %v7652_v17, %v7660_v24  ;;  %v7687_v59 = vcombine.low %v7652_v17, %v7660_v24 }
0x10fd   : > { %v4814_v9 = vmul.f32 %v11068_v62, %v8842_v42  ;;  %v4790_v23 = vpop.f32.mrb[103].mxu1  ;;  %v7668_v42 = vld [vmem:[%s12137_s13 + $0x188] sm:$0xff] }
0x10fe   : > { %v4827_v44 = vpack.c.bf16 %v4824_v39, %v4823_v32  ;;  %v4813_v38 = vmul.f32 %v11060_v6, %v4790_v23  ;;  %5328 = vmatprep.subr.bf16.mxu0 %v7688_v25  ;;  %v7667_v39 = vld [vmem:[%s12137_s13 + $0x180] sm:$0xff]  ;;  %v7676_v23 = vld [vmem:[%s12137_s13 + $0x1c8] sm:$0xff] }
0x10ff   : > { %v4826_v10 = vadd.f32 %v4822_v1, %v4814_v9  ;;  %v7675_v32 = vld [vmem:[%s12137_s13 + $0x1c0] sm:$0xff] }
0x1100   : > { %v4825_v15 = vadd.f32 %v4821_v63, %v4813_v38  ;;  %8847 = vmatprep.mubr.msk.bf16.mxu0 %vm780_vm1, %v4827_v44  ;;  %v7702_v9 = vcombine.high %v7667_v39, %v7675_v32  ;;  %v7701_v44 = vcombine.low %v7667_v39, %v7675_v32  ;;  %v7703_v38 = vcombine.low %v7668_v42, %v7676_v23  ;;  %v7663_v25 = vld [vmem:[%s12137_s13 + $0x160] sm:$0xff]  ;;  %v7664_v39 = vld [vmem:[%s12137_s13 + $0x168] sm:$0xff] }
0x1102   : > { %v4828_v22 = vpack.c.bf16 %v4826_v10, %v4825_v15  ;;  %v7704_v10 = vcombine.high %v7668_v42, %v7676_v23  ;;  %v7653_v15 = vld [vmem:[%s12137_s13 + $0x110] sm:$0xff] }
0x1104   : > { %8848 = vmatmul.mubr.msk.bf16.vlgmr.msra.gmra.mrb[104].mxu0 %vm780_vm1, %v4828_v22  ;;  %v7661_v22 = vld [vmem:[%s12137_s13 + $0x150] sm:$0xff] }
0x1105   : > { %5360 = vmatprep.mubr.bf16.mxu0 %v12193_v52  ;;  %5329 = vmatpush1.bf16.msra.mxu0 %v7687_v59  ;;  %v7656_v59 = vld [vmem:[%s12137_s13 + $0x128] sm:$0xff] }
0x1106   : > { %5330 = vmatprep.subr.bf16.mxu0 %v7704_v10 }
0x1109   : > { %5331 = vmatpush1.bf16.msra.mxu0 %v7703_v38 }
0x11d7   : > { %v8849_v34 = vpop.f32.mrb[104].mxu0 }
0x11d8   : > { %v4894_v51 = vpop.f32.mrb[105].mxu0  ;;  %v4903_v62 = vadd.f32 %v8849_v34, %v7642_v27  ;;  %v7689_v34 = vcombine.low %v7653_v15, %v7661_v22 }
0x11d9   : > { %v4895_v30 = vadd.f32 %v7642_v27, %v4894_v51  ;;  %v8850_v50 = vpop.f32.mrb[106].mxu0  ;;  %v7690_v51 = vcombine.high %v7653_v15, %v7661_v22  ;;  %v7671_v15 = vld [vmem:[%s12137_s13 + $0x1a0] sm:$0xff] }
0x11da   : > { %v4897_v29 = vpop.f32.mrb[107].mxu0  ;;  %v4906_v41 = vadd.f32 %v8850_v50, %v7642_v27  ;;  %v4911_v58 = vadd.f32 %v4903_v62, %v10904_v5  ;;  %v7651_v5 = vld [vmem:[%s12137_s13 + $0x100] sm:$0xff]  ;;  %v7662_v62 = vld [vmem:[%s12137_s13 + $0x158] sm:$0xff] }
0x11db   : > { %v11304_v6 = vadd.f32 %v4895_v30, %v10894_v48  ;;  %v4898_v46 = vadd.f32 %v7642_v27, %v4897_v29  ;;  %v7654_v27 = vld [vmem:[%s12137_s13 + $0x118] sm:$0xff]  ;;  %v7679_v22 = vld [vmem:[%s12137_s13 + $0x1e0] sm:$0xff] }
0x11dc   : > { %v4912_v55 = vadd.f32 %v4906_v41, %v10907_v2  ;;  %v4923_v61 = vsel %vm780_vm1, %v4911_v58, 0.0  ;;  %v7691_v30 = vcombine.low %v7654_v27, %v7662_v62  ;;  %v7692_v50 = vcombine.high %v7654_v27, %v7662_v62  ;;  %v7672_v27 = vld [vmem:[%s12137_s13 + $0x1a8] sm:$0xff] }
0x11dd   : > { %v4917_v45 = vsel %vm780_vm1, %v11304_v6, 0.0  ;;  %v4910_v13 = vadd.f32 %v4898_v46, %v10897_v49  ;;  %v7659_v49 = vld [vmem:[%s12137_s13 + $0x140] sm:$0xff]  ;;  %v7695_v62 = vcombine.low %v7656_v59, %v7664_v39 }
0x11de   : > { %4918 = vadd.xlane.f32.xlu0 %v4917_v45  ;;  %v4926_v48 = vsel %vm780_vm1, %v4912_v55, 0.0  ;;  %v7685_v40 = vcombine.low %v7651_v5, %v7659_v49  ;;  %v7686_v18 = vcombine.high %v7651_v5, %v7659_v49  ;;  %5434 = vmatprep.subr.bf16.mxu0 %v7692_v50 }
0x11df   : > { %v4920_v54 = vsel %vm780_vm1, %v4910_v13, 0.0 }
0x11e0   : > { %4921 = vadd.xlane.f32.xlu1 %v4920_v54  ;;  %5275 = vmatprep.subr.bf16.mxu1 %v7686_v18  ;;  %v7649_v18 = vld [vmem:[%s12135_s11 + $0x1] ss:$0 sm:$0xff] }
0x11e1   : > { %5276 = vmatpush1.bf16.msra.mxu1 %v7685_v40 }
0x11e2   : > { %4924 = vadd.xlane.f32.xlu0 %v4923_v61  ;;  %5277 = vmatprep.subr.bf16.mxu1 %v7702_v9 }
0x11e4   : > { %4927 = vadd.xlane.f32.xlu1 %v4926_v48 }
0x11e5   : > { %5278 = vmatpush1.bf16.msra.mxu1 %v7701_v44  ;;  %v7696_v44 = vcombine.high %v7656_v59, %v7664_v39  ;;  %v9145_v59 = vld [vmem:[%s12139_s15 + $0x468] sm:$0xff]  }
0x11e6   : > { %5381 = vmatprep.subr.bf16.mxu1 %v7690_v51  ;;  %v9146_v39 = vld [vmem:[%s12139_s15 + $0x4e8] sm:$0xff]  }
0x126b   : > { %v4919_v2 = vpop.xlane.xlu0 %4918 }
0x126c   : > { %v4929_v21 = vmul.f32 0.03125, %v4919_v2 }
0x126d   : > { %v4922_v28 = vpop.xlane.xlu1 %4921 }
0x126e   : > { %v11321_v4 = vsub.f32 %v11304_v6, %v4929_v21  ;;  %v4930_v60 = vmul.f32 0.03125, %v4922_v28 }
0x126f   : > { %v4925_v3 = vpop.xlane.xlu0 %4924 }
0x1270   : > { %v11323_v43 = vsub.f32 %v4910_v13, %v4930_v60  ;;  %v4931_v0 = vmul.f32 0.03125, %v4925_v3  ;;  %v4937_v7 = vmul.f32 %v11321_v4, %v11321_v4 }
0x1271   : > { %v4928_v11 = vpop.xlane.xlu1 %4927 }
0x1272   : > { %v11327_v53 = vsub.f32 %v4911_v58, %v4931_v0  ;;  %v4932_v47 = vmul.f32 0.03125, %v4928_v11  ;;  %v4941_v57 = vsel %vm780_vm1, %v4937_v7, 0.0  ;;  %v4938_v8 = vmul.f32 %v11323_v43, %v11323_v43  ;;  %v7650_v0 = vld [vmem:[%s12136_s12 + $0x1] ss:$0 sm:$0xff] }
0x1273   : > { %4942 = vadd.xlane.f32.xlu0 %v4941_v57 }
0x1274   : > { %v11332_v26 = vsub.f32 %v4912_v55, %v4932_v47  ;;  %v4944_v35 = vsel %vm780_vm1, %v4938_v8, 0.0  ;;  %v4939_v37 = vmul.f32 %v11327_v53, %v11327_v53  ;;  %v7669_v47 = vld [vmem:[%s12137_s13 + $0x190] sm:$0xff] }
0x1275   : > { %4945 = vadd.xlane.f32.xlu1 %v4944_v35 }
0x1276   : > { %v4947_v20 = vsel %vm780_vm1, %v4939_v37, 0.0  ;;  %v4940_v1 = vmul.f32 %v11332_v26, %v11332_v26  ;;  %v7670_v37 = vld [vmem:[%s12137_s13 + $0x198] sm:$0xff] }
0x1277   : > { %4948 = vadd.xlane.f32.xlu0 %v4947_v20  ;;  %v7678_v20 = vld [vmem:[%s12137_s13 + $0x1d8] sm:$0xff] }
0x1278   : > { %v4950_v63 = vsel %vm780_vm1, %v4940_v1, 0.0  ;;  %v7708_v24 = vcombine.high %v7670_v37, %v7678_v20  ;;  %v7707_v9 = vcombine.low %v7670_v37, %v7678_v20  ;;  %v9136_v37 = vld [vmem:[%s12139_s15 + $0x490] sm:$0xff]   ;;  %v9137_v20 = vld [vmem:[%s12139_s15 + $0x458] sm:$0xff]  }
0x1279   : > { %4951 = vadd.xlane.f32.xlu1 %v4950_v63 }
0x1300   : > { %v4943_v29 = vpop.xlane.xlu0 %4942 }
0x1301   : > { %v4953_v41 = vmul.f32 0.03125, %v4943_v29  ;;  %v7657_v29 = vld [vmem:[%s12137_s13 + $0x130] sm:$0xff] }
0x1302   : > { %v4946_v46 = vpop.xlane.xlu1 %4945 }
0x1303   : > { %v4957_v58 = vadd.f32 1e-05, %v4953_v41  ;;  %v4954_v45 = vmul.f32 0.03125, %v4946_v46  ;;  %v7665_v41 = vld [vmem:[%s12137_s13 + $0x170] sm:$0xff]  ;;  %v7658_v46 = vld [vmem:[%s12137_s13 + $0x138] sm:$0xff] }
0x1304   : > { %v4949_v13 = vpop.xlane.xlu0 %4948 }
0x1305   : > { %9407 = vrsqrt.f32 %v4957_v58  ;;  %v4958_v55 = vadd.f32 1e-05, %v4954_v45  ;;  %v4955_v54 = vmul.f32 0.03125, %v4949_v13  ;;  %v7666_v58 = vld [vmem:[%s12137_s13 + $0x178] sm:$0xff]  ;;  %v7709_v45 = vcombine.low %v7671_v15, %v7679_v22 }
0x1306   : > { %v4952_v61 = vpop.xlane.xlu1 %4951 }
0x1307   : > { %9409 = vrsqrt.f32 %v4958_v55  ;;  %v4959_v48 = vadd.f32 1e-05, %v4955_v54  ;;  %v4956_v5 = vmul.f32 0.03125, %v4952_v61  ;;  %v7698_v55 = vcombine.high %v7657_v29, %v7665_v41  ;;  %v7673_v61 = vld [vmem:[%s12137_s13 + $0x1b0] sm:$0xff] }
0x1308   : > { %v7700_v54 = vcombine.high %v7658_v46, %v7666_v58 }
0x1309   : > { %9411 = vrsqrt.f32 %v4959_v48  ;;  %v4960_v49 = vadd.f32 1e-05, %v4956_v5  ;;  %v7681_v48 = vld [vmem:[%s12137_s13 + $0x1f0] sm:$0xff]  ;;  %v7674_v5 = vld [vmem:[%s12137_s13 + $0x1b8] sm:$0xff] }
0x130b   : > { %9413 = vrsqrt.f32 %v4960_v49  ;;  %v7682_v49 = vld [vmem:[%s12137_s13 + $0x1f8] sm:$0xff] }
0x130f   : > { %v9408_v40 = vpop.eup %9407 }
0x1310   : > { %v4965_v2 = vmul.f32 %v9408_v40, %v11321_v4  ;;  %v7697_v40 = vcombine.low %v7657_v29, %v7665_v41 }
0x1311   : > { %v9410_v21 = vpop.eup %9409 }
0x1312   : > { %v4975_v28 = vmul.f32 %v7649_v18, %v4965_v2  ;;  %v4966_v60 = vmul.f32 %v9410_v21, %v11323_v43  ;;  %v7677_v43 = vld [vmem:[%s12137_s13 + $0x1d0] sm:$0xff]  ;;  %v7714_v2 = vcombine.high %v7673_v61, %v7681_v48  ;;  %v7716_v21 = vcombine.high %v7674_v5, %v7682_v49 }
0x1313   : > { %v9412_v3 = vpop.eup %9411  ;;  %v7706_v17 = vcombine.high %v7669_v47, %v7677_v43  ;;  %v7705_v42 = vcombine.low %v7669_v47, %v7677_v43  ;;  %v9129_v47 = vld [vmem:[%s12139_s15 + $0x448] sm:$0xff]   ;;  %v9135_v43 = vld [vmem:[%s12139_s15 + $0x410] sm:$0xff]  }
0x1314   : > { %v4976_v7 = vmul.f32 %v7649_v18, %v4966_v60  ;;  %v4985_v57 = vadd.f32 %v7650_v0, %v4975_v28  ;;  %v4967_v35 = vmul.f32 %v9412_v3, %v11327_v53  ;;  %v7655_v53 = vld [vmem:[%s12137_s13 + $0x120] sm:$0xff]  ;;  %v7713_v28 = vcombine.low %v7673_v61, %v7681_v48 }
0x1315   : > { %v9414_v11 = vpop.eup %9413  ;;  %v7694_v23 = vcombine.high %v7655_v53, %v7663_v25  ;;  %v7693_v51 = vcombine.low %v7655_v53, %v7663_v25  ;;  %v7715_v60 = vcombine.low %v7674_v5, %v7682_v49  ;;  %v9125_v3 = vld [vmem:[%s12139_s15 + $0x440] sm:$0xff]  }
0x1316   : > { %v4986_v8 = vadd.f32 %v7650_v0, %v4976_v7  ;;  %v4968_v4 = vmul.f32 %v9414_v11, %v11332_v26  ;;  %v4977_v26 = vmul.f32 %v7649_v18, %v4967_v35  ;;  %v9127_v7 = vld [vmem:[%s12139_s15 + $0x400] sm:$0xff]   ;;  %v9132_v35 = vld [vmem:[%s12139_s15 + $0x488] sm:$0xff]  }
0x1317   : > { %v9128_v11 = vld [vmem:[%s12139_s15 + $0x480] sm:$0xff]  }
0x1318   : > { %v11393_v1 = vpack.c.bf16 %v4986_v8, %v4985_v57  ;;  %v4978_v63 = vmul.f32 %v7649_v18, %v4968_v4  ;;  %v4987_v38 = vadd.f32 %v7650_v0, %v4977_v26  ;;  %v7699_v18 = vcombine.low %v7658_v46, %v7666_v58  ;;  %v9130_v57 = vld [vmem:[%s12139_s15 + $0x4c8] sm:$0xff]   ;;  %v9133_v4 = vld [vmem:[%s12139_s15 + $0x450] sm:$0xff]   ;;  %v9142_v53 = vld [vmem:[%s12139_s15 + $0x4e0] sm:$0xff]  }
0x1319   : > { %v9131_v8 = vld [vmem:[%s12139_s15 + $0x408] sm:$0xff]   ;;  %v9143_v26 = vld [vmem:[%s12139_s15 + $0x420] sm:$0xff]  }
0x131a   : > { %7717 = vmatmul.mubr.msk.bf16.vlgmr.msra.gmra.mrb[104].mxu1 %vm780_vm1, %v11393_v1  ;;  %7719 = vmatmul.mubr.msk.bf16.vlgmr.msra.gmra.mrb[108].mxu0 %vm780_vm1, %v11393_v1  ;;  %v4988_v32 = vadd.f32 %v7650_v0, %v4978_v63  ;;  %v9126_v0 = vld [vmem:[%s12139_s15 + $0x4c0] sm:$0xff]   ;;  %v9139_v63 = vld [vmem:[%s12139_s15 + $0x418] sm:$0xff]  }
0x131b   : > { %5317 = vmatprep.mubr.bf16.mxu1 %v12193_v52  ;;  %5370 = vmatprep.mubr.bf16.mxu0 %v12193_v52  ;;  %v9144_v25 = vld [vmem:[%s12139_s15 + $0x4a0] sm:$0xff]  }
0x131c   : > { %5382 = vmatpush1.bf16.msra.mxu1 %v7689_v34  ;;  %5435 = vmatpush1.bf16.msra.mxu0 %v7691_v30  ;;  %v11413_v10 = vpack.c.bf16 %v4988_v32, %v4987_v38  ;;  %v7680_v34 = vld [vmem:[%s12137_s13 + $0x1e8] sm:$0xff]  ;;  %v7710_v30 = vcombine.high %v7671_v15, %v7679_v22  ;;  %v9152_v38 = vld [vmem:[%s12139_s15 + $0x4b0] sm:$0xff]   ;;  %v9154_v15 = vld [vmem:[%s12139_s15 + $0x4f8] sm:$0xff]  }
0x131d   : > { %5383 = vmatprep.subr.bf16.mxu1 %v7706_v17  ;;  %5436 = vmatprep.subr.bf16.mxu0 %v7708_v24  ;;  %v7712_v50 = vcombine.high %v7672_v27, %v7680_v34  ;;  %v7711_v13 = vcombine.low %v7672_v27, %v7680_v34  ;;  %v9140_v17 = vld [vmem:[%s12139_s15 + $0x498] sm:$0xff]   ;;  %v9141_v24 = vld [vmem:[%s12139_s15 + $0x460] sm:$0xff]   ;;  %v9147_v32 = vld [vmem:[%s12139_s15 + $0x428] sm:$0xff]  }
0x131e   : > { %v9155_v22 = vld [vmem:[%s12139_s15 + $0x438] sm:$0xff]   ;;  %v9157_v34 = vld [vmem:[%s12139_s15 + $0x540] sm:$0xff]  }
0x131f   : > { %v9156_v27 = vld [vmem:[%s12139_s15 + $0x4b8] sm:$0xff]  }
0x1320   : > { %5384 = vmatpush1.bf16.msra.mxu1 %v7705_v42  ;;  %5437 = vmatpush1.bf16.msra.mxu0 %v7707_v9  ;;  %v9148_v42 = vld [vmem:[%s12139_s15 + $0x4a8] sm:$0xff]   ;;  %v9149_v9 = vld [vmem:[%s12139_s15 + $0x470] sm:$0xff]  }
0x1321   : > { %5487 = vmatprep.subr.bf16.mxu1 %v7694_v23  ;;  %5540 = vmatprep.subr.bf16.mxu0 %v7696_v44  ;;  %v9150_v23 = vld [vmem:[%s12139_s15 + $0x4f0] sm:$0xff]  }
0x1322   : > { %7718 = vmatmul.mubr.msk.bf16.gmra.mrb[108].mxu1 %vm780_vm1, %v11413_v10  ;;  %7720 = vmatmul.mubr.msk.bf16.gmra.mrb[112].mxu0 %vm780_vm1, %v11413_v10  ;;  %v9151_v44 = vld [vmem:[%s12139_s15 + $0x430] sm:$0xff]  }
0x1323   : > { %5413 = vmatprep.mubr.bf16.mxu1 %v12193_v52  ;;  %5466 = vmatprep.mubr.bf16.mxu0 %v12193_v52 }
0x132a   : > { %7721 = vmatmul.mubr.msk.bf16.vlgmr.msra.gmra.mrb[112].mxu1 %vm780_vm1, %v11393_v1  ;;  %7723 = vmatmul.mubr.msk.bf16.vlgmr.msra.gmra.mrb[116].mxu0 %vm780_vm1, %v11393_v1 }
0x132b   : > { %5423 = vmatprep.mubr.bf16.mxu1 %v12193_v52  ;;  %5476 = vmatprep.mubr.bf16.mxu0 %v12193_v52 }
0x132c   : > { %5488 = vmatpush1.bf16.msra.mxu1 %v7693_v51  ;;  %5541 = vmatpush1.bf16.msra.mxu0 %v7695_v62  ;;  %v9158_v51 = vld [vmem:[%s12139_s15 + $0x5c0] sm:$0xff]   ;;  %v11596_v62 = vld [vmem:[%s12138_s14 + $0x10] sm:$0xff] }
0x132d   : > { %5489 = vmatprep.subr.bf16.mxu1 %v7710_v30  ;;  %5542 = vmatprep.subr.bf16.mxu0 %v7712_v50  ;;  %v5032_v30 = vrot.slane %v11596_v62, %v10412_v31  ;;  %v5040_v50 = vrot.slane %v11596_v62, %v10414_v16  ;;  %v5036_v29 = vrot.slane %v11596_v62, %v10421_v12 }
0x132e   : > { %v5044_v41 = vrot.slane %v11596_v62, %v10423_v36 }
0x1330   : > { %5490 = vmatpush1.bf16.msra.mxu1 %v7709_v45  ;;  %5543 = vmatpush1.bf16.msra.mxu0 %v7711_v13 }
0x1331   : > { %5593 = vmatprep.subr.bf16.mxu1 %v7698_v55  ;;  %5646 = vmatprep.subr.bf16.mxu0 %v7700_v54 }
0x1332   : > { %7722 = vmatmul.mubr.msk.bf16.gmra.mrb[116].mxu1 %vm780_vm1, %v11413_v10  ;;  %7724 = vmatmul.mubr.msk.bf16.gmra.mrb[120].mxu0 %vm780_vm1, %v11413_v10 }
0x1333   : > { %5519 = vmatprep.mubr.bf16.mxu1 %v12193_v52  ;;  %5572 = vmatprep.mubr.bf16.mxu0 %v12193_v52 }
0x133a   : > { %7725 = vmatmul.mubr.msk.bf16.vlgmr.msra.gmra.mrb[120].mxu1 %vm780_vm1, %v11393_v1  ;;  %7727 = vmatmul.mubr.msk.bf16.vlgmr.msra.gmra.mrb[124].mxu0 %vm780_vm1, %v11393_v1 }
0x133b   : > { %5529 = vmatprep.mubr.bf16.mxu1 %v12193_v52  ;;  %5582 = vmatprep.mubr.bf16.mxu0 %v12193_v52 }
0x133c   : > { %5594 = vmatpush1.bf16.msra.mxu1 %v7697_v40  ;;  %5647 = vmatpush1.bf16.msra.mxu0 %v7699_v18 }
0x133d   : > { %5595 = vmatprep.subr.bf16.mxu1 %v7714_v2  ;;  %5648 = vmatprep.subr.bf16.mxu0 %v7716_v21 }
0x1340   : > { %5596 = vmatpush1.bf16.msra.mxu1 %v7713_v28  ;;  %5649 = vmatpush1.bf16.msra.mxu0 %v7715_v60 }
0x1341   : > { %8452 = vmatprep.subr.bf16.mxu1 %v9125_v3  ;;  %8480 = vmatprep.subr.bf16.mxu0 %v9126_v0 }
0x1342   : > { %7726 = vmatmul.mubr.msk.bf16.gmra.mrb[124].mxu1 %vm780_vm1, %v11413_v10  ;;  %7728 = vmatmul.mubr.msk.bf16.gmra.mrb[128].mxu0 %vm780_vm1, %v11413_v10 }
0x1343   : > { %5625 = vmatprep.mubr.bf16.mxu1 %v12193_v52  ;;  %5678 = vmatprep.mubr.bf16.mxu0 %v12193_v52 }
0x134a   : > { %7729 = vmatmul.mubr.msk.bf16.vlgmr.msra.gmra.mrb[128].mxu1 %vm780_vm1, %v11393_v1  ;;  %7731 = vmatmul.mubr.msk.bf16.vlgmr.msra.gmra.mrb[132].mxu0 %vm780_vm1, %v11393_v1  ;;  %v9138_v1 = vld [vmem:[%s12139_s15 + $0x4d8] sm:$0xff]  }
0x134b   : > { %5635 = vmatprep.mubr.bf16.mxu1 %v12193_v52  ;;  %5688 = vmatprep.mubr.bf16.mxu0 %v12193_v52  ;;  %v9134_v52 = vld [vmem:[%s12139_s15 + $0x4d0] sm:$0xff]  }
0x134c   : > { %8453 = vmatpush3.bf16.msra.mxu1 %v9127_v7  ;;  %8481 = vmatpush3.bf16.msra.mxu0 %v9128_v11 }
0x134d   : > { %8454 = vmatprep.subr.bf16.mxu1 %v9129_v47  ;;  %8482 = vmatprep.subr.bf16.mxu0 %v9130_v57 }
0x1350   : > { %8455 = vmatpush3.bf16.msra.mxu1 %v9131_v8  ;;  %8483 = vmatpush3.bf16.msra.mxu0 %v9132_v35 }
0x1351   : > { %8456 = vmatprep.subr.bf16.mxu1 %v9133_v4  ;;  %8484 = vmatprep.subr.bf16.mxu0 %v9134_v52 }
0x1352   : > { %7730 = vmatmul.mubr.msk.bf16.gmra.mrb[132].mxu1 %vm780_vm1, %v11413_v10  ;;  %7732 = vmatmul.mubr.msk.bf16.gmra.mrb[136].mxu0 %vm780_vm1, %v11413_v10  ;;  %v9153_v10 = vld [vmem:[%s12139_s15 + $0x478] sm:$0xff]  }
0x1354   : > { %8457 = vmatpush3.bf16.msra.mxu1 %v9135_v43  ;;  %8485 = vmatpush3.bf16.msra.mxu0 %v9136_v37 }
0x1355   : > { %8458 = vmatprep.subr.bf16.mxu1 %v9137_v20  ;;  %8486 = vmatprep.subr.bf16.mxu0 %v9138_v1 }
0x1358   : > { %8459 = vmatpush3.bf16.msra.mxu1 %v9139_v63  ;;  %8487 = vmatpush3.bf16.msra.mxu0 %v9140_v17  ;;  %v9159_v63 = vld [vmem:[%s12139_s15 + $0x500] sm:$0xff]  }
0x1359   : > { %8460 = vmatprep.subr.bf16.mxu1 %v9141_v24  ;;  %8488 = vmatprep.subr.bf16.mxu0 %v9142_v53  ;;  %v9160_v17 = vld [vmem:[%s12139_s15 + $0x580] sm:$0xff]  }
0x135c   : > { %8461 = vmatpush3.bf16.msra.mxu1 %v9143_v26  ;;  %8489 = vmatpush3.bf16.msra.mxu0 %v9144_v25 }
0x135d   : > { %8462 = vmatprep.subr.bf16.mxu1 %v9145_v59  ;;  %8490 = vmatprep.subr.bf16.mxu0 %v9146_v39  ;;  %v9161_v59 = vld [vmem:[%s12139_s15 + $0x548] sm:$0xff]  }
0x135e   : > { %v9162_v39 = vld [vmem:[%s12139_s15 + $0x5c8] sm:$0xff]  }
0x1360   : > { %8463 = vmatpush3.bf16.msra.mxu1 %v9147_v32  ;;  %8491 = vmatpush3.bf16.msra.mxu0 %v9148_v42  ;;  %v11620_v32 = vrot.slane %v11596_v62, %v10433_v56 }
0x1361   : > { %8464 = vmatprep.subr.bf16.mxu1 %v9149_v9  ;;  %8492 = vmatprep.subr.bf16.mxu0 %v9150_v23 }
0x1364   : > { %8465 = vmatpush3.bf16.msra.mxu1 %v9151_v44  ;;  %8493 = vmatpush3.bf16.msra.mxu0 %v9152_v38  ;;  %v11624_v38 = vrot.slane %v11596_v62, %v10435_v33 }
0x1365   : > { %8466 = vmatprep.subr.bf16.mxu1 %v9153_v10  ;;  %8494 = vmatprep.subr.bf16.mxu0 %v9154_v15 }
0x1368   : > { %8467 = vmatpush3.bf16.msra.mxu1 %v9155_v22  ;;  %8495 = vmatpush3.bf16.msra.mxu0 %v9156_v27 }
0x1369   : > { %8508 = vmatprep.subr.bf16.mxu1 %v9157_v34  ;;  %8536 = vmatprep.subr.bf16.mxu0 %v9158_v51  ;;  %v11628_v34 = vrot.slane %v11596_v62, %v10437_v14 }
0x13ed   : > { %v5309_v46 = vpop.f32.mrb[104].mxu1  ;;  %v5362_v58 = vpop.f32.mrb[108].mxu0 }
0x13ee   : > { %v5310_v45 = vadd.f32 %v5309_v46, %v5032_v30  ;;  %v5363_v13 = vadd.f32 %v5362_v58, %v5040_v50  ;;  %v5311_v55 = vpop.f32.mrb[105].mxu1  ;;  %v5364_v54 = vpop.f32.mrb[109].mxu0  ;;  %v9163_v58 = vld [vmem:[%s12139_s15 + $0x508] sm:$0xff]  }
0x13ef   : > { %v5312_v61 = vadd.f32 %v5311_v55, %v5036_v29  ;;  %v5365_v48 = vadd.f32 %v5364_v54, %v5044_v41  ;;  %v5313_v5 = vpop.f32.mrb[106].mxu1  ;;  %v5366_v49 = vpop.f32.mrb[110].mxu0 }
0x13f0   : > { %v5314_v40 = vadd.f32 %v5313_v5, %v5032_v30  ;;  %v5367_v18 = vadd.f32 %v5366_v49, %v5040_v50  ;;  %v5315_v2 = vpop.f32.mrb[107].mxu1  ;;  %v5368_v21 = vpop.f32.mrb[111].mxu0  ;;  %v5699_v3 = vmax.f32 %v5310_v45, 0.0  ;;  %v5701_v0 = vmax.f32 %v5363_v13, 0.0 }
0x13f1   : > { %v5316_v28 = vadd.f32 %v5315_v2, %v5036_v29  ;;  %v5369_v60 = vadd.f32 %v5368_v21, %v5044_v41  ;;  %v5700_v47 = vmax.f32 %v5312_v61, 0.0  ;;  %v5702_v57 = vmax.f32 %v5365_v48, 0.0 }
0x13f2   : > { %v5715_v7 = vmax.f32 %v5314_v40, 0.0  ;;  %v5717_v11 = vmax.f32 %v5367_v18, 0.0 }
0x13f3   : > { %v5716_v8 = vmax.f32 %v5316_v28, 0.0  ;;  %v5718_v35 = vmax.f32 %v5369_v60, 0.0  ;;  %v9167_v60 = vld [vmem:[%s12139_s15 + $0x510] sm:$0xff]  }
0x13f4   : > { %v5763_v4 = vpack.c.bf16 %v5715_v7, %v5699_v3  ;;  %v5765_v52 = vpack.c.bf16 %v5717_v11, %v5701_v0  ;;  %v9168_v3 = vld [vmem:[%s12139_s15 + $0x590] sm:$0xff]  }
0x13f5   : > { %v5764_v43 = vpack.c.bf16 %v5716_v8, %v5700_v47  ;;  %v5766_v37 = vpack.c.bf16 %v5718_v35, %v5702_v57  ;;  %v5319_v20 = vpop.f32.mrb[108].mxu1  ;;  %v5372_v1 = vpop.f32.mrb[112].mxu0  ;;  %v9169_v57 = vld [vmem:[%s12139_s15 + $0x558] sm:$0xff]  }
0x13f6   : > { %v5320_v24 = vadd.f32 %v5319_v20, %v5032_v30  ;;  %v5373_v53 = vadd.f32 %v5372_v1, %v5040_v50  ;;  %v5321_v26 = vpop.f32.mrb[109].mxu1  ;;  %v5374_v25 = vpop.f32.mrb[113].mxu0  ;;  %v9170_v8 = vld [vmem:[%s12139_s15 + $0x5d8] sm:$0xff]  }
0x13f7   : > { %v5322_v42 = vadd.f32 %v5321_v26, %v5036_v29  ;;  %v5375_v9 = vadd.f32 %v5374_v25, %v5044_v41  ;;  %v5323_v23 = vpop.f32.mrb[110].mxu1  ;;  %v5376_v44 = vpop.f32.mrb[114].mxu0  ;;  %6860 = vmatprep.mubr.bf16.mxu1 %v5764_v43  ;;  %6906 = vmatprep.mubr.bf16.mxu0 %v5766_v37  ;;  %v9172_v26 = vld [vmem:[%s12139_s15 + $0x598] sm:$0xff]  }
0x13f8   : > { %v5324_v10 = vadd.f32 %v5323_v23, %v5032_v30  ;;  %v5377_v15 = vadd.f32 %v5376_v44, %v5040_v50  ;;  %v5325_v22 = vpop.f32.mrb[111].mxu1  ;;  %v5378_v27 = vpop.f32.mrb[115].mxu0  ;;  %6861 = vmatmul.mubr.bf16.vlgmr.msra.gmra.mrb[136].mxu1 %v5763_v4  ;;  %6907 = vmatmul.mubr.bf16.vlgmr.msra.gmra.mrb[140].mxu0 %v5765_v52  ;;  %v9164_v30 = vld [vmem:[%s12139_s15 + $0x588] sm:$0xff]   ;;  %v11638_v50 = vrot.slane %v11596_v62, %v10445_v19  ;;  %v5731_v45 = vmax.f32 %v5320_v24, 0.0  ;;  %v9174_v23 = vld [vmem:[%s12139_s15 + $0x5e0] sm:$0xff]  }
0x13f9   : > { %v5326_v51 = vadd.f32 %v5325_v22, %v5036_v29  ;;  %v5379_v46 = vadd.f32 %v5378_v27, %v5044_v41  ;;  %8509 = vmatpush3.bf16.msra.mxu1 %v9159_v63  ;;  %8537 = vmatpush3.bf16.msra.mxu0 %v9160_v17  ;;  %v5733_v13 = vmax.f32 %v5373_v53, 0.0  ;;  %v9165_v29 = vld [vmem:[%s12139_s15 + $0x550] sm:$0xff]   ;;  %v5732_v61 = vmax.f32 %v5322_v42, 0.0  ;;  %v9171_v53 = vld [vmem:[%s12139_s15 + $0x518] sm:$0xff]  }
0x13fa   : > { %v5747_v55 = vmax.f32 %v5324_v10, 0.0  ;;  %v5749_v54 = vmax.f32 %v5377_v15, 0.0  ;;  %8510 = vmatprep.subr.bf16.mxu1 %v9161_v59  ;;  %8538 = vmatprep.subr.bf16.mxu0 %v9162_v39  ;;  %v9166_v41 = vld [vmem:[%s12139_s15 + $0x5d0] sm:$0xff]   ;;  %v5734_v48 = vmax.f32 %v5375_v9, 0.0  ;;  %v9173_v9 = vld [vmem:[%s12139_s15 + $0x560] sm:$0xff]  }
0x13fb   : > { %v5748_v5 = vmax.f32 %v5326_v51, 0.0  ;;  %v5750_v49 = vmax.f32 %v5379_v46, 0.0  ;;  %v11685_v46 = vld [vmem:[%s12138_s14 + $0x18] sm:$0xff] }
0x13fc   : > { %v5779_v62 = vpack.c.bf16 %v5747_v55, %v5731_v45  ;;  %v5781_v40 = vpack.c.bf16 %v5749_v54, %v5733_v13  ;;  %v9175_v55 = vld [vmem:[%s12139_s15 + $0x520] sm:$0xff]  }
0x13fd   : > { %v5780_v18 = vpack.c.bf16 %v5748_v5, %v5732_v61  ;;  %v5782_v2 = vpack.c.bf16 %v5750_v49, %v5734_v48  ;;  %8511 = vmatpush3.bf16.msra.mxu1 %v9163_v58  ;;  %8539 = vmatpush3.bf16.msra.mxu0 %v9164_v30  ;;  %v5415_v21 = vpop.f32.mrb[112].mxu1  ;;  %v5468_v28 = vpop.f32.mrb[116].mxu0  ;;  %v9176_v54 = vld [vmem:[%s12139_s15 + $0x5a0] sm:$0xff]   ;;  %v9177_v5 = vld [vmem:[%s12139_s15 + $0x568] sm:$0xff]  }
0x13fe   : > { %v5416_v0 = vadd.f32 %v5415_v21, %v11620_v32  ;;  %v5469_v7 = vadd.f32 %v5468_v28, %v11624_v38  ;;  %v5417_v11 = vpop.f32.mrb[113].mxu1  ;;  %v5470_v47 = vpop.f32.mrb[117].mxu0  ;;  %8512 = vmatprep.subr.bf16.mxu1 %v9165_v29  ;;  %8540 = vmatprep.subr.bf16.mxu0 %v9166_v41  ;;  %v9178_v49 = vld [vmem:[%s12139_s15 + $0x5e8] sm:$0xff]   ;;  %v11705_v21 = vrot.slane %v11685_v46, %v10412_v31 }
0x13ff   : > { %v5418_v35 = vadd.f32 %v5417_v11, %v11628_v34  ;;  %v5471_v4 = vadd.f32 %v5470_v47, %v11638_v50  ;;  %v5419_v52 = vpop.f32.mrb[114].mxu1  ;;  %v5472_v43 = vpop.f32.mrb[118].mxu0  ;;  %6867 = vmatprep.mubr.bf16.mxu1 %v5780_v18  ;;  %6913 = vmatprep.mubr.bf16.mxu0 %v5782_v2  ;;  %v11715_v11 = vrot.slane %v11685_v46, %v10421_v12  ;;  %v9179_v31 = vld [vmem:[%s12139_s15 + $0x528] sm:$0xff]  }
0x1400   : > { %v5420_v37 = vadd.f32 %v5419_v52, %v11620_v32  ;;  %v5473_v20 = vadd.f32 %v5472_v43, %v11624_v38  ;;  %v5421_v1 = vpop.f32.mrb[115].mxu1  ;;  %v5474_v63 = vpop.f32.mrb[119].mxu0  ;;  %6868 = vmatmul.mubr.bf16.gmra.mrb[140].mxu1 %v5779_v62  ;;  %6914 = vmatmul.mubr.bf16.gmra.mrb[144].mxu0 %v5781_v40  ;;  %v5703_v25 = vmax.f32 %v5416_v0, 0.0  ;;  %v5705_v59 = vmax.f32 %v5469_v7, 0.0 }
0x1401   : > { %v5422_v17 = vadd.f32 %v5421_v1, %v11628_v34  ;;  %v5475_v24 = vadd.f32 %v5474_v63, %v11638_v50  ;;  %8513 = vmatpush3.bf16.msra.mxu1 %v9167_v60  ;;  %8541 = vmatpush3.bf16.msra.mxu0 %v9168_v3  ;;  %v5704_v44 = vmax.f32 %v5418_v35, 0.0  ;;  %v5706_v10 = vmax.f32 %v5471_v4, 0.0  ;;  %v9182_v35 = vld [vmem:[%s12139_s15 + $0x5f0] sm:$0xff]  }
0x1402   : > { %v5719_v39 = vmax.f32 %v5420_v37, 0.0  ;;  %v5721_v42 = vmax.f32 %v5473_v20, 0.0  ;;  %8514 = vmatprep.subr.bf16.mxu1 %v9169_v57  ;;  %8542 = vmatprep.subr.bf16.mxu0 %v9170_v8  ;;  %v11711_v7 = vrot.slane %v11685_v46, %v10414_v16  ;;  %v11727_v16 = vrot.slane %v11685_v46, %v10423_v36 }
0x1403   : > { %v5720_v15 = vmax.f32 %v5422_v17, 0.0  ;;  %v5722_v22 = vmax.f32 %v5475_v24, 0.0 }
0x1404   : > { %v11678_v27 = vpack.c.bf16 %v5719_v39, %v5703_v25  ;;  %v11680_v51 = vpack.c.bf16 %v5721_v42, %v5705_v59 }
0x1405   : > { %v5768_v58 = vpack.c.bf16 %v5720_v15, %v5704_v44  ;;  %v5770_v30 = vpack.c.bf16 %v5722_v22, %v5706_v10  ;;  %8515 = vmatpush3.bf16.msra.mxu1 %v9171_v53  ;;  %8543 = vmatpush3.bf16.msra.mxu0 %v9172_v26  ;;  %v5425_v45 = vpop.f32.mrb[116].mxu1  ;;  %v5478_v13 = vpop.f32.mrb[120].mxu0  ;;  %v9183_v53 = vld [vmem:[%s12139_s15 + $0x530] sm:$0xff]  }
0x1406   : > { %v5426_v29 = vadd.f32 %v5425_v45, %v11620_v32  ;;  %v5479_v41 = vadd.f32 %v5478_v13, %v11624_v38  ;;  %v5427_v61 = vpop.f32.mrb[117].mxu1  ;;  %v5480_v48 = vpop.f32.mrb[121].mxu0  ;;  %8516 = vmatprep.subr.bf16.mxu1 %v9173_v9  ;;  %8544 = vmatprep.subr.bf16.mxu0 %v9174_v23  ;;  %v9184_v26 = vld [vmem:[%s12139_s15 + $0x5b0] sm:$0xff]   ;;  %v9185_v9 = vld [vmem:[%s12139_s15 + $0x578] sm:$0xff]  }
0x1407   : > { %v5428_v62 = vadd.f32 %v5427_v61, %v11628_v34  ;;  %v5481_v40 = vadd.f32 %v5480_v48, %v11638_v50  ;;  %v5429_v18 = vpop.f32.mrb[118].mxu1  ;;  %v5482_v2 = vpop.f32.mrb[122].mxu0  ;;  %6952 = vmatprep.mubr.bf16.mxu1 %v5768_v58  ;;  %6998 = vmatprep.mubr.bf16.mxu0 %v5770_v30  ;;  %v9186_v23 = vld [vmem:[%s12139_s15 + $0x5f8] sm:$0xff]  }
0x1408   : > { %v5430_v28 = vadd.f32 %v5429_v18, %v11620_v32  ;;  %v5483_v60 = vadd.f32 %v5482_v2, %v11624_v38  ;;  %v5431_v3 = vpop.f32.mrb[119].mxu1  ;;  %v5484_v0 = vpop.f32.mrb[123].mxu0  ;;  %v9180_v32 = vld [vmem:[%s12139_s15 + $0x5a8] sm:$0xff]   ;;  %v5735_v12 = vmax.f32 %v5426_v29, 0.0  ;;  %v5737_v38 = vmax.f32 %v5479_v41, 0.0  ;;  %v9187_v29 = vld [vmem:[%s12139_s15 + $0x538] sm:$0xff]  }
0x1409   : > { %v5432_v47 = vadd.f32 %v5431_v3, %v11628_v34  ;;  %v5485_v57 = vadd.f32 %v5484_v0, %v11638_v50  ;;  %8517 = vmatpush3.bf16.msra.mxu1 %v9175_v55  ;;  %8545 = vmatpush3.bf16.msra.mxu0 %v9176_v54  ;;  %v9181_v50 = vld [vmem:[%s12139_s15 + $0x570] sm:$0xff]   ;;  %v5736_v4 = vmax.f32 %v5428_v62, 0.0  ;;  %v5738_v52 = vmax.f32 %v5481_v40, 0.0  ;;  %v9188_v41 = vld [vmem:[%s12139_s15 + $0x5b8] sm:$0xff]   ;;  %v9189_v62 = vld [vmem:[%s12139_s15 + $0x640] sm:$0xff]  }
0x140a   : > { %v5751_v8 = vmax.f32 %v5430_v28, 0.0  ;;  %v5753_v34 = vmax.f32 %v5483_v60, 0.0  ;;  %8518 = vmatprep.subr.bf16.mxu1 %v9177_v5  ;;  %8546 = vmatprep.subr.bf16.mxu0 %v9178_v49  ;;  %v9190_v40 = vld [vmem:[%s12139_s15 + $0x6c0] sm:$0xff]  }
0x140b   : > { %v5752_v43 = vmax.f32 %v5432_v47, 0.0  ;;  %v5754_v37 = vmax.f32 %v5485_v57, 0.0 }
0x140c   : > { %v11735_v36 = vpack.c.bf16 %v5751_v8, %v5735_v12  ;;  %v11737_v20 = vpack.c.bf16 %v5753_v34, %v5737_v38 }
0x140d   : > { %v11739_v1 = vpack.c.bf16 %v5752_v43, %v5736_v4  ;;  %v11741_v63 = vpack.c.bf16 %v5754_v37, %v5738_v52  ;;  %8519 = vmatpush3.bf16.msra.mxu1 %v9179_v31  ;;  %8547 = vmatpush3.bf16.msra.mxu0 %v9180_v32  ;;  %v5521_v17 = vpop.f32.mrb[120].mxu1  ;;  %v5574_v24 = vpop.f32.mrb[124].mxu0 }
0x140e   : > { %v5522_v25 = vadd.f32 %v5521_v17, %v11705_v21  ;;  %v5575_v59 = vadd.f32 %v5574_v24, %v11711_v7  ;;  %v5523_v39 = vpop.f32.mrb[121].mxu1  ;;  %v5576_v42 = vpop.f32.mrb[125].mxu0  ;;  %8520 = vmatprep.subr.bf16.mxu1 %v9181_v50  ;;  %8548 = vmatprep.subr.bf16.mxu0 %v9182_v35  ;;  %v9191_v50 = vld [vmem:[%s12139_s15 + $0x600] sm:$0xff]   ;;  %v9193_v17 = vld [vmem:[%s12139_s15 + $0x648] sm:$0xff]  }
0x140f   : > { %v5524_v44 = vadd.f32 %v5523_v39, %v11715_v11  ;;  %v5577_v10 = vadd.f32 %v5576_v42, %v11727_v16  ;;  %v5525_v15 = vpop.f32.mrb[122].mxu1  ;;  %v5578_v22 = vpop.f32.mrb[126].mxu0  ;;  %v9192_v35 = vld [vmem:[%s12139_s15 + $0x680] sm:$0xff]   ;;  %v9194_v24 = vld [vmem:[%s12139_s15 + $0x6c8] sm:$0xff]  }
0x1410   : > { %v5526_v58 = vadd.f32 %v5525_v15, %v11705_v21  ;;  %v5579_v30 = vadd.f32 %v5578_v22, %v11711_v7  ;;  %v5527_v45 = vpop.f32.mrb[123].mxu1  ;;  %v5580_v13 = vpop.f32.mrb[127].mxu0  ;;  %v5707_v61 = vmax.f32 %v5522_v25, 0.0  ;;  %v5709_v48 = vmax.f32 %v5575_v59, 0.0 }
0x1411   : > { %v5528_v55 = vadd.f32 %v5527_v45, %v11715_v11  ;;  %v5581_v54 = vadd.f32 %v5580_v13, %v11727_v16  ;;  %8521 = vmatpush3.bf16.msra.mxu1 %v9183_v53  ;;  %8549 = vmatpush3.bf16.msra.mxu0 %v9184_v26  ;;  %v5708_v18 = vmax.f32 %v5524_v44, 0.0  ;;  %v5710_v2 = vmax.f32 %v5577_v10, 0.0 }
0x1412   : > { %v5723_v5 = vmax.f32 %v5526_v58, 0.0  ;;  %v5725_v49 = vmax.f32 %v5579_v30, 0.0  ;;  %8522 = vmatprep.subr.bf16.mxu1 %v9185_v9  ;;  %8550 = vmatprep.subr.bf16.mxu0 %v9186_v23  ;;  %v11801_v53 = vrot.slane %v11685_v46, %v10433_v56  ;;  %v11805_v26 = vrot.slane %v11685_v46, %v10435_v33 }
0x1413   : > { %v5724_v28 = vmax.f32 %v5528_v55, 0.0  ;;  %v5726_v60 = vmax.f32 %v5581_v54, 0.0  ;;  %v11813_v9 = vrot.slane %v11685_v46, %v10437_v14  ;;  %v11821_v33 = vrot.slane %v11685_v46, %v10445_v19  ;;  %v9195_v14 = vld [vmem:[%s12139_s15 + $0x608] sm:$0xff]   ;;  %v9197_v19 = vld [vmem:[%s12139_s15 + $0x650] sm:$0xff]  }
0x1414   : > { %v11775_v3 = vpack.c.bf16 %v5723_v5, %v5707_v61  ;;  %v11777_v0 = vpack.c.bf16 %v5725_v49, %v5709_v48  ;;  %v9198_v46 = vld [vmem:[%s12139_s15 + $0x6d0] sm:$0xff]  }
0x1415   : > { %v11779_v47 = vpack.c.bf16 %v5724_v28, %v5708_v18  ;;  %v11781_v57 = vpack.c.bf16 %v5726_v60, %v5710_v2  ;;  %8523 = vmatpush3.bf16.msra.mxu1 %v9187_v29  ;;  %8551 = vmatpush3.bf16.msra.mxu0 %v9188_v41  ;;  %v5531_v31 = vpop.f32.mrb[124].mxu1  ;;  %v5584_v32 = vpop.f32.mrb[128].mxu0  ;;  %v9199_v41 = vld [vmem:[%s12139_s15 + $0x610] sm:$0xff]   ;;  %v9202_v18 = vld [vmem:[%s12139_s15 + $0x6d8] sm:$0xff]  }
0x1416   : > { %v5532_v12 = vadd.f32 %v5531_v31, %v11705_v21  ;;  %v5585_v38 = vadd.f32 %v5584_v32, %v11711_v7  ;;  %v5533_v8 = vpop.f32.mrb[125].mxu1  ;;  %v5586_v34 = vpop.f32.mrb[129].mxu0  ;;  %8564 = vmatprep.subr.bf16.mxu1 %v9189_v62  ;;  %8592 = vmatprep.subr.bf16.mxu0 %v9190_v40  ;;  %v9200_v61 = vld [vmem:[%s12139_s15 + $0x690] sm:$0xff]   ;;  %v9201_v40 = vld [vmem:[%s12139_s15 + $0x658] sm:$0xff]  }
0x1417   : > { %v5534_v4 = vadd.f32 %v5533_v8, %v11715_v11  ;;  %v5587_v52 = vadd.f32 %v5586_v34, %v11727_v16  ;;  %v5535_v43 = vpop.f32.mrb[126].mxu1  ;;  %v5588_v37 = vpop.f32.mrb[130].mxu0 }
0x1418   : > { %v5536_v25 = vadd.f32 %v5535_v43, %v11705_v21  ;;  %v5589_v59 = vadd.f32 %v5588_v37, %v11711_v7  ;;  %6953 = vmatmul.mubr.bf16.vlgmr.msra.gmra.mrb[144].mxu1 %v11678_v27  ;;  %6999 = vmatmul.mubr.bf16.vlgmr.msra.gmra.mrb[148].mxu0 %v11680_v51  ;;  %v5537_v39 = vpop.f32.mrb[127].mxu1  ;;  %v5590_v42 = vpop.f32.mrb[131].mxu0  ;;  %v5739_v27 = vmax.f32 %v5532_v12, 0.0  ;;  %v5741_v51 = vmax.f32 %v5585_v38, 0.0  ;;  %v9206_v43 = vld [vmem:[%s12139_s15 + $0x6e0] sm:$0xff]  }
0x1419   : > { %v5538_v56 = vadd.f32 %v5537_v39, %v11715_v11  ;;  %v5591_v23 = vadd.f32 %v5590_v42, %v11727_v16  ;;  %6959 = vmatprep.mubr.bf16.mxu1 %v11739_v1  ;;  %7005 = vmatprep.mubr.bf16.mxu0 %v11741_v63  ;;  %v9196_v11 = vld [vmem:[%s12139_s15 + $0x688] sm:$0xff]   ;;  %v5740_v16 = vmax.f32 %v5534_v4, 0.0  ;;  %v5742_v1 = vmax.f32 %v5587_v52, 0.0 }
0x141a   : > { %v5755_v21 = vmax.f32 %v5536_v25, 0.0  ;;  %v5757_v7 = vmax.f32 %v5589_v59, 0.0  ;;  %8565 = vmatpush3.bf16.msra.mxu1 %v9191_v50  ;;  %8593 = vmatpush3.bf16.msra.mxu0 %v9192_v35 }
0x141b   : > { %v5756_v63 = vmax.f32 %v5538_v56, 0.0  ;;  %v5758_v44 = vmax.f32 %v5591_v23, 0.0  ;;  %8566 = vmatprep.subr.bf16.mxu1 %v9193_v17  ;;  %8594 = vmatprep.subr.bf16.mxu0 %v9194_v24 }
0x141c   : > { %v11835_v10 = vpack.c.bf16 %v5755_v21, %v5739_v27  ;;  %v11837_v15 = vpack.c.bf16 %v5757_v7, %v5741_v51  ;;  %v9207_v51 = vld [vmem:[%s12139_s15 + $0x620] sm:$0xff]  }
0x141d   : > { %v11839_v22 = vpack.c.bf16 %v5756_v63, %v5740_v16  ;;  %v11841_v58 = vpack.c.bf16 %v5758_v44, %v5742_v1  ;;  %v5627_v30 = vpop.f32.mrb[128].mxu1  ;;  %v5680_v45 = vpop.f32.mrb[132].mxu0  ;;  %v9208_v21 = vld [vmem:[%s12139_s15 + $0x6a0] sm:$0xff]   ;;  %v9209_v1 = vld [vmem:[%s12139_s15 + $0x668] sm:$0xff]  }
0x141e   : > { %8567 = vmatpush3.bf16.msra.mxu1 %v9195_v14  ;;  %8595 = vmatpush3.bf16.msra.mxu0 %v9196_v11  ;;  %v5628_v13 = vadd.f32 %v5627_v30, %v11801_v53  ;;  %v5681_v55 = vadd.f32 %v5680_v45, %v11805_v26  ;;  %v5629_v54 = vpop.f32.mrb[129].mxu1  ;;  %v5682_v29 = vpop.f32.mrb[133].mxu0  ;;  %v9210_v63 = vld [vmem:[%s12139_s15 + $0x6e8] sm:$0xff]  }
0x141f   : > { %v5630_v48 = vadd.f32 %v5629_v54, %v11813_v9  ;;  %v5683_v5 = vadd.f32 %v5682_v29, %v11821_v33  ;;  %v5631_v49 = vpop.f32.mrb[130].mxu1  ;;  %v5684_v62 = vpop.f32.mrb[134].mxu0  ;;  %8568 = vmatprep.subr.bf16.mxu1 %v9197_v19  ;;  %8596 = vmatprep.subr.bf16.mxu0 %v9198_v46 }
0x1420   : > { %v5632_v2 = vadd.f32 %v5631_v49, %v11801_v53  ;;  %v5685_v28 = vadd.f32 %v5684_v62, %v11805_v26  ;;  %6960 = vmatmul.mubr.bf16.gmra.mrb[148].mxu1 %v11735_v36  ;;  %7006 = vmatmul.mubr.bf16.gmra.mrb[152].mxu0 %v11737_v20  ;;  %v5633_v60 = vpop.f32.mrb[131].mxu1  ;;  %v5686_v31 = vpop.f32.mrb[135].mxu0  ;;  %v5711_v38 = vmax.f32 %v5628_v13, 0.0  ;;  %v5713_v8 = vmax.f32 %v5681_v55, 0.0  ;;  %v9203_v36 = vld [vmem:[%s12139_s15 + $0x618] sm:$0xff]   ;;  %v9214_v49 = vld [vmem:[%s12139_s15 + $0x6f0] sm:$0xff]  }
0x1421   : > { %v5634_v32 = vadd.f32 %v5633_v60, %v11813_v9  ;;  %v5687_v12 = vadd.f32 %v5686_v31, %v11821_v33  ;;  %7044 = vmatprep.mubr.bf16.mxu1 %v11779_v47  ;;  %7090 = vmatprep.mubr.bf16.mxu0 %v11781_v57  ;;  %v9204_v20 = vld [vmem:[%s12139_s15 + $0x698] sm:$0xff]   ;;  %v5712_v35 = vmax.f32 %v5630_v48, 0.0  ;;  %v5714_v4 = vmax.f32 %v5683_v5, 0.0  ;;  %v9205_v57 = vld [vmem:[%s12139_s15 + $0x660] sm:$0xff]   ;;  %v9216_v60 = vld [vmem:[%s12139_s15 + $0x6b0] sm:$0xff]  }
0x1422   : > { %v5727_v34 = vmax.f32 %v5632_v2, 0.0  ;;  %v5729_v50 = vmax.f32 %v5685_v28, 0.0  ;;  %8569 = vmatpush3.bf16.msra.mxu1 %v9199_v41  ;;  %8597 = vmatpush3.bf16.msra.mxu0 %v9200_v61  ;;  %v9211_v61 = vld [vmem:[%s12139_s15 + $0x628] sm:$0xff]   ;;  %v9215_v28 = vld [vmem:[%s12139_s15 + $0x630] sm:$0xff]   ;;  %v9217_v31 = vld [vmem:[%s12139_s15 + $0x678] sm:$0xff]  }
0x1423   : > { %v5728_v52 = vmax.f32 %v5634_v32, 0.0  ;;  %v5730_v47 = vmax.f32 %v5687_v12, 0.0  ;;  %8570 = vmatprep.subr.bf16.mxu1 %v9201_v40  ;;  %8598 = vmatprep.subr.bf16.mxu0 %v9202_v18  ;;  %v9218_v32 = vld [vmem:[%s12139_s15 + $0x6f8] sm:$0xff]  }
0x1424   : > { %v11879_v37 = vpack.c.bf16 %v5727_v34, %v5711_v38  ;;  %v11881_v17 = vpack.c.bf16 %v5729_v50, %v5713_v8  ;;  %v9219_v12 = vld [vmem:[%s12139_s15 + $0x638] sm:$0xff]   ;;  %v9221_v8 = vld [vmem:[%s12139_s15 + $0x740] sm:$0xff]  }
0x1425   : > { %v11883_v24 = vpack.c.bf16 %v5728_v52, %v5712_v35  ;;  %v11885_v25 = vpack.c.bf16 %v5730_v47, %v5714_v4  ;;  %v5637_v59 = vpop.f32.mrb[132].mxu1  ;;  %v5690_v39 = vpop.f32.mrb[136].mxu0  ;;  %v9220_v38 = vld [vmem:[%s12139_s15 + $0x6b8] sm:$0xff]   ;;  %v9222_v34 = vld [vmem:[%s12139_s15 + $0x7c0] sm:$0xff]   ;;  %v9226_v35 = vld [vmem:[%s12139_s15 + $0x7c8] sm:$0xff]  }
0x1426   : > { %8571 = vmatpush3.bf16.msra.mxu1 %v9203_v36  ;;  %8599 = vmatpush3.bf16.msra.mxu0 %v9204_v20  ;;  %v5638_v42 = vadd.f32 %v5637_v59, %v11801_v53  ;;  %v5691_v56 = vadd.f32 %v5690_v39, %v11805_v26  ;;  %v5639_v23 = vpop.f32.mrb[133].mxu1  ;;  %v5692_v27 = vpop.f32.mrb[137].mxu0  ;;  %v9223_v50 = vld [vmem:[%s12139_s15 + $0x700] sm:$0xff]   ;;  %v9225_v20 = vld [vmem:[%s12139_s15 + $0x748] sm:$0xff]   ;;  %v9233_v47 = vld [vmem:[%s12139_s15 + $0x758] sm:$0xff]  }
0x1427   : > { %v5640_v7 = vadd.f32 %v5639_v23, %v11813_v9  ;;  %v5693_v14 = vadd.f32 %v5692_v27, %v11821_v33  ;;  %v5641_v11 = vpop.f32.mrb[134].mxu1  ;;  %v5694_v16 = vpop.f32.mrb[138].mxu0  ;;  %8572 = vmatprep.subr.bf16.mxu1 %v9205_v57  ;;  %8600 = vmatprep.subr.bf16.mxu0 %v9206_v43  ;;  %v9224_v36 = vld [vmem:[%s12139_s15 + $0x780] sm:$0xff]   ;;  %v9227_v4 = vld [vmem:[%s12139_s15 + $0x708] sm:$0xff]   ;;  %v9234_v57 = vld [vmem:[%s12139_s15 + $0x7d8] sm:$0xff]  }
0x1428   : > { %v5642_v44 = vadd.f32 %v5641_v11, %v11801_v53  ;;  %v5695_v19 = vadd.f32 %v5694_v16, %v11805_v26  ;;  %v5643_v46 = vpop.f32.mrb[135].mxu1  ;;  %v5696_v30 = vpop.f32.mrb[139].mxu0  ;;  %v5743_v55 = vmax.f32 %v5638_v42, 0.0  ;;  %v5745_v54 = vmax.f32 %v5691_v56, 0.0  ;;  %v9212_v53 = vld [vmem:[%s12139_s15 + $0x6a8] sm:$0xff]   ;;  %v9235_v43 = vld [vmem:[%s12139_s15 + $0x718] sm:$0xff]  }
0x1429   : > { %v5644_v45 = vadd.f32 %v5643_v46, %v11813_v9  ;;  %v5697_v13 = vadd.f32 %v5696_v30, %v11821_v33  ;;  %v5744_v26 = vmax.f32 %v5640_v7, 0.0  ;;  %v5746_v48 = vmax.f32 %v5693_v14, 0.0  ;;  %v9213_v33 = vld [vmem:[%s12139_s15 + $0x670] sm:$0xff]   ;;  %v9228_v52 = vld [vmem:[%s12139_s15 + $0x788] sm:$0xff]   ;;  %v9236_v59 = vld [vmem:[%s12139_s15 + $0x798] sm:$0xff]  }
0x142a   : > { %v5759_v29 = vmax.f32 %v5642_v44, 0.0  ;;  %v5761_v41 = vmax.f32 %v5695_v19, 0.0  ;;  %8573 = vmatpush3.bf16.msra.mxu1 %v9207_v51  ;;  %8601 = vmatpush3.bf16.msra.mxu0 %v9208_v21  ;;  %v9241_v39 = vld [vmem:[%s12139_s15 + $0x768] sm:$0xff]   ;;  %v9245_v27 = vld [vmem:[%s12139_s15 + $0x770] sm:$0xff]   ;;  %v9249_v14 = vld [vmem:[%s12139_s15 + $0x778] sm:$0xff]  }
0x142b   : > { %v5760_v5 = vmax.f32 %v5644_v45, 0.0  ;;  %v5762_v9 = vmax.f32 %v5697_v13, 0.0  ;;  %8574 = vmatprep.subr.bf16.mxu1 %v9209_v1  ;;  %8602 = vmatprep.subr.bf16.mxu0 %v9210_v63  ;;  %v9242_v42 = vld [vmem:[%s12139_s15 + $0x7e8] sm:$0xff]   ;;  %v9246_v51 = vld [vmem:[%s12139_s15 + $0x7f0] sm:$0xff]   ;;  %v9250_v11 = vld [vmem:[%s12139_s15 + $0x7f8] sm:$0xff]  }
0x142c   : > { %v11919_v62 = vpack.c.bf16 %v5759_v29, %v5743_v55  ;;  %v11921_v40 = vpack.c.bf16 %v5761_v41, %v5745_v54  ;;  %v9243_v56 = vld [vmem:[%s12139_s15 + $0x728] sm:$0xff]   ;;  %v9247_v21 = vld [vmem:[%s12139_s15 + $0x730] sm:$0xff]   ;;  %v9251_v16 = vld [vmem:[%s12139_s15 + $0x738] sm:$0xff]  }
0x142d   : > { %v11923_v18 = vpack.c.bf16 %v5760_v5, %v5744_v26  ;;  %v11925_v2 = vpack.c.bf16 %v5762_v9, %v5746_v48  ;;  %v9244_v23 = vld [vmem:[%s12139_s15 + $0x7a8] sm:$0xff]   ;;  %v9248_v7 = vld [vmem:[%s12139_s15 + $0x7b0] sm:$0xff]   ;;  %v9252_v1 = vld [vmem:[%s12139_s15 + $0x7b8] sm:$0xff]  }
0x142e   : > { %8575 = vmatpush3.bf16.msra.mxu1 %v9211_v61  ;;  %8603 = vmatpush3.bf16.msra.mxu0 %v9212_v53  ;;  %v7990_v19 = vld [vmem:[%s12140_s16 + $0x1] ss:$0 sm:$0xff] }
0x142f   : > { %8576 = vmatprep.subr.bf16.mxu1 %v9213_v33  ;;  %8604 = vmatprep.subr.bf16.mxu0 %v9214_v49 }
0x1432   : > { %8577 = vmatpush3.bf16.msra.mxu1 %v9215_v28  ;;  %8605 = vmatpush3.bf16.msra.mxu0 %v9216_v60 }
0x1433   : > { %8578 = vmatprep.subr.bf16.mxu1 %v9217_v31  ;;  %8606 = vmatprep.subr.bf16.mxu0 %v9218_v32 }
0x1436   : > { %8579 = vmatpush3.bf16.msra.mxu1 %v9219_v12  ;;  %8607 = vmatpush3.bf16.msra.mxu0 %v9220_v38 }
0x1437   : > { %8620 = vmatprep.subr.bf16.mxu1 %v9221_v8  ;;  %8648 = vmatprep.subr.bf16.mxu0 %v9222_v34 }
0x1439   : > { %7045 = vmatmul.mubr.bf16.vlgmr.msra.gmra.mrb[152].mxu1 %v11775_v3  ;;  %7091 = vmatmul.mubr.bf16.vlgmr.msra.gmra.mrb[156].mxu0 %v11777_v0  ;;  %v9229_v3 = vld [vmem:[%s12139_s15 + $0x750] sm:$0xff]  }
0x143a   : > { %7051 = vmatprep.mubr.bf16.mxu1 %v11839_v22  ;;  %7097 = vmatprep.mubr.bf16.mxu0 %v11841_v58  ;;  %v9230_v0 = vld [vmem:[%s12139_s15 + $0x7d0] sm:$0xff]  }
0x143b   : > { %8621 = vmatpush3.bf16.msra.mxu1 %v9223_v50  ;;  %8649 = vmatpush3.bf16.msra.mxu0 %v9224_v36  ;;  %v9231_v22 = vld [vmem:[%s12139_s15 + $0x710] sm:$0xff]  }
0x143c   : > { %8622 = vmatprep.subr.bf16.mxu1 %v9225_v20  ;;  %8650 = vmatprep.subr.bf16.mxu0 %v9226_v35  ;;  %v9232_v58 = vld [vmem:[%s12139_s15 + $0x790] sm:$0xff]  }
0x143f   : > { %8623 = vmatpush3.bf16.msra.mxu1 %v9227_v4  ;;  %8651 = vmatpush3.bf16.msra.mxu0 %v9228_v52 }
0x1440   : > { %8624 = vmatprep.subr.bf16.mxu1 %v9229_v3  ;;  %8652 = vmatprep.subr.bf16.mxu0 %v9230_v0 }
0x1441   : > { %7052 = vmatmul.mubr.bf16.gmra.mrb[156].mxu1 %v11835_v10  ;;  %7098 = vmatmul.mubr.bf16.gmra.mrb[160].mxu0 %v11837_v15  ;;  %v9237_v10 = vld [vmem:[%s12139_s15 + $0x760] sm:$0xff]  }
0x1442   : > { %7136 = vmatprep.mubr.bf16.mxu1 %v11883_v24  ;;  %7182 = vmatprep.mubr.bf16.mxu0 %v11885_v25  ;;  %v9238_v15 = vld [vmem:[%s12139_s15 + $0x7e0] sm:$0xff]  }
0x1443   : > { %8625 = vmatpush3.bf16.msra.mxu1 %v9231_v22  ;;  %8653 = vmatpush3.bf16.msra.mxu0 %v9232_v58  ;;  %v9239_v24 = vld [vmem:[%s12139_s15 + $0x720] sm:$0xff]  }
0x1444   : > { %8626 = vmatprep.subr.bf16.mxu1 %v9233_v47  ;;  %8654 = vmatprep.subr.bf16.mxu0 %v9234_v57  ;;  %v9240_v25 = vld [vmem:[%s12139_s15 + $0x7a0] sm:$0xff]  }
0x1447   : > { %8627 = vmatpush3.bf16.msra.mxu1 %v9235_v43  ;;  %8655 = vmatpush3.bf16.msra.mxu0 %v9236_v59 }
0x1448   : > { %8628 = vmatprep.subr.bf16.mxu1 %v9237_v10  ;;  %8656 = vmatprep.subr.bf16.mxu0 %v9238_v15 }
0x144b   : > { %8629 = vmatpush3.bf16.msra.mxu1 %v9239_v24  ;;  %8657 = vmatpush3.bf16.msra.mxu0 %v9240_v25 }
0x144c   : > { %8630 = vmatprep.subr.bf16.mxu1 %v9241_v39  ;;  %8658 = vmatprep.subr.bf16.mxu0 %v9242_v42 }
0x144f   : > { %8631 = vmatpush3.bf16.msra.mxu1 %v9243_v56  ;;  %8659 = vmatpush3.bf16.msra.mxu0 %v9244_v23 }
0x1450   : > { %8632 = vmatprep.subr.bf16.mxu1 %v9245_v27  ;;  %8660 = vmatprep.subr.bf16.mxu0 %v9246_v51 }
0x1453   : > { %8633 = vmatpush3.bf16.msra.mxu1 %v9247_v21  ;;  %8661 = vmatpush3.bf16.msra.mxu0 %v9248_v7 }
0x1454   : > { %8634 = vmatprep.subr.bf16.mxu1 %v9249_v14  ;;  %8662 = vmatprep.subr.bf16.mxu0 %v9250_v11 }
0x1457   : > { %8635 = vmatpush3.bf16.msra.mxu1 %v9251_v16  ;;  %8663 = vmatpush3.bf16.msra.mxu0 %v9252_v1 }
0x145a   : > { %7137 = vmatmul.mubr.bf16.vlgmr.msra.gmra.mrb[160].mxu1 %v11879_v37  ;;  %7183 = vmatmul.mubr.bf16.vlgmr.msra.gmra.mrb[164].mxu0 %v11881_v17 }
0x145b   : > { %7143 = vmatprep.mubr.bf16.mxu1 %v11923_v18  ;;  %7189 = vmatprep.mubr.bf16.mxu0 %v11925_v2 }
0x1462   : > { %7144 = vmatmul.mubr.bf16.gmra.mrb[164].mxu1 %v11919_v62  ;;  %7190 = vmatmul.mubr.bf16.gmra.mrb[168].mxu0 %v11921_v40 }
0x14cb   : > { %v8468_v63 = vpop.f32.mrb[136].mxu1  ;;  %v8496_v44 = vpop.f32.mrb[140].mxu0 }
0x14cc   : > { %v8469_v46 = vpop.f32.mrb[137].mxu1  ;;  %v8497_v30 = vpop.f32.mrb[141].mxu0 }
0x14cd   : > { %v8470_v45 = vadd.f32 %v8469_v46, %v8468_v63  ;;  %v8498_v37 = vadd.f32 %v8497_v30, %v8496_v44  ;;  %v8471_v13 = vpop.f32.mrb[138].mxu1  ;;  %v8499_v17 = vpop.f32.mrb[142].mxu0 }
0x14ce   : > { %v8472_v55 = vpop.f32.mrb[139].mxu1  ;;  %v8500_v54 = vpop.f32.mrb[143].mxu0 }
0x14cf   : > { %v6863_v29 = vadd.f32 %v8470_v45, %v7990_v19 }
0x14d1   : > { %v6909_v41 = vadd.f32 %v8498_v37, %v6863_v29 }
0x14d3   : > { %v8474_v61 = vpop.f32.mrb[140].mxu1  ;;  %v8502_v53 = vpop.f32.mrb[144].mxu0 }
0x14d4   : > { %v8475_v26 = vpop.f32.mrb[141].mxu1  ;;  %v8503_v48 = vpop.f32.mrb[145].mxu0 }
0x14d5   : > { %v8477_v5 = vpop.f32.mrb[142].mxu1  ;;  %v8505_v9 = vpop.f32.mrb[146].mxu0 }
0x14d6   : > { %v8478_v33 = vpop.f32.mrb[143].mxu1  ;;  %v8506_v49 = vpop.f32.mrb[147].mxu0 }
0x14eb   : > { %v8524_v62 = vpop.f32.mrb[144].mxu1  ;;  %v8552_v40 = vpop.f32.mrb[148].mxu0 }
0x14ec   : > { %v8525_v18 = vpop.f32.mrb[145].mxu1  ;;  %v8553_v2 = vpop.f32.mrb[149].mxu0 }
0x14ed   : > { %v8526_v28 = vadd.f32 %v8525_v18, %v8524_v62  ;;  %v8554_v60 = vadd.f32 %v8553_v2, %v8552_v40  ;;  %v8527_v31 = vpop.f32.mrb[146].mxu1  ;;  %v8555_v32 = vpop.f32.mrb[150].mxu0 }
0x14ee   : > { %v8528_v12 = vpop.f32.mrb[147].mxu1  ;;  %v8556_v38 = vpop.f32.mrb[151].mxu0 }
0x14ef   : > { %v6955_v8 = vadd.f32 %v8526_v28, %v6909_v41  ;;  %v9501_v28 = vmov 0.0  }
0x14f0   : > { %8851 = vmatprep.subr.bf16.mxu1 %v9501_v28  ;;  %8855 = vmatprep.mubr.msk.bf16.mxu1 %vm9502_vm4, %v9501_v28 }
0x14f1   : > { %v7001_v34 = vadd.f32 %v8554_v60, %v6955_v8  ;;  %v9254_v60 = vld [vmem:[%s12143_s19 + $0x8] sm:$0xff]   ;;  %v7197_v8 = vld [vmem:[%s12141_s17] sm:$0x1] }
0x14f3   : > { %v8530_v50 = vpop.f32.mrb[148].mxu1  ;;  %v8558_v36 = vpop.f32.mrb[152].mxu0 }
0x14f4   : > { %v8531_v20 = vpop.f32.mrb[149].mxu1  ;;  %v8559_v35 = vpop.f32.mrb[153].mxu0  ;;  %v7198_v50 = vld [vmem:[%s12142_s18] sm:$0x1] }
0x14f5   : > { %v8533_v4 = vpop.f32.mrb[150].mxu1  ;;  %v8561_v52 = vpop.f32.mrb[154].mxu0 }
0x14f6   : > { %v8534_v3 = vpop.f32.mrb[151].mxu1  ;;  %v8562_v0 = vpop.f32.mrb[155].mxu0  ;;  %v7220_v4 = vld [vmem:[%s12144_s20] sm:$0x1] }
0x150c   : > { %v8580_v22 = vpop.f32.mrb[152].mxu1  ;;  %v8608_v58 = vpop.f32.mrb[156].mxu0 }
0x150d   : > { %v8581_v47 = vpop.f32.mrb[153].mxu1  ;;  %v8609_v57 = vpop.f32.mrb[157].mxu0 }
0x150e   : > { %v8582_v43 = vadd.f32 %v8581_v47, %v8580_v22  ;;  %v8610_v59 = vadd.f32 %v8609_v57, %v8608_v58  ;;  %v8583_v10 = vpop.f32.mrb[154].mxu1  ;;  %v8611_v15 = vpop.f32.mrb[158].mxu0 }
0x150f   : > { %v8584_v24 = vpop.f32.mrb[155].mxu1  ;;  %v8612_v25 = vpop.f32.mrb[159].mxu0 }
0x1510   : > { %v7047_v39 = vadd.f32 %v8582_v43, %v7001_v34 }
0x1512   : > { %v7093_v42 = vadd.f32 %v8610_v59, %v7047_v39 }
0x1514   : > { %v8586_v56 = vpop.f32.mrb[156].mxu1  ;;  %v8614_v23 = vpop.f32.mrb[160].mxu0 }
0x1515   : > { %v8587_v27 = vpop.f32.mrb[157].mxu1  ;;  %v8615_v51 = vpop.f32.mrb[161].mxu0 }
0x1516   : > { %v8589_v21 = vpop.f32.mrb[158].mxu1  ;;  %v8617_v7 = vpop.f32.mrb[162].mxu0 }
0x1517   : > { %v8590_v14 = vpop.f32.mrb[159].mxu1  ;;  %v8618_v11 = vpop.f32.mrb[163].mxu0 }
0x152d   : > { %v8636_v16 = vpop.f32.mrb[160].mxu1  ;;  %v8664_v1 = vpop.f32.mrb[164].mxu0 }
0x152e   : > { %v8637_v63 = vpop.f32.mrb[161].mxu1  ;;  %v8665_v44 = vpop.f32.mrb[165].mxu0 }
0x152f   : > { %v8638_v19 = vadd.f32 %v8637_v63, %v8636_v16  ;;  %v8666_v46 = vadd.f32 %v8665_v44, %v8664_v1  ;;  %v8639_v30 = vpop.f32.mrb[162].mxu1  ;;  %v8667_v45 = vpop.f32.mrb[166].mxu0 }
0x1530   : > { %v8640_v37 = vpop.f32.mrb[163].mxu1  ;;  %v8668_v13 = vpop.f32.mrb[167].mxu0 }
0x1531   : > { %v7139_v17 = vadd.f32 %v8638_v19, %v7093_v42 }
0x1533   : > { %v7185_v55 = vadd.f32 %v8666_v46, %v7139_v17 }
0x1535   : > { %v8642_v54 = vpop.f32.mrb[164].mxu1  ;;  %v8670_v29 = vpop.f32.mrb[168].mxu0  ;;  %v7196_v41 = vadd.f32 %v7185_v55, %v11304_v6  ;;  %v9253_v6 = vld [vmem:[%s12143_s19] sm:$0xff]  }
0x1536   : > { %v8643_v61 = vpop.f32.mrb[165].mxu1  ;;  %v8671_v53 = vpop.f32.mrb[169].mxu0  ;;  %8852 = vmatpush3.bf16.msra.mxu1 %v9253_v6 }
0x1537   : > { %v8645_v26 = vpop.f32.mrb[166].mxu1  ;;  %v8673_v48 = vpop.f32.mrb[170].mxu0  ;;  %v7200_v5 = vsel %vm7199_vm3, %v7196_v41, 0.0  ;;  %8853 = vmatprep.subr.bf16.mxu1 %v9501_v28 }
0x1538   : > { %v8646_v9 = vpop.f32.mrb[167].mxu1  ;;  %v8674_v33 = vpop.f32.mrb[171].mxu0  ;;  %7201 = vadd.xlane.f32.xlu0 %v7200_v5 }
0x153a   : > { %8854 = vmatpush3.bf16.msra.mxu1 %v9254_v60 }
0x15c5   : > { %v7202_v49 = vpop.xlane.xlu0 %7201 }
0x15c6   : > { %v7203_v62 = vmul.f32 0.03125, %v7202_v49 }
0x15c8   : > { %v7204_v40 = vsub.f32 %v7196_v41, %v7203_v62 }
0x15ca   : > { %v7205_v18 = vmul.f32 %v7204_v40, %v7204_v40 }
0x15cc   : > { %v7206_v2 = vsel %vm7199_vm3, %v7205_v18, 0.0 }
0x15cd   : > { %7207 = vadd.xlane.f32.xlu1 %v7206_v2 }
0x165a   : > { %v7208_v31 = vpop.xlane.xlu1 %7207 }
0x165b   : > { %v7209_v32 = vmul.f32 0.03125, %v7208_v31 }
0x165d   : > { %v7210_v12 = vadd.f32 1e-05, %v7209_v32 }
0x165f   : > { %9415 = vrsqrt.f32 %v7210_v12 }
0x1669   : > { %v9416_v38 = vpop.eup %9415 }
0x166a   : > { %v7212_v34 = vmul.f32 %v9416_v38, %v7204_v40 }
0x166c   : > { %v7213_v36 = vmul.f32 %v7212_v34, %v7197_v8 }
0x166e   : > { %v7214_v20 = vadd.f32 %v7213_v36, %v7198_v50 }
0x1670   : > { %v7215_v35 = vpack.c.bf16 %v7214_v20, %v7214_v20 }
0x1672   : > { %8856 = vmatmul.mubr.msk.bf16.vlgmr.msra.gmra.mrb[168].mxu1 %vm780_vm1, %v7215_v35 }
0x1745   : > { %v7270_v52 = vpop.f32.mrb[168].mxu1 }
0x1746   : > { %v7271_v3 = vadd.f32 %v7270_v52, %v7220_v4  ;;  %v8857_v0 = vpop.f32.mrb[169].mxu1 }
0x1747   : > { %v7273_v22 = vpop.f32.mrb[170].mxu1 }
0x1748   : > { %7276 = vst [vmem:[%s648_s23] sm:$0x1] %v7271_v3  ;;  %v8858_v58 = vpop.f32.mrb[171].mxu1 }
0x1749   : > { %9447 = shalt.err (!%p9444_p3)
}
0x174a   : > { %s9448_s4 = scalar_lea.hbm %s12082_s29, 16  ;;  %s9452_s24 = scalar_lea.hbm %s12194_s28, 32 }
0x174b   : > { %p9449_p4 = scmp.ne.s32.totalorder %s12082_s29, %s9448_s4  ;;  %p9453_p9 = scmp.lt.u32.totalorder %s12082_s29, %s12194_s28 }
0x174c   : > { %p9454_p10 = scmp.lt.u32.totalorder %s9452_s24, %s9448_s4  ;;  %p9456_p12 = scmp.lt.u32.totalorder %s9448_s4, %s12082_s29 }
0x174d   : > { %p9450_p7 = pnand %p9449_p4, %p9652_p5 }
0x174e   : > { %p9455_p11 = por %p9454_p10, %p9453_p9 }
0x174f   : > { %p9451_p8 = pneg %p9450_p7 }
0x1750   : > { %p9457_p13 = por %p9456_p12, %p9455_p11 }
0x1752   : > { %p9458_p0 = pnand %p9457_p13, %p9451_p8 }
0x1754   : > { %9461 = shalt.err (!%p9458_p0)
}
0x1755   : > { %8899 = dma.vmem_to_hbm [thread:$0]  (%p9652_p5), %s12084_s26, 16, %s12082_s29, %s7278_s21  }
0x1756 PF: > { %s12195_s3 = sld [smem:[#allocation7_spill]]  ;;  %s12196_s0 = sld [smem:[#allocation5_spill]] }
0x175c   : > { %p8905_p1 = scmp.ge.s32.totalorder %s12195_s3, 2  ;;  %s7302_s23 = sand.u32 1, %s12196_s0  }
0x175d   : > { %s7303_s2 = scalar_lea.sflag [#allocation3], %s7302_s23 }
0x175e   : > { %p8902_p2 = pnand %p8905_p1, %p9656_p6 }
0x1760   : > { %9479 = dma.done.wait (!%p8902_p2), %s7303_s2, 16  }
0x1761   : > { %9481 = vsyncadd (!%p8902_p2), %s7303_s2, 4294967280  ;;  %s12198_s27 = sld [smem:[#allocation8_spill]]  ;;  %s12199_s4 = sld [smem:[#allocation6_spill]] }
0x1762   : > { %s12200_s26 = sld [smem:[#allocation9_spill]]  ;;  %s12201_s2 = smov %s9488_s25 }
0x1767   : > { %p31_p3 = scmp.ge.s32.totalorder %s12198_s27, 4   ;;  %s12202_s25 = smov %s12199_s4 }
0x1769   :  { %33 = sbr.rel (!%p31_p3) target bundleno = 11 (0xb), region = 151 }
0x1770   :  { %7307 = vsyncpa [#allocation3], 1 }
0x1771   :  { %7309 = vsyncpa [#allocation3 + $0x1], 1 }

</bundles_post_ra>
